<compile_context>
chip_gen: v5e
topology: v5e:2x2
jax: 0.10.0
libtpu: 0.0.40
codegen_flags: <defaults>
</compile_context>

<pallas_src>
import jax
import jax.numpy as jnp
from jax.experimental import pallas as pl
from jax.experimental.pallas import tpu as pltpu

# ----------------------------- model sizes ----------------------------------
B = 8          # batch (fills the 8 f32 sublanes of a vreg)
T = 8          # rollout length (fully unrolled inside the kernel)
N = 32         # nneurons
NBG = 8        # nbg (BG / thalamic latent dim)
CTX = 1        # context_rank
NCUE = 3       # external rnn input ('cue') dimension
BG_IN = 10     # bg_input_size (shared-trunk input width)
SHARED = 16    # shared hidden layer width
DT, TAU = 0.05, 0.15
ALPHA = DT / TAU
G0 = 1.2

H_C1, H_C2 = 25, 12       # context head hidden sizes   (CTX -> 25 -> 12 -> BG_IN)
H_R1, H_R2 = 50, 25       # recurrent head hidden sizes (N   -> 50 -> 25 -> BG_IN)

# Fused-dot column layouts (bias rows folded via the ones lane of the LHS)
D1_OUT = H_R1 + N + NBG + H_C1        # 115 = [g1 | drive | vr | h1]
D2_OUT = H_C2 + H_R2                  # 37  = [h2 | g2]
D3_OUT = 2 * BG_IN                    # 20  = [ctx_out | rec_out]

# Host-packed weight slab layout: each block padded to 16 rows (bf16 sublane
# packing) and 128 lanes; padded K rows are zero so zero-padded LHS lanes are free.
SEED = 8                              # per-step LHS prefix width: [1 | cue | ctx | 0]
K1 = 48                               # dot1 K: SEED + N + pad        (37 used)
K2 = 80                               # dot2 K: 1 + H_C1 + H_R1 + pad (76 used)
K3 = 48                               # dot3 K: 1 + H_C2 + H_R2 + pad (38 used)
K4 = 16                               # dot4 K: 1 + BG_IN + pad       (11 used)
K5 = 32                               # dot5 K: 1 + SHARED + pad      (17 used)
K6 = 16                               # dot6 K: NBG + pad             ( 8 used)
OFF1, OFF2, OFF3, OFF4, OFF5, OFF6 = 0, 48, 128, 176, 192, 224
W_ROWS = OFF6 + K6                    # 240
OUT_LANES = 128                       # lane-dense output slab width


# ------------------------------ helpers --------------------------------------
def _relu(x):
    return jnp.maximum(x, 0.0)


def _softplus(x):
    return jnp.maximum(x, 0.0) + jnp.log1p(jnp.exp(-jnp.abs(x)))


def _sigmoid(x):
    # numerically stable: never exponentiates a positive argument
    z = jnp.exp(-jnp.abs(x))
    return jnp.where(x >= 0, 1.0 / (1.0 + z), z / (1.0 + z))


# ------------------------------ kernel ----------------------------------------
def _kernel(x0_ref, r0_ref, pre_ref, w_ref, out_ref):
    f32, bf16 = jnp.float32, jnp.bfloat16
    nt = out_ref.shape[0]
    b = x0_ref.shape[0]

    # Weight slabs: loaded once (all offsets are multiples of 16 rows -> clean
    # bf16 tile slices) and held in vregs across the whole unrolled rollout.
    w1 = w_ref[OFF1:OFF1 + K1, :]     # [g1 | drive | vr | h1 | 0]
    w2 = w_ref[OFF2:OFF2 + K2, :]     # [h2 | g2 | 0]
    w3 = w_ref[OFF3:OFF3 + K3, :]     # [ctx_out | rec_out | 0]
    w4 = w_ref[OFF4:OFF4 + K4, :]     # [shared | 0]
    w5 = w_ref[OFF5:OFF5 + K5, :]     # [bg | 0]
    ut = w_ref[OFF6:OFF6 + K6, :]     # [mod (N) | 0]

    # Hoisted constants (ones lane hits the folded bias rows; zero lanes hit
    # zero weight rows so the K padding is inert).
    one = jnp.ones((b, 1), f32)
    z1 = jnp.zeros((b, K1 - SEED - N), f32)
    z2 = jnp.zeros((b, K2 - 1 - H_C1 - H_R1), f32)
    z3 = jnp.zeros((b, K3 - 1 - H_C2 - H_R2), f32)
    z4 = jnp.zeros((b, K4 - 1 - BG_IN), f32)
    z5 = jnp.zeros((b, K5 - 1 - SHARED), f32)
    z6 = jnp.zeros((b, K6 - NBG), f32)
    zo = jnp.zeros((b, OUT_LANES - 2 * N - NBG), f32)

    # RNN state carried in vregs across the unrolled time loop.
    x = x0_ref[...]                   # (B, N) f32
    r = r0_ref[...]                   # (B, N) f32

    for t in range(nt):               # fully unrolled: one pallas step total
        pre = pre_ref[t]              # (B, SEED) = [1 | cue(t) | ctx(t) | 0]

        # dot 1: [1|cue|ctx|0 | r | 0] @ W1 -> [rec-head L1 | r@J + cue@I | r@V^T | ctx-head L1]
        lhs1 = jnp.concatenate([pre, r, z1], axis=1).astype(bf16)
        y1 = jnp.dot(lhs1, w1, preferred_element_type=f32)
        g1 = _relu(y1[:, 0:H_R1])
        drive = y1[:, H_R1:H_R1 + N]
        vr = y1[:, H_R1 + N:H_R1 + N + NBG]
        h1 = _relu(y1[:, H_R1 + N + NBG:D1_OUT])

        # dot 2: [1 | h1 | g1] @ blockdiag(wc2, wr2) -> [h2 | g2]
        lhs2 = jnp.concatenate([one, h1, g1, z2], axis=1).astype(bf16)
        y2 = jnp.dot(lhs2, w2, preferred_element_type=f32)
        h2 = _relu(y2[:, 0:H_C2])
        g2 = _relu(y2[:, H_C2:D2_OUT])

        # dot 3: [1 | h2 | g2] @ blockdiag(wc3, wr3) -> summed head outputs
        lhs3 = jnp.concatenate([one, h2, g2, z3], axis=1).astype(bf16)
        y3 = jnp.dot(lhs3, w3, preferred_element_type=f32)
        s = _relu(y3[:, 0:BG_IN]) + _relu(y3[:, BG_IN:D3_OUT])

        # shared trunk: BG_IN -> SHARED -> NBG (sigmoid gate)
        lhs4 = jnp.concatenate([one, s, z4], axis=1).astype(bf16)
        s1 = _relu(jnp.dot(lhs4, w4, preferred_element_type=f32)[:, 0:SHARED])
        lhs5 = jnp.concatenate([one, s1, z5], axis=1).astype(bf16)
        bg = _sigmoid(jnp.dot(lhs5, w5, preferred_element_type=f32)[:, 0:NBG])

        # ThalamicRNN Euler step with J_eff = J + U diag(bg) V
        lhs6 = jnp.concatenate([bg * vr, z6], axis=1).astype(bf16)
        mod = jnp.dot(lhs6, ut, preferred_element_type=f32)[:, 0:N]
        x = x + ALPHA * (drive + mod - x)
        r = _softplus(x)

        # one unmasked lane-dense store per step: (8,128) = exactly 1 vreg
        out_ref[t] = jnp.concatenate([x, r, bg, zo], axis=-1)


# ------------------------------ wrappers --------------------------------------
def rnn_feedback_bg_rollout(state, bg_inputs, rnn_inputs, w_all):
    """T-step rollout; each step is exactly one RNNFeedbackBG.forward()."""
    x0, r0 = state
    ctx_seq = bg_inputs["context"]          # (T, B, CTX)
    cue_seq = rnn_inputs["cue"]             # (T, B, NCUE)
    nt, b = cue_seq.shape[0], cue_seq.shape[1]

    # Host-packed per-step LHS seed: [ones(bias hit) | cue | ctx | zero pad]
    pre = jnp.concatenate([
        jnp.ones((nt, b, 1), jnp.float32),
        cue_seq.astype(jnp.float32),
        ctx_seq.astype(jnp.float32),
        jnp.zeros((nt, b, SEED - 1 - NCUE - CTX), jnp.float32),
    ], axis=-1)                             # (T, B, SEED)

    vmem = pl.BlockSpec(memory_space=pltpu.MemorySpace.VMEM)
    out = pl.pallas_call(
        _kernel,
        out_shape=jax.ShapeDtypeStruct((nt, b, OUT_LANES), jnp.float32),
        in_specs=[vmem, vmem, vmem, vmem],   # whole arrays, VMEM-resident, 1 DMA each
        out_specs=vmem,                      # whole (T,B,128) slab written in-kernel
    )(x0, r0, pre, w_all)

    return {
        "r_hidden": out[:, :, 0:N],
        "r_act": out[:, :, N:2 * N],
        "bg_act": out[:, :, 2 * N:2 * N + NBG],
    }


def rnn_feedback_bg_forward(state, bg_inputs, rnn_inputs, w_all):
    """Single forward() step (original module semantics) via a T=1 rollout."""
    out = rnn_feedback_bg_rollout(
        state,
        {"context": bg_inputs["context"][None]},
        {"cue": rnn_inputs["cue"][None]},
        w_all)
    return {k: v[0] for k, v in out.items()}


# ----------------------- deterministic parameter init -------------------------
def init_params(key):
    keys = jax.random.split(key, 12)

    def lin(k, fan_in, fan_out):
        kw, kb = jax.random.split(k)
        w = jax.random.normal(kw, (fan_in, fan_out), jnp.float32) / jnp.sqrt(
            jnp.float32(fan_in))
        b = 0.01 * jax.random.normal(kb, (1, fan_out), jnp.float32)
        return w, b

    p = {}
    p["wc1"], p["bc1"] = lin(keys[0], CTX, H_C1)
    p["wc2"], p["bc2"] = lin(keys[1], H_C1, H_C2)
    p["wc3"], p["bc3"] = lin(keys[2], H_C2, BG_IN)
    p["wr1"], p["br1"] = lin(keys[3], N, H_R1)
    p["wr2"], p["br2"] = lin(keys[4], H_R1, H_R2)
    p["wr3"], p["br3"] = lin(keys[5], H_R2, BG_IN)
    p["ws1"], p["bs1"] = lin(keys[6], BG_IN, SHARED)
    p["ws2"], p["bs2"] = lin(keys[7], SHARED, NBG)
    # RNN weights, stored pre-transposed (rhs of x @ W)
    p["j_t"] = G0 * jax.random.normal(keys[8], (N, N), jnp.float32) / jnp.sqrt(
        jnp.float32(N))
    p["v_t"] = jax.random.normal(keys[9], (N, NBG), jnp.float32) / jnp.sqrt(
        jnp.float32(N))
    p["u_t"] = jax.random.normal(keys[10], (NBG, N), jnp.float32) / jnp.sqrt(
        jnp.float32(NBG))
    p["i_cue"] = jax.random.normal(keys[11], (NCUE, N), jnp.float32) / jnp.sqrt(
        jnp.float32(NCUE))
    return p


def pack_params(p):
    """Host-side fusion of all MLP/RNN parameters into ONE (240,128) bf16 slab.

    K-row ordering matches the in-kernel LHS concatenation; every block is
    padded to a multiple of 16 rows (bf16 sublane packing) and 128 lanes, with
    zero padding so padded LHS lanes contribute nothing.
    """
    f32 = jnp.float32

    def Z(r, c):
        return jnp.zeros((r, c), f32)

    def pad(a, rows):
        return jnp.pad(a, ((0, rows - a.shape[0]), (0, OUT_LANES - a.shape[1])))

    # W1: rows [bias | cue | ctx | 0 | r], cols [g1(50) | drive(32) | vr(8) | h1(25)]
    w1 = jnp.concatenate([
        jnp.concatenate([p["br1"], Z(1, N), Z(1, NBG), p["bc1"]], axis=1),
        jnp.concatenate([Z(NCUE, H_R1), p["i_cue"], Z(NCUE, NBG), Z(NCUE, H_C1)], axis=1),
        jnp.concatenate([Z(CTX, H_R1), Z(CTX, N), Z(CTX, NBG), p["wc1"]], axis=1),
        Z(SEED - 1 - NCUE - CTX, D1_OUT),
        jnp.concatenate([p["wr1"], p["j_t"], p["v_t"], Z(N, H_C1)], axis=1),
    ], axis=0)                                              # (40, 115)
    # W2: rows [bias | h1 | g1], cols [h2(12) | g2(25)]  (block-diagonal)
    w2 = jnp.concatenate([
        jnp.concatenate([p["bc2"], p["br2"]], axis=1),
        jnp.concatenate([p["wc2"], Z(H_C1, H_R2)], axis=1),
        jnp.concatenate([Z(H_R1, H_C2), p["wr2"]], axis=1),
    ], axis=0)                                              # (76, 37)
    # W3: rows [bias | h2 | g2], cols [ctx_out(10) | rec_out(10)]
    w3 = jnp.concatenate([
        jnp.concatenate([p["bc3"], p["br3"]], axis=1),
        jnp.concatenate([p["wc3"], Z(H_C2, BG_IN)], axis=1),
        jnp.concatenate([Z(H_R2, BG_IN), p["wr3"]], axis=1),
    ], axis=0)                                              # (38, 20)
    w4 = jnp.concatenate([p["bs1"], p["ws1"]], axis=0)      # (11, 16)
    w5 = jnp.concatenate([p["bs2"], p["ws2"]], axis=0)      # (17, 8)
    ut = p["u_t"]                                           # (8, 32)

    slab = jnp.concatenate([pad(w1, K1), pad(w2, K2), pad(w3, K3),
                            pad(w4, K4), pad(w5, K5), pad(ut, K6)], axis=0)
    assert slab.shape == (W_ROWS, OUT_LANES)
    return slab.astype(jnp.bfloat16)


# --------------------------------- main ----------------------------------------
if __name__ == "__main__":
    key = jax.random.PRNGKey(0)
    kp, ks, kc, ku = jax.random.split(key, 4)

    params = init_params(kp)
    w_all = pack_params(params)

    # RNN state (self.rnn.x / self.rnn.r), deterministically "reset"
    x0 = jax.random.normal(ks, (B, N), jnp.float32) / jnp.sqrt(jnp.float32(N))
    r0 = _softplus(x0)

    ctx_seq = jax.random.normal(kc, (T, B, CTX), jnp.float32)
    cue_seq = jax.random.normal(ku, (T, B, NCUE), jnp.float32)

    # T-step rollout: the whole time loop lives inside one kernel invocation.
    roll = rnn_feedback_bg_rollout((x0, r0), {"context": ctx_seq},
                                   {"cue": cue_seq}, w_all)
    roll = jax.block_until_ready(roll)
    assert roll["r_hidden"].shape == (T, B, N)
    assert roll["r_act"].shape == (T, B, N)
    assert roll["bg_act"].shape == (T, B, NBG)
    assert roll["r_hidden"].dtype == jnp.float32
    assert bool(jnp.all(jnp.isfinite(roll["r_hidden"])))
    assert bool(jnp.all((roll["bg_act"] >= 0.0) & (roll["bg_act"] <= 1.0)))

    # Single module.forward() step (original semantics) must match step 0.
    step = rnn_feedback_bg_forward((x0, r0), {"context": ctx_seq[0]},
                                   {"cue": cue_seq[0]}, w_all)
    step = jax.block_until_ready(step)
    assert step["r_hidden"].shape == (B, N)
    assert step["bg_act"].shape == (B, NBG)
    assert bool(jnp.allclose(step["r_act"], roll["r_act"][0], atol=1e-5))
    assert bool(jnp.allclose(step["bg_act"], roll["bg_act"][0], atol=1e-5))

    print("KERNEL_OK")
</pallas_src>

<mosaic_0001>
module attributes {stable_mosaic.version = 11 : i64} {
  func.func @_kernel(%arg0: memref<8x32xf32, #tpu.memory_space<vmem>>, %arg1: memref<8x32xf32, #tpu.memory_space<vmem>>, %arg2: memref<8x8x8xf32, #tpu.memory_space<vmem>>, %arg3: memref<240x128xbf16, #tpu.memory_space<vmem>>, %arg4: memref<8x8x128xf32, #tpu.memory_space<vmem>>) attributes {dimension_semantics = [], scalar_prefetch = 0 : i64, scratch_operands = 0 : i64, tpu.core_type = #tpu.core_type<tc>} {
    %c0 = arith.constant 0 : index
    %c0_0 = arith.constant 0 : index
    %0 = vector.load %arg3[%c0, %c0_0] : memref<240x128xbf16, #tpu.memory_space<vmem>>, vector<48x128xbf16>
    %c48 = arith.constant 48 : index
    %c0_1 = arith.constant 0 : index
    %1 = vector.load %arg3[%c48, %c0_1] : memref<240x128xbf16, #tpu.memory_space<vmem>>, vector<80x128xbf16>
    %c128 = arith.constant 128 : index
    %c0_2 = arith.constant 0 : index
    %2 = vector.load %arg3[%c128, %c0_2] : memref<240x128xbf16, #tpu.memory_space<vmem>>, vector<48x128xbf16>
    %c176 = arith.constant 176 : index
    %c0_3 = arith.constant 0 : index
    %3 = vector.load %arg3[%c176, %c0_3] : memref<240x128xbf16, #tpu.memory_space<vmem>>, vector<16x128xbf16>
    %c192 = arith.constant 192 : index
    %c0_4 = arith.constant 0 : index
    %4 = vector.load %arg3[%c192, %c0_4] : memref<240x128xbf16, #tpu.memory_space<vmem>>, vector<32x128xbf16>
    %c224 = arith.constant 224 : index
    %c0_5 = arith.constant 0 : index
    %5 = vector.load %arg3[%c224, %c0_5] : memref<240x128xbf16, #tpu.memory_space<vmem>>, vector<16x128xbf16>
    %cst = arith.constant 1.000000e+00 : f32
    %6 = vector.broadcast %cst : f32 to vector<8x1xf32>
    %cst_6 = arith.constant 0.000000e+00 : f32
    %7 = vector.broadcast %cst_6 : f32 to vector<8x8xf32>
    %cst_7 = arith.constant 0.000000e+00 : f32
    %8 = vector.broadcast %cst_7 : f32 to vector<8x4xf32>
    %cst_8 = arith.constant 0.000000e+00 : f32
    %9 = vector.broadcast %cst_8 : f32 to vector<8x10xf32>
    %cst_9 = arith.constant 0.000000e+00 : f32
    %10 = vector.broadcast %cst_9 : f32 to vector<8x5xf32>
    %cst_10 = arith.constant 0.000000e+00 : f32
    %11 = vector.broadcast %cst_10 : f32 to vector<8x15xf32>
    %cst_11 = arith.constant 0.000000e+00 : f32
    %12 = vector.broadcast %cst_11 : f32 to vector<8x8xf32>
    %cst_12 = arith.constant 0.000000e+00 : f32
    %13 = vector.broadcast %cst_12 : f32 to vector<8x56xf32>
    %c0_13 = arith.constant 0 : index
    %c0_14 = arith.constant 0 : index
    %14 = vector.load %arg0[%c0_13, %c0_14] : memref<8x32xf32, #tpu.memory_space<vmem>>, vector<8x32xf32>
    %c0_15 = arith.constant 0 : index
    %c0_16 = arith.constant 0 : index
    %15 = vector.load %arg1[%c0_15, %c0_16] : memref<8x32xf32, #tpu.memory_space<vmem>>, vector<8x32xf32>
    %c0_17 = arith.constant 0 : index
    %c0_18 = arith.constant 0 : index
    %c0_19 = arith.constant 0 : index
    %16 = vector.load %arg2[%c0_17, %c0_18, %c0_19] : memref<8x8x8xf32, #tpu.memory_space<vmem>>, vector<1x8x8xf32>
    %17 = vector.shape_cast %16 : vector<1x8x8xf32> to vector<8x8xf32>
    %18 = tpu.concatenate %17, %15, %7 in 1 : vector<8x8xf32>, vector<8x32xf32>, vector<8x8xf32> -> vector<8x48xf32>
    %19 = arith.truncf %18 : vector<8x48xf32> to vector<8x48xbf16>
    %cst_20 = arith.constant dense<0.000000e+00> : vector<8x128xf32>
    %20 = tpu.matmul %19, %0, %cst_20 {dimension_numbers = #tpu.dot_dimension_numbers<[1], [0], [0], [1], [0, 0, 1, 1], [], []>} : vector<8x48xbf16>, vector<48x128xbf16>, vector<8x128xf32> -> vector<8x128xf32>
    %21 = vector.extract_strided_slice %20 {offsets = [0, 0], sizes = [8, 50], strides = [1, 1]} : vector<8x128xf32> to vector<8x50xf32>
    %cst_21 = arith.constant 0.000000e+00 : f32
    %22 = vector.broadcast %cst_21 : f32 to vector<8x50xf32>
    %23 = arith.maximumf %21, %22 : vector<8x50xf32>
    %24 = vector.extract_strided_slice %20 {offsets = [0, 50], sizes = [8, 32], strides = [1, 1]} : vector<8x128xf32> to vector<8x32xf32>
    %25 = vector.extract_strided_slice %20 {offsets = [0, 82], sizes = [8, 8], strides = [1, 1]} : vector<8x128xf32> to vector<8x8xf32>
    %26 = vector.extract_strided_slice %20 {offsets = [0, 90], sizes = [8, 25], strides = [1, 1]} : vector<8x128xf32> to vector<8x25xf32>
    %cst_22 = arith.constant 0.000000e+00 : f32
    %27 = vector.broadcast %cst_22 : f32 to vector<8x25xf32>
    %28 = arith.maximumf %26, %27 : vector<8x25xf32>
    %29 = tpu.concatenate %6, %28, %23, %8 in 1 : vector<8x1xf32>, vector<8x25xf32>, vector<8x50xf32>, vector<8x4xf32> -> vector<8x80xf32>
    %30 = arith.truncf %29 : vector<8x80xf32> to vector<8x80xbf16>
    %cst_23 = arith.constant dense<0.000000e+00> : vector<8x128xf32>
    %31 = tpu.matmul %30, %1, %cst_23 {dimension_numbers = #tpu.dot_dimension_numbers<[1], [0], [0], [1], [0, 0, 1, 1], [], []>} : vector<8x80xbf16>, vector<80x128xbf16>, vector<8x128xf32> -> vector<8x128xf32>
    %32 = vector.extract_strided_slice %31 {offsets = [0, 0], sizes = [8, 12], strides = [1, 1]} : vector<8x128xf32> to vector<8x12xf32>
    %cst_24 = arith.constant 0.000000e+00 : f32
    %33 = vector.broadcast %cst_24 : f32 to vector<8x12xf32>
    %34 = arith.maximumf %32, %33 : vector<8x12xf32>
    %35 = vector.extract_strided_slice %31 {offsets = [0, 12], sizes = [8, 25], strides = [1, 1]} : vector<8x128xf32> to vector<8x25xf32>
    %cst_25 = arith.constant 0.000000e+00 : f32
    %36 = vector.broadcast %cst_25 : f32 to vector<8x25xf32>
    %37 = arith.maximumf %35, %36 : vector<8x25xf32>
    %38 = tpu.concatenate %6, %34, %37, %9 in 1 : vector<8x1xf32>, vector<8x12xf32>, vector<8x25xf32>, vector<8x10xf32> -> vector<8x48xf32>
    %39 = arith.truncf %38 : vector<8x48xf32> to vector<8x48xbf16>
    %cst_26 = arith.constant dense<0.000000e+00> : vector<8x128xf32>
    %40 = tpu.matmul %39, %2, %cst_26 {dimension_numbers = #tpu.dot_dimension_numbers<[1], [0], [0], [1], [0, 0, 1, 1], [], []>} : vector<8x48xbf16>, vector<48x128xbf16>, vector<8x128xf32> -> vector<8x128xf32>
    %41 = vector.extract_strided_slice %40 {offsets = [0, 0], sizes = [8, 10], strides = [1, 1]} : vector<8x128xf32> to vector<8x10xf32>
    %cst_27 = arith.constant 0.000000e+00 : f32
    %42 = vector.broadcast %cst_27 : f32 to vector<8x10xf32>
    %43 = arith.maximumf %41, %42 : vector<8x10xf32>
    %44 = vector.extract_strided_slice %40 {offsets = [0, 10], sizes = [8, 10], strides = [1, 1]} : vector<8x128xf32> to vector<8x10xf32>
    %cst_28 = arith.constant 0.000000e+00 : f32
    %45 = vector.broadcast %cst_28 : f32 to vector<8x10xf32>
    %46 = arith.maximumf %44, %45 : vector<8x10xf32>
    %47 = arith.addf %43, %46 : vector<8x10xf32>
    %48 = tpu.concatenate %6, %47, %10 in 1 : vector<8x1xf32>, vector<8x10xf32>, vector<8x5xf32> -> vector<8x16xf32>
    %49 = arith.truncf %48 : vector<8x16xf32> to vector<8x16xbf16>
    %cst_29 = arith.constant dense<0.000000e+00> : vector<8x128xf32>
    %50 = tpu.matmul %49, %3, %cst_29 {dimension_numbers = #tpu.dot_dimension_numbers<[1], [0], [0], [1], [0, 0, 1, 1], [], []>} : vector<8x16xbf16>, vector<16x128xbf16>, vector<8x128xf32> -> vector<8x128xf32>
    %51 = vector.extract_strided_slice %50 {offsets = [0, 0], sizes = [8, 16], strides = [1, 1]} : vector<8x128xf32> to vector<8x16xf32>
    %cst_30 = arith.constant 0.000000e+00 : f32
    %52 = vector.broadcast %cst_30 : f32 to vector<8x16xf32>
    %53 = arith.maximumf %51, %52 : vector<8x16xf32>
    %54 = tpu.concatenate %6, %53, %11 in 1 : vector<8x1xf32>, vector<8x16xf32>, vector<8x15xf32> -> vector<8x32xf32>
    %55 = arith.truncf %54 : vector<8x32xf32> to vector<8x32xbf16>
    %cst_31 = arith.constant dense<0.000000e+00> : vector<8x128xf32>
    %56 = tpu.matmul %55, %4, %cst_31 {dimension_numbers = #tpu.dot_dimension_numbers<[1], [0], [0], [1], [0, 0, 1, 1], [], []>} : vector<8x32xbf16>, vector<32x128xbf16>, vector<8x128xf32> -> vector<8x128xf32>
    %57 = vector.extract_strided_slice %56 {offsets = [0, 0], sizes = [8, 8], strides = [1, 1]} : vector<8x128xf32> to vector<8x8xf32>
    %58 = math.absf %57 : vector<8x8xf32>
    %cst_32 = arith.constant 0.000000e+00 : f32
    %59 = vector.broadcast %cst_32 : f32 to vector<8x8xf32>
    %60 = arith.subf %59, %58 : vector<8x8xf32>
    %61 = math.exp %60 : vector<8x8xf32>
    %cst_33 = arith.constant 0.000000e+00 : f32
    %62 = vector.broadcast %cst_33 : f32 to vector<8x8xf32>
    %63 = arith.cmpf oge, %57, %62 : vector<8x8xf32>
    %cst_34 = arith.constant 1.000000e+00 : f32
    %64 = vector.broadcast %cst_34 : f32 to vector<8x8xf32>
    %65 = arith.addf %64, %61 : vector<8x8xf32>
    %cst_35 = arith.constant 1.000000e+00 : f32
    %66 = vector.broadcast %cst_35 : f32 to vector<8x8xf32>
    %67 = arith.divf %66, %65 : vector<8x8xf32>
    %cst_36 = arith.constant 1.000000e+00 : f32
    %68 = vector.broadcast %cst_36 : f32 to vector<8x8xf32>
    %69 = arith.addf %68, %61 : vector<8x8xf32>
    %70 = arith.divf %61, %69 : vector<8x8xf32>
    %71 = arith.select %63, %67, %70 : vector<8x8xi1>, vector<8x8xf32>
    %72 = arith.mulf %71, %25 : vector<8x8xf32>
    %73 = tpu.concatenate %72, %12 in 1 : vector<8x8xf32>, vector<8x8xf32> -> vector<8x16xf32>
    %74 = arith.truncf %73 : vector<8x16xf32> to vector<8x16xbf16>
    %cst_37 = arith.constant dense<0.000000e+00> : vector<8x128xf32>
    %75 = tpu.matmul %74, %5, %cst_37 {dimension_numbers = #tpu.dot_dimension_numbers<[1], [0], [0], [1], [0, 0, 1, 1], [], []>} : vector<8x16xbf16>, vector<16x128xbf16>, vector<8x128xf32> -> vector<8x128xf32>
    %76 = vector.extract_strided_slice %75 {offsets = [0, 0], sizes = [8, 32], strides = [1, 1]} : vector<8x128xf32> to vector<8x32xf32>
    %77 = arith.addf %24, %76 : vector<8x32xf32>
    %78 = arith.subf %77, %14 : vector<8x32xf32>
    %cst_38 = arith.constant 0.333333343 : f32
    %79 = vector.broadcast %cst_38 : f32 to vector<8x32xf32>
    %80 = arith.mulf %79, %78 : vector<8x32xf32>
    %81 = arith.addf %14, %80 : vector<8x32xf32>
    %cst_39 = arith.constant 0.000000e+00 : f32
    %82 = vector.broadcast %cst_39 : f32 to vector<8x32xf32>
    %83 = arith.maximumf %81, %82 : vector<8x32xf32>
    %84 = math.absf %81 : vector<8x32xf32>
    %cst_40 = arith.constant 0.000000e+00 : f32
    %85 = vector.broadcast %cst_40 : f32 to vector<8x32xf32>
    %86 = arith.subf %85, %84 : vector<8x32xf32>
    %87 = math.exp %86 : vector<8x32xf32>
    %88 = math.log1p %87 : vector<8x32xf32>
    %89 = arith.addf %83, %88 : vector<8x32xf32>
    %90 = tpu.concatenate %81, %89, %71, %13 in 1 : vector<8x32xf32>, vector<8x32xf32>, vector<8x8xf32>, vector<8x56xf32> -> vector<8x128xf32>
    %c0_41 = arith.constant 0 : index
    %c0_42 = arith.constant 0 : index
    %c0_43 = arith.constant 0 : index
    %91 = vector.load %arg4[%c0_41, %c0_42, %c0_43] : memref<8x8x128xf32, #tpu.memory_space<vmem>>, vector<1x8x128xf32>
    %92 = vector.shape_cast %91 : vector<1x8x128xf32> to vector<8x128xf32>
    %93 = vector.shape_cast %90 : vector<8x128xf32> to vector<1x8x128xf32>
    tpu.vector_store %arg4[%c0_41, %c0_42, %c0_43], %93 {strides = array<i32>} : memref<8x8x128xf32, #tpu.memory_space<vmem>>, vector<1x8x128xf32>,
    %c1 = arith.constant 1 : index
    %c0_44 = arith.constant 0 : index
    %c0_45 = arith.constant 0 : index
    %94 = vector.load %arg2[%c1, %c0_44, %c0_45] : memref<8x8x8xf32, #tpu.memory_space<vmem>>, vector<1x8x8xf32>
    %95 = vector.shape_cast %94 : vector<1x8x8xf32> to vector<8x8xf32>
    %96 = tpu.concatenate %95, %89, %7 in 1 : vector<8x8xf32>, vector<8x32xf32>, vector<8x8xf32> -> vector<8x48xf32>
    %97 = arith.truncf %96 : vector<8x48xf32> to vector<8x48xbf16>
    %cst_46 = arith.constant dense<0.000000e+00> : vector<8x128xf32>
    %98 = tpu.matmul %97, %0, %cst_46 {dimension_numbers = #tpu.dot_dimension_numbers<[1], [0], [0], [1], [0, 0, 1, 1], [], []>} : vector<8x48xbf16>, vector<48x128xbf16>, vector<8x128xf32> -> vector<8x128xf32>
    %99 = vector.extract_strided_slice %98 {offsets = [0, 0], sizes = [8, 50], strides = [1, 1]} : vector<8x128xf32> to vector<8x50xf32>
    %cst_47 = arith.constant 0.000000e+00 : f32
    %100 = vector.broadcast %cst_47 : f32 to vector<8x50xf32>
    %101 = arith.maximumf %99, %100 : vector<8x50xf32>
    %102 = vector.extract_strided_slice %98 {offsets = [0, 50], sizes = [8, 32], strides = [1, 1]} : vector<8x128xf32> to vector<8x32xf32>
    %103 = vector.extract_strided_slice %98 {offsets = [0, 82], sizes = [8, 8], strides = [1, 1]} : vector<8x128xf32> to vector<8x8xf32>
    %104 = vector.extract_strided_slice %98 {offsets = [0, 90], sizes = [8, 25], strides = [1, 1]} : vector<8x128xf32> to vector<8x25xf32>
    %cst_48 = arith.constant 0.000000e+00 : f32
    %105 = vector.broadcast %cst_48 : f32 to vector<8x25xf32>
    %106 = arith.maximumf %104, %105 : vector<8x25xf32>
    %107 = tpu.concatenate %6, %106, %101, %8 in 1 : vector<8x1xf32>, vector<8x25xf32>, vector<8x50xf32>, vector<8x4xf32> -> vector<8x80xf32>
    %108 = arith.truncf %107 : vector<8x80xf32> to vector<8x80xbf16>
    %cst_49 = arith.constant dense<0.000000e+00> : vector<8x128xf32>
    %109 = tpu.matmul %108, %1, %cst_49 {dimension_numbers = #tpu.dot_dimension_numbers<[1], [0], [0], [1], [0, 0, 1, 1], [], []>} : vector<8x80xbf16>, vector<80x128xbf16>, vector<8x128xf32> -> vector<8x128xf32>
    %110 = vector.extract_strided_slice %109 {offsets = [0, 0], sizes = [8, 12], strides = [1, 1]} : vector<8x128xf32> to vector<8x12xf32>
    %cst_50 = arith.constant 0.000000e+00 : f32
    %111 = vector.broadcast %cst_50 : f32 to vector<8x12xf32>
    %112 = arith.maximumf %110, %111 : vector<8x12xf32>
    %113 = vector.extract_strided_slice %109 {offsets = [0, 12], sizes = [8, 25], strides = [1, 1]} : vector<8x128xf32> to vector<8x25xf32>
    %cst_51 = arith.constant 0.000000e+00 : f32
    %114 = vector.broadcast %cst_51 : f32 to vector<8x25xf32>
    %115 = arith.maximumf %113, %114 : vector<8x25xf32>
    %116 = tpu.concatenate %6, %112, %115, %9 in 1 : vector<8x1xf32>, vector<8x12xf32>, vector<8x25xf32>, vector<8x10xf32> -> vector<8x48xf32>
    %117 = arith.truncf %116 : vector<8x48xf32> to vector<8x48xbf16>
    %cst_52 = arith.constant dense<0.000000e+00> : vector<8x128xf32>
    %118 = tpu.matmul %117, %2, %cst_52 {dimension_numbers = #tpu.dot_dimension_numbers<[1], [0], [0], [1], [0, 0, 1, 1], [], []>} : vector<8x48xbf16>, vector<48x128xbf16>, vector<8x128xf32> -> vector<8x128xf32>
    %119 = vector.extract_strided_slice %118 {offsets = [0, 0], sizes = [8, 10], strides = [1, 1]} : vector<8x128xf32> to vector<8x10xf32>
    %cst_53 = arith.constant 0.000000e+00 : f32
    %120 = vector.broadcast %cst_53 : f32 to vector<8x10xf32>
    %121 = arith.maximumf %119, %120 : vector<8x10xf32>
    %122 = vector.extract_strided_slice %118 {offsets = [0, 10], sizes = [8, 10], strides = [1, 1]} : vector<8x128xf32> to vector<8x10xf32>
    %cst_54 = arith.constant 0.000000e+00 : f32
    %123 = vector.broadcast %cst_54 : f32 to vector<8x10xf32>
    %124 = arith.maximumf %122, %123 : vector<8x10xf32>
    %125 = arith.addf %121, %124 : vector<8x10xf32>
    %126 = tpu.concatenate %6, %125, %10 in 1 : vector<8x1xf32>, vector<8x10xf32>, vector<8x5xf32> -> vector<8x16xf32>
    %127 = arith.truncf %126 : vector<8x16xf32> to vector<8x16xbf16>
    %cst_55 = arith.constant dense<0.000000e+00> : vector<8x128xf32>
    %128 = tpu.matmul %127, %3, %cst_55 {dimension_numbers = #tpu.dot_dimension_numbers<[1], [0], [0], [1], [0, 0, 1, 1], [], []>} : vector<8x16xbf16>, vector<16x128xbf16>, vector<8x128xf32> -> vector<8x128xf32>
    %129 = vector.extract_strided_slice %128 {offsets = [0, 0], sizes = [8, 16], strides = [1, 1]} : vector<8x128xf32> to vector<8x16xf32>
    %cst_56 = arith.constant 0.000000e+00 : f32
    %130 = vector.broadcast %cst_56 : f32 to vector<8x16xf32>
    %131 = arith.maximumf %129, %130 : vector<8x16xf32>
    %132 = tpu.concatenate %6, %131, %11 in 1 : vector<8x1xf32>, vector<8x16xf32>, vector<8x15xf32> -> vector<8x32xf32>
    %133 = arith.truncf %132 : vector<8x32xf32> to vector<8x32xbf16>
    %cst_57 = arith.constant dense<0.000000e+00> : vector<8x128xf32>
    %134 = tpu.matmul %133, %4, %cst_57 {dimension_numbers = #tpu.dot_dimension_numbers<[1], [0], [0], [1], [0, 0, 1, 1], [], []>} : vector<8x32xbf16>, vector<32x128xbf16>, vector<8x128xf32> -> vector<8x128xf32>
    %135 = vector.extract_strided_slice %134 {offsets = [0, 0], sizes = [8, 8], strides = [1, 1]} : vector<8x128xf32> to vector<8x8xf32>
    %136 = math.absf %135 : vector<8x8xf32>
    %cst_58 = arith.constant 0.000000e+00 : f32
    %137 = vector.broadcast %cst_58 : f32 to vector<8x8xf32>
    %138 = arith.subf %137, %136 : vector<8x8xf32>
    %139 = math.exp %138 : vector<8x8xf32>
    %cst_59 = arith.constant 0.000000e+00 : f32
    %140 = vector.broadcast %cst_59 : f32 to vector<8x8xf32>
    %141 = arith.cmpf oge, %135, %140 : vector<8x8xf32>
    %cst_60 = arith.constant 1.000000e+00 : f32
    %142 = vector.broadcast %cst_60 : f32 to vector<8x8xf32>
    %143 = arith.addf %142, %139 : vector<8x8xf32>
    %cst_61 = arith.constant 1.000000e+00 : f32
    %144 = vector.broadcast %cst_61 : f32 to vector<8x8xf32>
    %145 = arith.divf %144, %143 : vector<8x8xf32>
    %cst_62 = arith.constant 1.000000e+00 : f32
    %146 = vector.broadcast %cst_62 : f32 to vector<8x8xf32>
    %147 = arith.addf %146, %139 : vector<8x8xf32>
    %148 = arith.divf %139, %147 : vector<8x8xf32>
    %149 = arith.select %141, %145, %148 : vector<8x8xi1>, vector<8x8xf32>
    %150 = arith.mulf %149, %103 : vector<8x8xf32>
    %151 = tpu.concatenate %150, %12 in 1 : vector<8x8xf32>, vector<8x8xf32> -> vector<8x16xf32>
    %152 = arith.truncf %151 : vector<8x16xf32> to vector<8x16xbf16>
    %cst_63 = arith.constant dense<0.000000e+00> : vector<8x128xf32>
    %153 = tpu.matmul %152, %5, %cst_63 {dimension_numbers = #tpu.dot_dimension_numbers<[1], [0], [0], [1], [0, 0, 1, 1], [], []>} : vector<8x16xbf16>, vector<16x128xbf16>, vector<8x128xf32> -> vector<8x128xf32>
    %154 = vector.extract_strided_slice %153 {offsets = [0, 0], sizes = [8, 32], strides = [1, 1]} : vector<8x128xf32> to vector<8x32xf32>
    %155 = arith.addf %102, %154 : vector<8x32xf32>
    %156 = arith.subf %155, %81 : vector<8x32xf32>
    %cst_64 = arith.constant 0.333333343 : f32
    %157 = vector.broadcast %cst_64 : f32 to vector<8x32xf32>
    %158 = arith.mulf %157, %156 : vector<8x32xf32>
    %159 = arith.addf %81, %158 : vector<8x32xf32>
    %cst_65 = arith.constant 0.000000e+00 : f32
    %160 = vector.broadcast %cst_65 : f32 to vector<8x32xf32>
    %161 = arith.maximumf %159, %160 : vector<8x32xf32>
    %162 = math.absf %159 : vector<8x32xf32>
    %cst_66 = arith.constant 0.000000e+00 : f32
    %163 = vector.broadcast %cst_66 : f32 to vector<8x32xf32>
    %164 = arith.subf %163, %162 : vector<8x32xf32>
    %165 = math.exp %164 : vector<8x32xf32>
    %166 = math.log1p %165 : vector<8x32xf32>
    %167 = arith.addf %161, %166 : vector<8x32xf32>
    %168 = tpu.concatenate %159, %167, %149, %13 in 1 : vector<8x32xf32>, vector<8x32xf32>, vector<8x8xf32>, vector<8x56xf32> -> vector<8x128xf32>
    %c1_67 = arith.constant 1 : index
    %c0_68 = arith.constant 0 : index
    %c0_69 = arith.constant 0 : index
    %169 = vector.load %arg4[%c1_67, %c0_68, %c0_69] : memref<8x8x128xf32, #tpu.memory_space<vmem>>, vector<1x8x128xf32>
    %170 = vector.shape_cast %169 : vector<1x8x128xf32> to vector<8x128xf32>
    %171 = vector.shape_cast %168 : vector<8x128xf32> to vector<1x8x128xf32>
    tpu.vector_store %arg4[%c1_67, %c0_68, %c0_69], %171 {strides = array<i32>} : memref<8x8x128xf32, #tpu.memory_space<vmem>>, vector<1x8x128xf32>,
    %c2 = arith.constant 2 : index
    %c0_70 = arith.constant 0 : index
    %c0_71 = arith.constant 0 : index
    %172 = vector.load %arg2[%c2, %c0_70, %c0_71] : memref<8x8x8xf32, #tpu.memory_space<vmem>>, vector<1x8x8xf32>
    %173 = vector.shape_cast %172 : vector<1x8x8xf32> to vector<8x8xf32>
    %174 = tpu.concatenate %173, %167, %7 in 1 : vector<8x8xf32>, vector<8x32xf32>, vector<8x8xf32> -> vector<8x48xf32>
    %175 = arith.truncf %174 : vector<8x48xf32> to vector<8x48xbf16>
    %cst_72 = arith.constant dense<0.000000e+00> : vector<8x128xf32>
    %176 = tpu.matmul %175, %0, %cst_72 {dimension_numbers = #tpu.dot_dimension_numbers<[1], [0], [0], [1], [0, 0, 1, 1], [], []>} : vector<8x48xbf16>, vector<48x128xbf16>, vector<8x128xf32> -> vector<8x128xf32>
    %177 = vector.extract_strided_slice %176 {offsets = [0, 0], sizes = [8, 50], strides = [1, 1]} : vector<8x128xf32> to vector<8x50xf32>
    %cst_73 = arith.constant 0.000000e+00 : f32
    %178 = vector.broadcast %cst_73 : f32 to vector<8x50xf32>
    %179 = arith.maximumf %177, %178 : vector<8x50xf32>
    %180 = vector.extract_strided_slice %176 {offsets = [0, 50], sizes = [8, 32], strides = [1, 1]} : vector<8x128xf32> to vector<8x32xf32>
    %181 = vector.extract_strided_slice %176 {offsets = [0, 82], sizes = [8, 8], strides = [1, 1]} : vector<8x128xf32> to vector<8x8xf32>
    %182 = vector.extract_strided_slice %176 {offsets = [0, 90], sizes = [8, 25], strides = [1, 1]} : vector<8x128xf32> to vector<8x25xf32>
    %cst_74 = arith.constant 0.000000e+00 : f32
    %183 = vector.broadcast %cst_74 : f32 to vector<8x25xf32>
    %184 = arith.maximumf %182, %183 : vector<8x25xf32>
    %185 = tpu.concatenate %6, %184, %179, %8 in 1 : vector<8x1xf32>, vector<8x25xf32>, vector<8x50xf32>, vector<8x4xf32> -> vector<8x80xf32>
    %186 = arith.truncf %185 : vector<8x80xf32> to vector<8x80xbf16>
    %cst_75 = arith.constant dense<0.000000e+00> : vector<8x128xf32>
    %187 = tpu.matmul %186, %1, %cst_75 {dimension_numbers = #tpu.dot_dimension_numbers<[1], [0], [0], [1], [0, 0, 1, 1], [], []>} : vector<8x80xbf16>, vector<80x128xbf16>, vector<8x128xf32> -> vector<8x128xf32>
    %188 = vector.extract_strided_slice %187 {offsets = [0, 0], sizes = [8, 12], strides = [1, 1]} : vector<8x128xf32> to vector<8x12xf32>
    %cst_76 = arith.constant 0.000000e+00 : f32
    %189 = vector.broadcast %cst_76 : f32 to vector<8x12xf32>
    %190 = arith.maximumf %188, %189 : vector<8x12xf32>
    %191 = vector.extract_strided_slice %187 {offsets = [0, 12], sizes = [8, 25], strides = [1, 1]} : vector<8x128xf32> to vector<8x25xf32>
    %cst_77 = arith.constant 0.000000e+00 : f32
    %192 = vector.broadcast %cst_77 : f32 to vector<8x25xf32>
    %193 = arith.maximumf %191, %192 : vector<8x25xf32>
    %194 = tpu.concatenate %6, %190, %193, %9 in 1 : vector<8x1xf32>, vector<8x12xf32>, vector<8x25xf32>, vector<8x10xf32> -> vector<8x48xf32>
    %195 = arith.truncf %194 : vector<8x48xf32> to vector<8x48xbf16>
    %cst_78 = arith.constant dense<0.000000e+00> : vector<8x128xf32>
    %196 = tpu.matmul %195, %2, %cst_78 {dimension_numbers = #tpu.dot_dimension_numbers<[1], [0], [0], [1], [0, 0, 1, 1], [], []>} : vector<8x48xbf16>, vector<48x128xbf16>, vector<8x128xf32> -> vector<8x128xf32>
    %197 = vector.extract_strided_slice %196 {offsets = [0, 0], sizes = [8, 10], strides = [1, 1]} : vector<8x128xf32> to vector<8x10xf32>
    %cst_79 = arith.constant 0.000000e+00 : f32
    %198 = vector.broadcast %cst_79 : f32 to vector<8x10xf32>
    %199 = arith.maximumf %197, %198 : vector<8x10xf32>
    %200 = vector.extract_strided_slice %196 {offsets = [0, 10], sizes = [8, 10], strides = [1, 1]} : vector<8x128xf32> to vector<8x10xf32>
    %cst_80 = arith.constant 0.000000e+00 : f32
    %201 = vector.broadcast %cst_80 : f32 to vector<8x10xf32>
    %202 = arith.maximumf %200, %201 : vector<8x10xf32>
    %203 = arith.addf %199, %202 : vector<8x10xf32>
    %204 = tpu.concatenate %6, %203, %10 in 1 : vector<8x1xf32>, vector<8x10xf32>, vector<8x5xf32> -> vector<8x16xf32>
    %205 = arith.truncf %204 : vector<8x16xf32> to vector<8x16xbf16>
    %cst_81 = arith.constant dense<0.000000e+00> : vector<8x128xf32>
    %206 = tpu.matmul %205, %3, %cst_81 {dimension_numbers = #tpu.dot_dimension_numbers<[1], [0], [0], [1], [0, 0, 1, 1], [], []>} : vector<8x16xbf16>, vector<16x128xbf16>, vector<8x128xf32> -> vector<8x128xf32>
    %207 = vector.extract_strided_slice %206 {offsets = [0, 0], sizes = [8, 16], strides = [1, 1]} : vector<8x128xf32> to vector<8x16xf32>
    %cst_82 = arith.constant 0.000000e+00 : f32
    %208 = vector.broadcast %cst_82 : f32 to vector<8x16xf32>
    %209 = arith.maximumf %207, %208 : vector<8x16xf32>
    %210 = tpu.concatenate %6, %209, %11 in 1 : vector<8x1xf32>, vector<8x16xf32>, vector<8x15xf32> -> vector<8x32xf32>
    %211 = arith.truncf %210 : vector<8x32xf32> to vector<8x32xbf16>
    %cst_83 = arith.constant dense<0.000000e+00> : vector<8x128xf32>
    %212 = tpu.matmul %211, %4, %cst_83 {dimension_numbers = #tpu.dot_dimension_numbers<[1], [0], [0], [1], [0, 0, 1, 1], [], []>} : vector<8x32xbf16>, vector<32x128xbf16>, vector<8x128xf32> -> vector<8x128xf32>
    %213 = vector.extract_strided_slice %212 {offsets = [0, 0], sizes = [8, 8], strides = [1, 1]} : vector<8x128xf32> to vector<8x8xf32>
    %214 = math.absf %213 : vector<8x8xf32>
    %cst_84 = arith.constant 0.000000e+00 : f32
    %215 = vector.broadcast %cst_84 : f32 to vector<8x8xf32>
    %216 = arith.subf %215, %214 : vector<8x8xf32>
    %217 = math.exp %216 : vector<8x8xf32>
    %cst_85 = arith.constant 0.000000e+00 : f32
    %218 = vector.broadcast %cst_85 : f32 to vector<8x8xf32>
    %219 = arith.cmpf oge, %213, %218 : vector<8x8xf32>
    %cst_86 = arith.constant 1.000000e+00 : f32
    %220 = vector.broadcast %cst_86 : f32 to vector<8x8xf32>
    %221 = arith.addf %220, %217 : vector<8x8xf32>
    %cst_87 = arith.constant 1.000000e+00 : f32
    %222 = vector.broadcast %cst_87 : f32 to vector<8x8xf32>
    %223 = arith.divf %222, %221 : vector<8x8xf32>
    %cst_88 = arith.constant 1.000000e+00 : f32
    %224 = vector.broadcast %cst_88 : f32 to vector<8x8xf32>
    %225 = arith.addf %224, %217 : vector<8x8xf32>
    %226 = arith.divf %217, %225 : vector<8x8xf32>
    %227 = arith.select %219, %223, %226 : vector<8x8xi1>, vector<8x8xf32>
    %228 = arith.mulf %227, %181 : vector<8x8xf32>
    %229 = tpu.concatenate %228, %12 in 1 : vector<8x8xf32>, vector<8x8xf32> -> vector<8x16xf32>
    %230 = arith.truncf %229 : vector<8x16xf32> to vector<8x16xbf16>
    %cst_89 = arith.constant dense<0.000000e+00> : vector<8x128xf32>
    %231 = tpu.matmul %230, %5, %cst_89 {dimension_numbers = #tpu.dot_dimension_numbers<[1], [0], [0], [1], [0, 0, 1, 1], [], []>} : vector<8x16xbf16>, vector<16x128xbf16>, vector<8x128xf32> -> vector<8x128xf32>
    %232 = vector.extract_strided_slice %231 {offsets = [0, 0], sizes = [8, 32], strides = [1, 1]} : vector<8x128xf32> to vector<8x32xf32>
    %233 = arith.addf %180, %232 : vector<8x32xf32>
    %234 = arith.subf %233, %159 : vector<8x32xf32>
    %cst_90 = arith.constant 0.333333343 : f32
    %235 = vector.broadcast %cst_90 : f32 to vector<8x32xf32>
    %236 = arith.mulf %235, %234 : vector<8x32xf32>
    %237 = arith.addf %159, %236 : vector<8x32xf32>
    %cst_91 = arith.constant 0.000000e+00 : f32
    %238 = vector.broadcast %cst_91 : f32 to vector<8x32xf32>
    %239 = arith.maximumf %237, %238 : vector<8x32xf32>
    %240 = math.absf %237 : vector<8x32xf32>
    %cst_92 = arith.constant 0.000000e+00 : f32
    %241 = vector.broadcast %cst_92 : f32 to vector<8x32xf32>
    %242 = arith.subf %241, %240 : vector<8x32xf32>
    %243 = math.exp %242 : vector<8x32xf32>
    %244 = math.log1p %243 : vector<8x32xf32>
    %245 = arith.addf %239, %244 : vector<8x32xf32>
    %246 = tpu.concatenate %237, %245, %227, %13 in 1 : vector<8x32xf32>, vector<8x32xf32>, vector<8x8xf32>, vector<8x56xf32> -> vector<8x128xf32>
    %c2_93 = arith.constant 2 : index
    %c0_94 = arith.constant 0 : index
    %c0_95 = arith.constant 0 : index
    %247 = vector.load %arg4[%c2_93, %c0_94, %c0_95] : memref<8x8x128xf32, #tpu.memory_space<vmem>>, vector<1x8x128xf32>
    %248 = vector.shape_cast %247 : vector<1x8x128xf32> to vector<8x128xf32>
    %249 = vector.shape_cast %246 : vector<8x128xf32> to vector<1x8x128xf32>
    tpu.vector_store %arg4[%c2_93, %c0_94, %c0_95], %249 {strides = array<i32>} : memref<8x8x128xf32, #tpu.memory_space<vmem>>, vector<1x8x128xf32>,
    %c3 = arith.constant 3 : index
    %c0_96 = arith.constant 0 : index
    %c0_97 = arith.constant 0 : index
    %250 = vector.load %arg2[%c3, %c0_96, %c0_97] : memref<8x8x8xf32, #tpu.memory_space<vmem>>, vector<1x8x8xf32>
    %251 = vector.shape_cast %250 : vector<1x8x8xf32> to vector<8x8xf32>
    %252 = tpu.concatenate %251, %245, %7 in 1 : vector<8x8xf32>, vector<8x32xf32>, vector<8x8xf32> -> vector<8x48xf32>
    %253 = arith.truncf %252 : vector<8x48xf32> to vector<8x48xbf16>
    %cst_98 = arith.constant dense<0.000000e+00> : vector<8x128xf32>
    %254 = tpu.matmul %253, %0, %cst_98 {dimension_numbers = #tpu.dot_dimension_numbers<[1], [0], [0], [1], [0, 0, 1, 1], [], []>} : vector<8x48xbf16>, vector<48x128xbf16>, vector<8x128xf32> -> vector<8x128xf32>
    %255 = vector.extract_strided_slice %254 {offsets = [0, 0], sizes = [8, 50], strides = [1, 1]} : vector<8x128xf32> to vector<8x50xf32>
    %cst_99 = arith.constant 0.000000e+00 : f32
    %256 = vector.broadcast %cst_99 : f32 to vector<8x50xf32>
    %257 = arith.maximumf %255, %256 : vector<8x50xf32>
    %258 = vector.extract_strided_slice %254 {offsets = [0, 50], sizes = [8, 32], strides = [1, 1]} : vector<8x128xf32> to vector<8x32xf32>
    %259 = vector.extract_strided_slice %254 {offsets = [0, 82], sizes = [8, 8], strides = [1, 1]} : vector<8x128xf32> to vector<8x8xf32>
    %260 = vector.extract_strided_slice %254 {offsets = [0, 90], sizes = [8, 25], strides = [1, 1]} : vector<8x128xf32> to vector<8x25xf32>
    %cst_100 = arith.constant 0.000000e+00 : f32
    %261 = vector.broadcast %cst_100 : f32 to vector<8x25xf32>
    %262 = arith.maximumf %260, %261 : vector<8x25xf32>
    %263 = tpu.concatenate %6, %262, %257, %8 in 1 : vector<8x1xf32>, vector<8x25xf32>, vector<8x50xf32>, vector<8x4xf32> -> vector<8x80xf32>
    %264 = arith.truncf %263 : vector<8x80xf32> to vector<8x80xbf16>
    %cst_101 = arith.constant dense<0.000000e+00> : vector<8x128xf32>
    %265 = tpu.matmul %264, %1, %cst_101 {dimension_numbers = #tpu.dot_dimension_numbers<[1], [0], [0], [1], [0, 0, 1, 1], [], []>} : vector<8x80xbf16>, vector<80x128xbf16>, vector<8x128xf32> -> vector<8x128xf32>
    %266 = vector.extract_strided_slice %265 {offsets = [0, 0], sizes = [8, 12], strides = [1, 1]} : vector<8x128xf32> to vector<8x12xf32>
    %cst_102 = arith.constant 0.000000e+00 : f32
    %267 = vector.broadcast %cst_102 : f32 to vector<8x12xf32>
    %268 = arith.maximumf %266, %267 : vector<8x12xf32>
    %269 = vector.extract_strided_slice %265 {offsets = [0, 12], sizes = [8, 25], strides = [1, 1]} : vector<8x128xf32> to vector<8x25xf32>
    %cst_103 = arith.constant 0.000000e+00 : f32
    %270 = vector.broadcast %cst_103 : f32 to vector<8x25xf32>
    %271 = arith.maximumf %269, %270 : vector<8x25xf32>
    %272 = tpu.concatenate %6, %268, %271, %9 in 1 : vector<8x1xf32>, vector<8x12xf32>, vector<8x25xf32>, vector<8x10xf32> -> vector<8x48xf32>
    %273 = arith.truncf %272 : vector<8x48xf32> to vector<8x48xbf16>
    %cst_104 = arith.constant dense<0.000000e+00> : vector<8x128xf32>
    %274 = tpu.matmul %273, %2, %cst_104 {dimension_numbers = #tpu.dot_dimension_numbers<[1], [0], [0], [1], [0, 0, 1, 1], [], []>} : vector<8x48xbf16>, vector<48x128xbf16>, vector<8x128xf32> -> vector<8x128xf32>
    %275 = vector.extract_strided_slice %274 {offsets = [0, 0], sizes = [8, 10], strides = [1, 1]} : vector<8x128xf32> to vector<8x10xf32>
    %cst_105 = arith.constant 0.000000e+00 : f32
    %276 = vector.broadcast %cst_105 : f32 to vector<8x10xf32>
    %277 = arith.maximumf %275, %276 : vector<8x10xf32>
    %278 = vector.extract_strided_slice %274 {offsets = [0, 10], sizes = [8, 10], strides = [1, 1]} : vector<8x128xf32> to vector<8x10xf32>
    %cst_106 = arith.constant 0.000000e+00 : f32
    %279 = vector.broadcast %cst_106 : f32 to vector<8x10xf32>
    %280 = arith.maximumf %278, %279 : vector<8x10xf32>
    %281 = arith.addf %277, %280 : vector<8x10xf32>
    %282 = tpu.concatenate %6, %281, %10 in 1 : vector<8x1xf32>, vector<8x10xf32>, vector<8x5xf32> -> vector<8x16xf32>
    %283 = arith.truncf %282 : vector<8x16xf32> to vector<8x16xbf16>
    %cst_107 = arith.constant dense<0.000000e+00> : vector<8x128xf32>
    %284 = tpu.matmul %283, %3, %cst_107 {dimension_numbers = #tpu.dot_dimension_numbers<[1], [0], [0], [1], [0, 0, 1, 1], [], []>} : vector<8x16xbf16>, vector<16x128xbf16>, vector<8x128xf32> -> vector<8x128xf32>
    %285 = vector.extract_strided_slice %284 {offsets = [0, 0], sizes = [8, 16], strides = [1, 1]} : vector<8x128xf32> to vector<8x16xf32>
    %cst_108 = arith.constant 0.000000e+00 : f32
    %286 = vector.broadcast %cst_108 : f32 to vector<8x16xf32>
    %287 = arith.maximumf %285, %286 : vector<8x16xf32>
    %288 = tpu.concatenate %6, %287, %11 in 1 : vector<8x1xf32>, vector<8x16xf32>, vector<8x15xf32> -> vector<8x32xf32>
    %289 = arith.truncf %288 : vector<8x32xf32> to vector<8x32xbf16>
    %cst_109 = arith.constant dense<0.000000e+00> : vector<8x128xf32>
    %290 = tpu.matmul %289, %4, %cst_109 {dimension_numbers = #tpu.dot_dimension_numbers<[1], [0], [0], [1], [0, 0, 1, 1], [], []>} : vector<8x32xbf16>, vector<32x128xbf16>, vector<8x128xf32> -> vector<8x128xf32>
    %291 = vector.extract_strided_slice %290 {offsets = [0, 0], sizes = [8, 8], strides = [1, 1]} : vector<8x128xf32> to vector<8x8xf32>
    %292 = math.absf %291 : vector<8x8xf32>
    %cst_110 = arith.constant 0.000000e+00 : f32
    %293 = vector.broadcast %cst_110 : f32 to vector<8x8xf32>
    %294 = arith.subf %293, %292 : vector<8x8xf32>
    %295 = math.exp %294 : vector<8x8xf32>
    %cst_111 = arith.constant 0.000000e+00 : f32
    %296 = vector.broadcast %cst_111 : f32 to vector<8x8xf32>
    %297 = arith.cmpf oge, %291, %296 : vector<8x8xf32>
    %cst_112 = arith.constant 1.000000e+00 : f32
    %298 = vector.broadcast %cst_112 : f32 to vector<8x8xf32>
    %299 = arith.addf %298, %295 : vector<8x8xf32>
    %cst_113 = arith.constant 1.000000e+00 : f32
    %300 = vector.broadcast %cst_113 : f32 to vector<8x8xf32>
    %301 = arith.divf %300, %299 : vector<8x8xf32>
    %cst_114 = arith.constant 1.000000e+00 : f32
    %302 = vector.broadcast %cst_114 : f32 to vector<8x8xf32>
    %303 = arith.addf %302, %295 : vector<8x8xf32>
    %304 = arith.divf %295, %303 : vector<8x8xf32>
    %305 = arith.select %297, %301, %304 : vector<8x8xi1>, vector<8x8xf32>
    %306 = arith.mulf %305, %259 : vector<8x8xf32>
    %307 = tpu.concatenate %306, %12 in 1 : vector<8x8xf32>, vector<8x8xf32> -> vector<8x16xf32>
    %308 = arith.truncf %307 : vector<8x16xf32> to vector<8x16xbf16>
    %cst_115 = arith.constant dense<0.000000e+00> : vector<8x128xf32>
    %309 = tpu.matmul %308, %5, %cst_115 {dimension_numbers = #tpu.dot_dimension_numbers<[1], [0], [0], [1], [0, 0, 1, 1], [], []>} : vector<8x16xbf16>, vector<16x128xbf16>, vector<8x128xf32> -> vector<8x128xf32>
    %310 = vector.extract_strided_slice %309 {offsets = [0, 0], sizes = [8, 32], strides = [1, 1]} : vector<8x128xf32> to vector<8x32xf32>
    %311 = arith.addf %258, %310 : vector<8x32xf32>
    %312 = arith.subf %311, %237 : vector<8x32xf32>
    %cst_116 = arith.constant 0.333333343 : f32
    %313 = vector.broadcast %cst_116 : f32 to vector<8x32xf32>
    %314 = arith.mulf %313, %312 : vector<8x32xf32>
    %315 = arith.addf %237, %314 : vector<8x32xf32>
    %cst_117 = arith.constant 0.000000e+00 : f32
    %316 = vector.broadcast %cst_117 : f32 to vector<8x32xf32>
    %317 = arith.maximumf %315, %316 : vector<8x32xf32>
    %318 = math.absf %315 : vector<8x32xf32>
    %cst_118 = arith.constant 0.000000e+00 : f32
    %319 = vector.broadcast %cst_118 : f32 to vector<8x32xf32>
    %320 = arith.subf %319, %318 : vector<8x32xf32>
    %321 = math.exp %320 : vector<8x32xf32>
    %322 = math.log1p %321 : vector<8x32xf32>
    %323 = arith.addf %317, %322 : vector<8x32xf32>
    %324 = tpu.concatenate %315, %323, %305, %13 in 1 : vector<8x32xf32>, vector<8x32xf32>, vector<8x8xf32>, vector<8x56xf32> -> vector<8x128xf32>
    %c3_119 = arith.constant 3 : index
    %c0_120 = arith.constant 0 : index
    %c0_121 = arith.constant 0 : index
    %325 = vector.load %arg4[%c3_119, %c0_120, %c0_121] : memref<8x8x128xf32, #tpu.memory_space<vmem>>, vector<1x8x128xf32>
    %326 = vector.shape_cast %325 : vector<1x8x128xf32> to vector<8x128xf32>
    %327 = vector.shape_cast %324 : vector<8x128xf32> to vector<1x8x128xf32>
    tpu.vector_store %arg4[%c3_119, %c0_120, %c0_121], %327 {strides = array<i32>} : memref<8x8x128xf32, #tpu.memory_space<vmem>>, vector<1x8x128xf32>,
    %c4 = arith.constant 4 : index
    %c0_122 = arith.constant 0 : index
    %c0_123 = arith.constant 0 : index
    %328 = vector.load %arg2[%c4, %c0_122, %c0_123] : memref<8x8x8xf32, #tpu.memory_space<vmem>>, vector<1x8x8xf32>
    %329 = vector.shape_cast %328 : vector<1x8x8xf32> to vector<8x8xf32>
    %330 = tpu.concatenate %329, %323, %7 in 1 : vector<8x8xf32>, vector<8x32xf32>, vector<8x8xf32> -> vector<8x48xf32>
    %331 = arith.truncf %330 : vector<8x48xf32> to vector<8x48xbf16>
    %cst_124 = arith.constant dense<0.000000e+00> : vector<8x128xf32>
    %332 = tpu.matmul %331, %0, %cst_124 {dimension_numbers = #tpu.dot_dimension_numbers<[1], [0], [0], [1], [0, 0, 1, 1], [], []>} : vector<8x48xbf16>, vector<48x128xbf16>, vector<8x128xf32> -> vector<8x128xf32>
    %333 = vector.extract_strided_slice %332 {offsets = [0, 0], sizes = [8, 50], strides = [1, 1]} : vector<8x128xf32> to vector<8x50xf32>
    %cst_125 = arith.constant 0.000000e+00 : f32
    %334 = vector.broadcast %cst_125 : f32 to vector<8x50xf32>
    %335 = arith.maximumf %333, %334 : vector<8x50xf32>
    %336 = vector.extract_strided_slice %332 {offsets = [0, 50], sizes = [8, 32], strides = [1, 1]} : vector<8x128xf32> to vector<8x32xf32>
    %337 = vector.extract_strided_slice %332 {offsets = [0, 82], sizes = [8, 8], strides = [1, 1]} : vector<8x128xf32> to vector<8x8xf32>
    %338 = vector.extract_strided_slice %332 {offsets = [0, 90], sizes = [8, 25], strides = [1, 1]} : vector<8x128xf32> to vector<8x25xf32>
    %cst_126 = arith.constant 0.000000e+00 : f32
    %339 = vector.broadcast %cst_126 : f32 to vector<8x25xf32>
    %340 = arith.maximumf %338, %339 : vector<8x25xf32>
    %341 = tpu.concatenate %6, %340, %335, %8 in 1 : vector<8x1xf32>, vector<8x25xf32>, vector<8x50xf32>, vector<8x4xf32> -> vector<8x80xf32>
    %342 = arith.truncf %341 : vector<8x80xf32> to vector<8x80xbf16>
    %cst_127 = arith.constant dense<0.000000e+00> : vector<8x128xf32>
    %343 = tpu.matmul %342, %1, %cst_127 {dimension_numbers = #tpu.dot_dimension_numbers<[1], [0], [0], [1], [0, 0, 1, 1], [], []>} : vector<8x80xbf16>, vector<80x128xbf16>, vector<8x128xf32> -> vector<8x128xf32>
    %344 = vector.extract_strided_slice %343 {offsets = [0, 0], sizes = [8, 12], strides = [1, 1]} : vector<8x128xf32> to vector<8x12xf32>
    %cst_128 = arith.constant 0.000000e+00 : f32
    %345 = vector.broadcast %cst_128 : f32 to vector<8x12xf32>
    %346 = arith.maximumf %344, %345 : vector<8x12xf32>
    %347 = vector.extract_strided_slice %343 {offsets = [0, 12], sizes = [8, 25], strides = [1, 1]} : vector<8x128xf32> to vector<8x25xf32>
    %cst_129 = arith.constant 0.000000e+00 : f32
    %348 = vector.broadcast %cst_129 : f32 to vector<8x25xf32>
    %349 = arith.maximumf %347, %348 : vector<8x25xf32>
    %350 = tpu.concatenate %6, %346, %349, %9 in 1 : vector<8x1xf32>, vector<8x12xf32>, vector<8x25xf32>, vector<8x10xf32> -> vector<8x48xf32>
    %351 = arith.truncf %350 : vector<8x48xf32> to vector<8x48xbf16>
    %cst_130 = arith.constant dense<0.000000e+00> : vector<8x128xf32>
    %352 = tpu.matmul %351, %2, %cst_130 {dimension_numbers = #tpu.dot_dimension_numbers<[1], [0], [0], [1], [0, 0, 1, 1], [], []>} : vector<8x48xbf16>, vector<48x128xbf16>, vector<8x128xf32> -> vector<8x128xf32>
    %353 = vector.extract_strided_slice %352 {offsets = [0, 0], sizes = [8, 10], strides = [1, 1]} : vector<8x128xf32> to vector<8x10xf32>
    %cst_131 = arith.constant 0.000000e+00 : f32
    %354 = vector.broadcast %cst_131 : f32 to vector<8x10xf32>
    %355 = arith.maximumf %353, %354 : vector<8x10xf32>
    %356 = vector.extract_strided_slice %352 {offsets = [0, 10], sizes = [8, 10], strides = [1, 1]} : vector<8x128xf32> to vector<8x10xf32>
    %cst_132 = arith.constant 0.000000e+00 : f32
    %357 = vector.broadcast %cst_132 : f32 to vector<8x10xf32>
    %358 = arith.maximumf %356, %357 : vector<8x10xf32>
    %359 = arith.addf %355, %358 : vector<8x10xf32>
    %360 = tpu.concatenate %6, %359, %10 in 1 : vector<8x1xf32>, vector<8x10xf32>, vector<8x5xf32> -> vector<8x16xf32>
    %361 = arith.truncf %360 : vector<8x16xf32> to vector<8x16xbf16>
    %cst_133 = arith.constant dense<0.000000e+00> : vector<8x128xf32>
    %362 = tpu.matmul %361, %3, %cst_133 {dimension_numbers = #tpu.dot_dimension_numbers<[1], [0], [0], [1], [0, 0, 1, 1], [], []>} : vector<8x16xbf16>, vector<16x128xbf16>, vector<8x128xf32> -> vector<8x128xf32>
    %363 = vector.extract_strided_slice %362 {offsets = [0, 0], sizes = [8, 16], strides = [1, 1]} : vector<8x128xf32> to vector<8x16xf32>
    %cst_134 = arith.constant 0.000000e+00 : f32
    %364 = vector.broadcast %cst_134 : f32 to vector<8x16xf32>
    %365 = arith.maximumf %363, %364 : vector<8x16xf32>
    %366 = tpu.concatenate %6, %365, %11 in 1 : vector<8x1xf32>, vector<8x16xf32>, vector<8x15xf32> -> vector<8x32xf32>
    %367 = arith.truncf %366 : vector<8x32xf32> to vector<8x32xbf16>
    %cst_135 = arith.constant dense<0.000000e+00> : vector<8x128xf32>
    %368 = tpu.matmul %367, %4, %cst_135 {dimension_numbers = #tpu.dot_dimension_numbers<[1], [0], [0], [1], [0, 0, 1, 1], [], []>} : vector<8x32xbf16>, vector<32x128xbf16>, vector<8x128xf32> -> vector<8x128xf32>
    %369 = vector.extract_strided_slice %368 {offsets = [0, 0], sizes = [8, 8], strides = [1, 1]} : vector<8x128xf32> to vector<8x8xf32>
    %370 = math.absf %369 : vector<8x8xf32>
    %cst_136 = arith.constant 0.000000e+00 : f32
    %371 = vector.broadcast %cst_136 : f32 to vector<8x8xf32>
    %372 = arith.subf %371, %370 : vector<8x8xf32>
    %373 = math.exp %372 : vector<8x8xf32>
    %cst_137 = arith.constant 0.000000e+00 : f32
    %374 = vector.broadcast %cst_137 : f32 to vector<8x8xf32>
    %375 = arith.cmpf oge, %369, %374 : vector<8x8xf32>
    %cst_138 = arith.constant 1.000000e+00 : f32
    %376 = vector.broadcast %cst_138 : f32 to vector<8x8xf32>
    %377 = arith.addf %376, %373 : vector<8x8xf32>
    %cst_139 = arith.constant 1.000000e+00 : f32
    %378 = vector.broadcast %cst_139 : f32 to vector<8x8xf32>
    %379 = arith.divf %378, %377 : vector<8x8xf32>
    %cst_140 = arith.constant 1.000000e+00 : f32
    %380 = vector.broadcast %cst_140 : f32 to vector<8x8xf32>
    %381 = arith.addf %380, %373 : vector<8x8xf32>
    %382 = arith.divf %373, %381 : vector<8x8xf32>
    %383 = arith.select %375, %379, %382 : vector<8x8xi1>, vector<8x8xf32>
    %384 = arith.mulf %383, %337 : vector<8x8xf32>
    %385 = tpu.concatenate %384, %12 in 1 : vector<8x8xf32>, vector<8x8xf32> -> vector<8x16xf32>
    %386 = arith.truncf %385 : vector<8x16xf32> to vector<8x16xbf16>
    %cst_141 = arith.constant dense<0.000000e+00> : vector<8x128xf32>
    %387 = tpu.matmul %386, %5, %cst_141 {dimension_numbers = #tpu.dot_dimension_numbers<[1], [0], [0], [1], [0, 0, 1, 1], [], []>} : vector<8x16xbf16>, vector<16x128xbf16>, vector<8x128xf32> -> vector<8x128xf32>
    %388 = vector.extract_strided_slice %387 {offsets = [0, 0], sizes = [8, 32], strides = [1, 1]} : vector<8x128xf32> to vector<8x32xf32>
    %389 = arith.addf %336, %388 : vector<8x32xf32>
    %390 = arith.subf %389, %315 : vector<8x32xf32>
    %cst_142 = arith.constant 0.333333343 : f32
    %391 = vector.broadcast %cst_142 : f32 to vector<8x32xf32>
    %392 = arith.mulf %391, %390 : vector<8x32xf32>
    %393 = arith.addf %315, %392 : vector<8x32xf32>
    %cst_143 = arith.constant 0.000000e+00 : f32
    %394 = vector.broadcast %cst_143 : f32 to vector<8x32xf32>
    %395 = arith.maximumf %393, %394 : vector<8x32xf32>
    %396 = math.absf %393 : vector<8x32xf32>
    %cst_144 = arith.constant 0.000000e+00 : f32
    %397 = vector.broadcast %cst_144 : f32 to vector<8x32xf32>
    %398 = arith.subf %397, %396 : vector<8x32xf32>
    %399 = math.exp %398 : vector<8x32xf32>
    %400 = math.log1p %399 : vector<8x32xf32>
    %401 = arith.addf %395, %400 : vector<8x32xf32>
    %402 = tpu.concatenate %393, %401, %383, %13 in 1 : vector<8x32xf32>, vector<8x32xf32>, vector<8x8xf32>, vector<8x56xf32> -> vector<8x128xf32>
    %c4_145 = arith.constant 4 : index
    %c0_146 = arith.constant 0 : index
    %c0_147 = arith.constant 0 : index
    %403 = vector.load %arg4[%c4_145, %c0_146, %c0_147] : memref<8x8x128xf32, #tpu.memory_space<vmem>>, vector<1x8x128xf32>
    %404 = vector.shape_cast %403 : vector<1x8x128xf32> to vector<8x128xf32>
    %405 = vector.shape_cast %402 : vector<8x128xf32> to vector<1x8x128xf32>
    tpu.vector_store %arg4[%c4_145, %c0_146, %c0_147], %405 {strides = array<i32>} : memref<8x8x128xf32, #tpu.memory_space<vmem>>, vector<1x8x128xf32>,
    %c5 = arith.constant 5 : index
    %c0_148 = arith.constant 0 : index
    %c0_149 = arith.constant 0 : index
    %406 = vector.load %arg2[%c5, %c0_148, %c0_149] : memref<8x8x8xf32, #tpu.memory_space<vmem>>, vector<1x8x8xf32>
    %407 = vector.shape_cast %406 : vector<1x8x8xf32> to vector<8x8xf32>
    %408 = tpu.concatenate %407, %401, %7 in 1 : vector<8x8xf32>, vector<8x32xf32>, vector<8x8xf32> -> vector<8x48xf32>
    %409 = arith.truncf %408 : vector<8x48xf32> to vector<8x48xbf16>
    %cst_150 = arith.constant dense<0.000000e+00> : vector<8x128xf32>
    %410 = tpu.matmul %409, %0, %cst_150 {dimension_numbers = #tpu.dot_dimension_numbers<[1], [0], [0], [1], [0, 0, 1, 1], [], []>} : vector<8x48xbf16>, vector<48x128xbf16>, vector<8x128xf32> -> vector<8x128xf32>
    %411 = vector.extract_strided_slice %410 {offsets = [0, 0], sizes = [8, 50], strides = [1, 1]} : vector<8x128xf32> to vector<8x50xf32>
    %cst_151 = arith.constant 0.000000e+00 : f32
    %412 = vector.broadcast %cst_151 : f32 to vector<8x50xf32>
    %413 = arith.maximumf %411, %412 : vector<8x50xf32>
    %414 = vector.extract_strided_slice %410 {offsets = [0, 50], sizes = [8, 32], strides = [1, 1]} : vector<8x128xf32> to vector<8x32xf32>
    %415 = vector.extract_strided_slice %410 {offsets = [0, 82], sizes = [8, 8], strides = [1, 1]} : vector<8x128xf32> to vector<8x8xf32>
    %416 = vector.extract_strided_slice %410 {offsets = [0, 90], sizes = [8, 25], strides = [1, 1]} : vector<8x128xf32> to vector<8x25xf32>
    %cst_152 = arith.constant 0.000000e+00 : f32
    %417 = vector.broadcast %cst_152 : f32 to vector<8x25xf32>
    %418 = arith.maximumf %416, %417 : vector<8x25xf32>
    %419 = tpu.concatenate %6, %418, %413, %8 in 1 : vector<8x1xf32>, vector<8x25xf32>, vector<8x50xf32>, vector<8x4xf32> -> vector<8x80xf32>
    %420 = arith.truncf %419 : vector<8x80xf32> to vector<8x80xbf16>
    %cst_153 = arith.constant dense<0.000000e+00> : vector<8x128xf32>
    %421 = tpu.matmul %420, %1, %cst_153 {dimension_numbers = #tpu.dot_dimension_numbers<[1], [0], [0], [1], [0, 0, 1, 1], [], []>} : vector<8x80xbf16>, vector<80x128xbf16>, vector<8x128xf32> -> vector<8x128xf32>
    %422 = vector.extract_strided_slice %421 {offsets = [0, 0], sizes = [8, 12], strides = [1, 1]} : vector<8x128xf32> to vector<8x12xf32>
    %cst_154 = arith.constant 0.000000e+00 : f32
    %423 = vector.broadcast %cst_154 : f32 to vector<8x12xf32>
    %424 = arith.maximumf %422, %423 : vector<8x12xf32>
    %425 = vector.extract_strided_slice %421 {offsets = [0, 12], sizes = [8, 25], strides = [1, 1]} : vector<8x128xf32> to vector<8x25xf32>
    %cst_155 = arith.constant 0.000000e+00 : f32
    %426 = vector.broadcast %cst_155 : f32 to vector<8x25xf32>
    %427 = arith.maximumf %425, %426 : vector<8x25xf32>
    %428 = tpu.concatenate %6, %424, %427, %9 in 1 : vector<8x1xf32>, vector<8x12xf32>, vector<8x25xf32>, vector<8x10xf32> -> vector<8x48xf32>
    %429 = arith.truncf %428 : vector<8x48xf32> to vector<8x48xbf16>
    %cst_156 = arith.constant dense<0.000000e+00> : vector<8x128xf32>
    %430 = tpu.matmul %429, %2, %cst_156 {dimension_numbers = #tpu.dot_dimension_numbers<[1], [0], [0], [1], [0, 0, 1, 1], [], []>} : vector<8x48xbf16>, vector<48x128xbf16>, vector<8x128xf32> -> vector<8x128xf32>
    %431 = vector.extract_strided_slice %430 {offsets = [0, 0], sizes = [8, 10], strides = [1, 1]} : vector<8x128xf32> to vector<8x10xf32>
    %cst_157 = arith.constant 0.000000e+00 : f32
    %432 = vector.broadcast %cst_157 : f32 to vector<8x10xf32>
    %433 = arith.maximumf %431, %432 : vector<8x10xf32>
    %434 = vector.extract_strided_slice %430 {offsets = [0, 10], sizes = [8, 10], strides = [1, 1]} : vector<8x128xf32> to vector<8x10xf32>
    %cst_158 = arith.constant 0.000000e+00 : f32
    %435 = vector.broadcast %cst_158 : f32 to vector<8x10xf32>
    %436 = arith.maximumf %434, %435 : vector<8x10xf32>
    %437 = arith.addf %433, %436 : vector<8x10xf32>
    %438 = tpu.concatenate %6, %437, %10 in 1 : vector<8x1xf32>, vector<8x10xf32>, vector<8x5xf32> -> vector<8x16xf32>
    %439 = arith.truncf %438 : vector<8x16xf32> to vector<8x16xbf16>
    %cst_159 = arith.constant dense<0.000000e+00> : vector<8x128xf32>
    %440 = tpu.matmul %439, %3, %cst_159 {dimension_numbers = #tpu.dot_dimension_numbers<[1], [0], [0], [1], [0, 0, 1, 1], [], []>} : vector<8x16xbf16>, vector<16x128xbf16>, vector<8x128xf32> -> vector<8x128xf32>
    %441 = vector.extract_strided_slice %440 {offsets = [0, 0], sizes = [8, 16], strides = [1, 1]} : vector<8x128xf32> to vector<8x16xf32>
    %cst_160 = arith.constant 0.000000e+00 : f32
    %442 = vector.broadcast %cst_160 : f32 to vector<8x16xf32>
    %443 = arith.maximumf %441, %442 : vector<8x16xf32>
    %444 = tpu.concatenate %6, %443, %11 in 1 : vector<8x1xf32>, vector<8x16xf32>, vector<8x15xf32> -> vector<8x32xf32>
    %445 = arith.truncf %444 : vector<8x32xf32> to vector<8x32xbf16>
    %cst_161 = arith.constant dense<0.000000e+00> : vector<8x128xf32>
    %446 = tpu.matmul %445, %4, %cst_161 {dimension_numbers = #tpu.dot_dimension_numbers<[1], [0], [0], [1], [0, 0, 1, 1], [], []>} : vector<8x32xbf16>, vector<32x128xbf16>, vector<8x128xf32> -> vector<8x128xf32>
    %447 = vector.extract_strided_slice %446 {offsets = [0, 0], sizes = [8, 8], strides = [1, 1]} : vector<8x128xf32> to vector<8x8xf32>
    %448 = math.absf %447 : vector<8x8xf32>
    %cst_162 = arith.constant 0.000000e+00 : f32
    %449 = vector.broadcast %cst_162 : f32 to vector<8x8xf32>
    %450 = arith.subf %449, %448 : vector<8x8xf32>
    %451 = math.exp %450 : vector<8x8xf32>
    %cst_163 = arith.constant 0.000000e+00 : f32
    %452 = vector.broadcast %cst_163 : f32 to vector<8x8xf32>
    %453 = arith.cmpf oge, %447, %452 : vector<8x8xf32>
    %cst_164 = arith.constant 1.000000e+00 : f32
    %454 = vector.broadcast %cst_164 : f32 to vector<8x8xf32>
    %455 = arith.addf %454, %451 : vector<8x8xf32>
    %cst_165 = arith.constant 1.000000e+00 : f32
    %456 = vector.broadcast %cst_165 : f32 to vector<8x8xf32>
    %457 = arith.divf %456, %455 : vector<8x8xf32>
    %cst_166 = arith.constant 1.000000e+00 : f32
    %458 = vector.broadcast %cst_166 : f32 to vector<8x8xf32>
    %459 = arith.addf %458, %451 : vector<8x8xf32>
    %460 = arith.divf %451, %459 : vector<8x8xf32>
    %461 = arith.select %453, %457, %460 : vector<8x8xi1>, vector<8x8xf32>
    %462 = arith.mulf %461, %415 : vector<8x8xf32>
    %463 = tpu.concatenate %462, %12 in 1 : vector<8x8xf32>, vector<8x8xf32> -> vector<8x16xf32>
    %464 = arith.truncf %463 : vector<8x16xf32> to vector<8x16xbf16>
    %cst_167 = arith.constant dense<0.000000e+00> : vector<8x128xf32>
    %465 = tpu.matmul %464, %5, %cst_167 {dimension_numbers = #tpu.dot_dimension_numbers<[1], [0], [0], [1], [0, 0, 1, 1], [], []>} : vector<8x16xbf16>, vector<16x128xbf16>, vector<8x128xf32> -> vector<8x128xf32>
    %466 = vector.extract_strided_slice %465 {offsets = [0, 0], sizes = [8, 32], strides = [1, 1]} : vector<8x128xf32> to vector<8x32xf32>
    %467 = arith.addf %414, %466 : vector<8x32xf32>
    %468 = arith.subf %467, %393 : vector<8x32xf32>
    %cst_168 = arith.constant 0.333333343 : f32
    %469 = vector.broadcast %cst_168 : f32 to vector<8x32xf32>
    %470 = arith.mulf %469, %468 : vector<8x32xf32>
    %471 = arith.addf %393, %470 : vector<8x32xf32>
    %cst_169 = arith.constant 0.000000e+00 : f32
    %472 = vector.broadcast %cst_169 : f32 to vector<8x32xf32>
    %473 = arith.maximumf %471, %472 : vector<8x32xf32>
    %474 = math.absf %471 : vector<8x32xf32>
    %cst_170 = arith.constant 0.000000e+00 : f32
    %475 = vector.broadcast %cst_170 : f32 to vector<8x32xf32>
    %476 = arith.subf %475, %474 : vector<8x32xf32>
    %477 = math.exp %476 : vector<8x32xf32>
    %478 = math.log1p %477 : vector<8x32xf32>
    %479 = arith.addf %473, %478 : vector<8x32xf32>
    %480 = tpu.concatenate %471, %479, %461, %13 in 1 : vector<8x32xf32>, vector<8x32xf32>, vector<8x8xf32>, vector<8x56xf32> -> vector<8x128xf32>
    %c5_171 = arith.constant 5 : index
    %c0_172 = arith.constant 0 : index
    %c0_173 = arith.constant 0 : index
    %481 = vector.load %arg4[%c5_171, %c0_172, %c0_173] : memref<8x8x128xf32, #tpu.memory_space<vmem>>, vector<1x8x128xf32>
    %482 = vector.shape_cast %481 : vector<1x8x128xf32> to vector<8x128xf32>
    %483 = vector.shape_cast %480 : vector<8x128xf32> to vector<1x8x128xf32>
    tpu.vector_store %arg4[%c5_171, %c0_172, %c0_173], %483 {strides = array<i32>} : memref<8x8x128xf32, #tpu.memory_space<vmem>>, vector<1x8x128xf32>,
    %c6 = arith.constant 6 : index
    %c0_174 = arith.constant 0 : index
    %c0_175 = arith.constant 0 : index
    %484 = vector.load %arg2[%c6, %c0_174, %c0_175] : memref<8x8x8xf32, #tpu.memory_space<vmem>>, vector<1x8x8xf32>
    %485 = vector.shape_cast %484 : vector<1x8x8xf32> to vector<8x8xf32>
    %486 = tpu.concatenate %485, %479, %7 in 1 : vector<8x8xf32>, vector<8x32xf32>, vector<8x8xf32> -> vector<8x48xf32>
    %487 = arith.truncf %486 : vector<8x48xf32> to vector<8x48xbf16>
    %cst_176 = arith.constant dense<0.000000e+00> : vector<8x128xf32>
    %488 = tpu.matmul %487, %0, %cst_176 {dimension_numbers = #tpu.dot_dimension_numbers<[1], [0], [0], [1], [0, 0, 1, 1], [], []>} : vector<8x48xbf16>, vector<48x128xbf16>, vector<8x128xf32> -> vector<8x128xf32>
    %489 = vector.extract_strided_slice %488 {offsets = [0, 0], sizes = [8, 50], strides = [1, 1]} : vector<8x128xf32> to vector<8x50xf32>
    %cst_177 = arith.constant 0.000000e+00 : f32
    %490 = vector.broadcast %cst_177 : f32 to vector<8x50xf32>
    %491 = arith.maximumf %489, %490 : vector<8x50xf32>
    %492 = vector.extract_strided_slice %488 {offsets = [0, 50], sizes = [8, 32], strides = [1, 1]} : vector<8x128xf32> to vector<8x32xf32>
    %493 = vector.extract_strided_slice %488 {offsets = [0, 82], sizes = [8, 8], strides = [1, 1]} : vector<8x128xf32> to vector<8x8xf32>
    %494 = vector.extract_strided_slice %488 {offsets = [0, 90], sizes = [8, 25], strides = [1, 1]} : vector<8x128xf32> to vector<8x25xf32>
    %cst_178 = arith.constant 0.000000e+00 : f32
    %495 = vector.broadcast %cst_178 : f32 to vector<8x25xf32>
    %496 = arith.maximumf %494, %495 : vector<8x25xf32>
    %497 = tpu.concatenate %6, %496, %491, %8 in 1 : vector<8x1xf32>, vector<8x25xf32>, vector<8x50xf32>, vector<8x4xf32> -> vector<8x80xf32>
    %498 = arith.truncf %497 : vector<8x80xf32> to vector<8x80xbf16>
    %cst_179 = arith.constant dense<0.000000e+00> : vector<8x128xf32>
    %499 = tpu.matmul %498, %1, %cst_179 {dimension_numbers = #tpu.dot_dimension_numbers<[1], [0], [0], [1], [0, 0, 1, 1], [], []>} : vector<8x80xbf16>, vector<80x128xbf16>, vector<8x128xf32> -> vector<8x128xf32>
    %500 = vector.extract_strided_slice %499 {offsets = [0, 0], sizes = [8, 12], strides = [1, 1]} : vector<8x128xf32> to vector<8x12xf32>
    %cst_180 = arith.constant 0.000000e+00 : f32
    %501 = vector.broadcast %cst_180 : f32 to vector<8x12xf32>
    %502 = arith.maximumf %500, %501 : vector<8x12xf32>
    %503 = vector.extract_strided_slice %499 {offsets = [0, 12], sizes = [8, 25], strides = [1, 1]} : vector<8x128xf32> to vector<8x25xf32>
    %cst_181 = arith.constant 0.000000e+00 : f32
    %504 = vector.broadcast %cst_181 : f32 to vector<8x25xf32>
    %505 = arith.maximumf %503, %504 : vector<8x25xf32>
    %506 = tpu.concatenate %6, %502, %505, %9 in 1 : vector<8x1xf32>, vector<8x12xf32>, vector<8x25xf32>, vector<8x10xf32> -> vector<8x48xf32>
    %507 = arith.truncf %506 : vector<8x48xf32> to vector<8x48xbf16>
    %cst_182 = arith.constant dense<0.000000e+00> : vector<8x128xf32>
    %508 = tpu.matmul %507, %2, %cst_182 {dimension_numbers = #tpu.dot_dimension_numbers<[1], [0], [0], [1], [0, 0, 1, 1], [], []>} : vector<8x48xbf16>, vector<48x128xbf16>, vector<8x128xf32> -> vector<8x128xf32>
    %509 = vector.extract_strided_slice %508 {offsets = [0, 0], sizes = [8, 10], strides = [1, 1]} : vector<8x128xf32> to vector<8x10xf32>
    %cst_183 = arith.constant 0.000000e+00 : f32
    %510 = vector.broadcast %cst_183 : f32 to vector<8x10xf32>
    %511 = arith.maximumf %509, %510 : vector<8x10xf32>
    %512 = vector.extract_strided_slice %508 {offsets = [0, 10], sizes = [8, 10], strides = [1, 1]} : vector<8x128xf32> to vector<8x10xf32>
    %cst_184 = arith.constant 0.000000e+00 : f32
    %513 = vector.broadcast %cst_184 : f32 to vector<8x10xf32>
    %514 = arith.maximumf %512, %513 : vector<8x10xf32>
    %515 = arith.addf %511, %514 : vector<8x10xf32>
    %516 = tpu.concatenate %6, %515, %10 in 1 : vector<8x1xf32>, vector<8x10xf32>, vector<8x5xf32> -> vector<8x16xf32>
    %517 = arith.truncf %516 : vector<8x16xf32> to vector<8x16xbf16>
    %cst_185 = arith.constant dense<0.000000e+00> : vector<8x128xf32>
    %518 = tpu.matmul %517, %3, %cst_185 {dimension_numbers = #tpu.dot_dimension_numbers<[1], [0], [0], [1], [0, 0, 1, 1], [], []>} : vector<8x16xbf16>, vector<16x128xbf16>, vector<8x128xf32> -> vector<8x128xf32>
    %519 = vector.extract_strided_slice %518 {offsets = [0, 0], sizes = [8, 16], strides = [1, 1]} : vector<8x128xf32> to vector<8x16xf32>
    %cst_186 = arith.constant 0.000000e+00 : f32
    %520 = vector.broadcast %cst_186 : f32 to vector<8x16xf32>
    %521 = arith.maximumf %519, %520 : vector<8x16xf32>
    %522 = tpu.concatenate %6, %521, %11 in 1 : vector<8x1xf32>, vector<8x16xf32>, vector<8x15xf32> -> vector<8x32xf32>
    %523 = arith.truncf %522 : vector<8x32xf32> to vector<8x32xbf16>
    %cst_187 = arith.constant dense<0.000000e+00> : vector<8x128xf32>
    %524 = tpu.matmul %523, %4, %cst_187 {dimension_numbers = #tpu.dot_dimension_numbers<[1], [0], [0], [1], [0, 0, 1, 1], [], []>} : vector<8x32xbf16>, vector<32x128xbf16>, vector<8x128xf32> -> vector<8x128xf32>
    %525 = vector.extract_strided_slice %524 {offsets = [0, 0], sizes = [8, 8], strides = [1, 1]} : vector<8x128xf32> to vector<8x8xf32>
    %526 = math.absf %525 : vector<8x8xf32>
    %cst_188 = arith.constant 0.000000e+00 : f32
    %527 = vector.broadcast %cst_188 : f32 to vector<8x8xf32>
    %528 = arith.subf %527, %526 : vector<8x8xf32>
    %529 = math.exp %528 : vector<8x8xf32>
    %cst_189 = arith.constant 0.000000e+00 : f32
    %530 = vector.broadcast %cst_189 : f32 to vector<8x8xf32>
    %531 = arith.cmpf oge, %525, %530 : vector<8x8xf32>
    %cst_190 = arith.constant 1.000000e+00 : f32
    %532 = vector.broadcast %cst_190 : f32 to vector<8x8xf32>
    %533 = arith.addf %532, %529 : vector<8x8xf32>
    %cst_191 = arith.constant 1.000000e+00 : f32
    %534 = vector.broadcast %cst_191 : f32 to vector<8x8xf32>
    %535 = arith.divf %534, %533 : vector<8x8xf32>
    %cst_192 = arith.constant 1.000000e+00 : f32
    %536 = vector.broadcast %cst_192 : f32 to vector<8x8xf32>
    %537 = arith.addf %536, %529 : vector<8x8xf32>
    %538 = arith.divf %529, %537 : vector<8x8xf32>
    %539 = arith.select %531, %535, %538 : vector<8x8xi1>, vector<8x8xf32>
    %540 = arith.mulf %539, %493 : vector<8x8xf32>
    %541 = tpu.concatenate %540, %12 in 1 : vector<8x8xf32>, vector<8x8xf32> -> vector<8x16xf32>
    %542 = arith.truncf %541 : vector<8x16xf32> to vector<8x16xbf16>
    %cst_193 = arith.constant dense<0.000000e+00> : vector<8x128xf32>
    %543 = tpu.matmul %542, %5, %cst_193 {dimension_numbers = #tpu.dot_dimension_numbers<[1], [0], [0], [1], [0, 0, 1, 1], [], []>} : vector<8x16xbf16>, vector<16x128xbf16>, vector<8x128xf32> -> vector<8x128xf32>
    %544 = vector.extract_strided_slice %543 {offsets = [0, 0], sizes = [8, 32], strides = [1, 1]} : vector<8x128xf32> to vector<8x32xf32>
    %545 = arith.addf %492, %544 : vector<8x32xf32>
    %546 = arith.subf %545, %471 : vector<8x32xf32>
    %cst_194 = arith.constant 0.333333343 : f32
    %547 = vector.broadcast %cst_194 : f32 to vector<8x32xf32>
    %548 = arith.mulf %547, %546 : vector<8x32xf32>
    %549 = arith.addf %471, %548 : vector<8x32xf32>
    %cst_195 = arith.constant 0.000000e+00 : f32
    %550 = vector.broadcast %cst_195 : f32 to vector<8x32xf32>
    %551 = arith.maximumf %549, %550 : vector<8x32xf32>
    %552 = math.absf %549 : vector<8x32xf32>
    %cst_196 = arith.constant 0.000000e+00 : f32
    %553 = vector.broadcast %cst_196 : f32 to vector<8x32xf32>
    %554 = arith.subf %553, %552 : vector<8x32xf32>
    %555 = math.exp %554 : vector<8x32xf32>
    %556 = math.log1p %555 : vector<8x32xf32>
    %557 = arith.addf %551, %556 : vector<8x32xf32>
    %558 = tpu.concatenate %549, %557, %539, %13 in 1 : vector<8x32xf32>, vector<8x32xf32>, vector<8x8xf32>, vector<8x56xf32> -> vector<8x128xf32>
    %c6_197 = arith.constant 6 : index
    %c0_198 = arith.constant 0 : index
    %c0_199 = arith.constant 0 : index
    %559 = vector.load %arg4[%c6_197, %c0_198, %c0_199] : memref<8x8x128xf32, #tpu.memory_space<vmem>>, vector<1x8x128xf32>
    %560 = vector.shape_cast %559 : vector<1x8x128xf32> to vector<8x128xf32>
    %561 = vector.shape_cast %558 : vector<8x128xf32> to vector<1x8x128xf32>
    tpu.vector_store %arg4[%c6_197, %c0_198, %c0_199], %561 {strides = array<i32>} : memref<8x8x128xf32, #tpu.memory_space<vmem>>, vector<1x8x128xf32>,
    %c7 = arith.constant 7 : index
    %c0_200 = arith.constant 0 : index
    %c0_201 = arith.constant 0 : index
    %562 = vector.load %arg2[%c7, %c0_200, %c0_201] : memref<8x8x8xf32, #tpu.memory_space<vmem>>, vector<1x8x8xf32>
    %563 = vector.shape_cast %562 : vector<1x8x8xf32> to vector<8x8xf32>
    %564 = tpu.concatenate %563, %557, %7 in 1 : vector<8x8xf32>, vector<8x32xf32>, vector<8x8xf32> -> vector<8x48xf32>
    %565 = arith.truncf %564 : vector<8x48xf32> to vector<8x48xbf16>
    %cst_202 = arith.constant dense<0.000000e+00> : vector<8x128xf32>
    %566 = tpu.matmul %565, %0, %cst_202 {dimension_numbers = #tpu.dot_dimension_numbers<[1], [0], [0], [1], [0, 0, 1, 1], [], []>} : vector<8x48xbf16>, vector<48x128xbf16>, vector<8x128xf32> -> vector<8x128xf32>
    %567 = vector.extract_strided_slice %566 {offsets = [0, 0], sizes = [8, 50], strides = [1, 1]} : vector<8x128xf32> to vector<8x50xf32>
    %cst_203 = arith.constant 0.000000e+00 : f32
    %568 = vector.broadcast %cst_203 : f32 to vector<8x50xf32>
    %569 = arith.maximumf %567, %568 : vector<8x50xf32>
    %570 = vector.extract_strided_slice %566 {offsets = [0, 50], sizes = [8, 32], strides = [1, 1]} : vector<8x128xf32> to vector<8x32xf32>
    %571 = vector.extract_strided_slice %566 {offsets = [0, 82], sizes = [8, 8], strides = [1, 1]} : vector<8x128xf32> to vector<8x8xf32>
    %572 = vector.extract_strided_slice %566 {offsets = [0, 90], sizes = [8, 25], strides = [1, 1]} : vector<8x128xf32> to vector<8x25xf32>
    %cst_204 = arith.constant 0.000000e+00 : f32
    %573 = vector.broadcast %cst_204 : f32 to vector<8x25xf32>
    %574 = arith.maximumf %572, %573 : vector<8x25xf32>
    %575 = tpu.concatenate %6, %574, %569, %8 in 1 : vector<8x1xf32>, vector<8x25xf32>, vector<8x50xf32>, vector<8x4xf32> -> vector<8x80xf32>
    %576 = arith.truncf %575 : vector<8x80xf32> to vector<8x80xbf16>
    %cst_205 = arith.constant dense<0.000000e+00> : vector<8x128xf32>
    %577 = tpu.matmul %576, %1, %cst_205 {dimension_numbers = #tpu.dot_dimension_numbers<[1], [0], [0], [1], [0, 0, 1, 1], [], []>} : vector<8x80xbf16>, vector<80x128xbf16>, vector<8x128xf32> -> vector<8x128xf32>
    %578 = vector.extract_strided_slice %577 {offsets = [0, 0], sizes = [8, 12], strides = [1, 1]} : vector<8x128xf32> to vector<8x12xf32>
    %cst_206 = arith.constant 0.000000e+00 : f32
    %579 = vector.broadcast %cst_206 : f32 to vector<8x12xf32>
    %580 = arith.maximumf %578, %579 : vector<8x12xf32>
    %581 = vector.extract_strided_slice %577 {offsets = [0, 12], sizes = [8, 25], strides = [1, 1]} : vector<8x128xf32> to vector<8x25xf32>
    %cst_207 = arith.constant 0.000000e+00 : f32
    %582 = vector.broadcast %cst_207 : f32 to vector<8x25xf32>
    %583 = arith.maximumf %581, %582 : vector<8x25xf32>
    %584 = tpu.concatenate %6, %580, %583, %9 in 1 : vector<8x1xf32>, vector<8x12xf32>, vector<8x25xf32>, vector<8x10xf32> -> vector<8x48xf32>
    %585 = arith.truncf %584 : vector<8x48xf32> to vector<8x48xbf16>
    %cst_208 = arith.constant dense<0.000000e+00> : vector<8x128xf32>
    %586 = tpu.matmul %585, %2, %cst_208 {dimension_numbers = #tpu.dot_dimension_numbers<[1], [0], [0], [1], [0, 0, 1, 1], [], []>} : vector<8x48xbf16>, vector<48x128xbf16>, vector<8x128xf32> -> vector<8x128xf32>
    %587 = vector.extract_strided_slice %586 {offsets = [0, 0], sizes = [8, 10], strides = [1, 1]} : vector<8x128xf32> to vector<8x10xf32>
    %cst_209 = arith.constant 0.000000e+00 : f32
    %588 = vector.broadcast %cst_209 : f32 to vector<8x10xf32>
    %589 = arith.maximumf %587, %588 : vector<8x10xf32>
    %590 = vector.extract_strided_slice %586 {offsets = [0, 10], sizes = [8, 10], strides = [1, 1]} : vector<8x128xf32> to vector<8x10xf32>
    %cst_210 = arith.constant 0.000000e+00 : f32
    %591 = vector.broadcast %cst_210 : f32 to vector<8x10xf32>
    %592 = arith.maximumf %590, %591 : vector<8x10xf32>
    %593 = arith.addf %589, %592 : vector<8x10xf32>
    %594 = tpu.concatenate %6, %593, %10 in 1 : vector<8x1xf32>, vector<8x10xf32>, vector<8x5xf32> -> vector<8x16xf32>
    %595 = arith.truncf %594 : vector<8x16xf32> to vector<8x16xbf16>
    %cst_211 = arith.constant dense<0.000000e+00> : vector<8x128xf32>
    %596 = tpu.matmul %595, %3, %cst_211 {dimension_numbers = #tpu.dot_dimension_numbers<[1], [0], [0], [1], [0, 0, 1, 1], [], []>} : vector<8x16xbf16>, vector<16x128xbf16>, vector<8x128xf32> -> vector<8x128xf32>
    %597 = vector.extract_strided_slice %596 {offsets = [0, 0], sizes = [8, 16], strides = [1, 1]} : vector<8x128xf32> to vector<8x16xf32>
    %cst_212 = arith.constant 0.000000e+00 : f32
    %598 = vector.broadcast %cst_212 : f32 to vector<8x16xf32>
    %599 = arith.maximumf %597, %598 : vector<8x16xf32>
    %600 = tpu.concatenate %6, %599, %11 in 1 : vector<8x1xf32>, vector<8x16xf32>, vector<8x15xf32> -> vector<8x32xf32>
    %601 = arith.truncf %600 : vector<8x32xf32> to vector<8x32xbf16>
    %cst_213 = arith.constant dense<0.000000e+00> : vector<8x128xf32>
    %602 = tpu.matmul %601, %4, %cst_213 {dimension_numbers = #tpu.dot_dimension_numbers<[1], [0], [0], [1], [0, 0, 1, 1], [], []>} : vector<8x32xbf16>, vector<32x128xbf16>, vector<8x128xf32> -> vector<8x128xf32>
    %603 = vector.extract_strided_slice %602 {offsets = [0, 0], sizes = [8, 8], strides = [1, 1]} : vector<8x128xf32> to vector<8x8xf32>
    %604 = math.absf %603 : vector<8x8xf32>
    %cst_214 = arith.constant 0.000000e+00 : f32
    %605 = vector.broadcast %cst_214 : f32 to vector<8x8xf32>
    %606 = arith.subf %605, %604 : vector<8x8xf32>
    %607 = math.exp %606 : vector<8x8xf32>
    %cst_215 = arith.constant 0.000000e+00 : f32
    %608 = vector.broadcast %cst_215 : f32 to vector<8x8xf32>
    %609 = arith.cmpf oge, %603, %608 : vector<8x8xf32>
    %cst_216 = arith.constant 1.000000e+00 : f32
    %610 = vector.broadcast %cst_216 : f32 to vector<8x8xf32>
    %611 = arith.addf %610, %607 : vector<8x8xf32>
    %cst_217 = arith.constant 1.000000e+00 : f32
    %612 = vector.broadcast %cst_217 : f32 to vector<8x8xf32>
    %613 = arith.divf %612, %611 : vector<8x8xf32>
    %cst_218 = arith.constant 1.000000e+00 : f32
    %614 = vector.broadcast %cst_218 : f32 to vector<8x8xf32>
    %615 = arith.addf %614, %607 : vector<8x8xf32>
    %616 = arith.divf %607, %615 : vector<8x8xf32>
    %617 = arith.select %609, %613, %616 : vector<8x8xi1>, vector<8x8xf32>
    %618 = arith.mulf %617, %571 : vector<8x8xf32>
    %619 = tpu.concatenate %618, %12 in 1 : vector<8x8xf32>, vector<8x8xf32> -> vector<8x16xf32>
    %620 = arith.truncf %619 : vector<8x16xf32> to vector<8x16xbf16>
    %cst_219 = arith.constant dense<0.000000e+00> : vector<8x128xf32>
    %621 = tpu.matmul %620, %5, %cst_219 {dimension_numbers = #tpu.dot_dimension_numbers<[1], [0], [0], [1], [0, 0, 1, 1], [], []>} : vector<8x16xbf16>, vector<16x128xbf16>, vector<8x128xf32> -> vector<8x128xf32>
    %622 = vector.extract_strided_slice %621 {offsets = [0, 0], sizes = [8, 32], strides = [1, 1]} : vector<8x128xf32> to vector<8x32xf32>
    %623 = arith.addf %570, %622 : vector<8x32xf32>
    %624 = arith.subf %623, %549 : vector<8x32xf32>
    %cst_220 = arith.constant 0.333333343 : f32
    %625 = vector.broadcast %cst_220 : f32 to vector<8x32xf32>
    %626 = arith.mulf %625, %624 : vector<8x32xf32>
    %627 = arith.addf %549, %626 : vector<8x32xf32>
    %cst_221 = arith.constant 0.000000e+00 : f32
    %628 = vector.broadcast %cst_221 : f32 to vector<8x32xf32>
    %629 = arith.maximumf %627, %628 : vector<8x32xf32>
    %630 = math.absf %627 : vector<8x32xf32>
    %cst_222 = arith.constant 0.000000e+00 : f32
    %631 = vector.broadcast %cst_222 : f32 to vector<8x32xf32>
    %632 = arith.subf %631, %630 : vector<8x32xf32>
    %633 = math.exp %632 : vector<8x32xf32>
    %634 = math.log1p %633 : vector<8x32xf32>
    %635 = arith.addf %629, %634 : vector<8x32xf32>
    %636 = tpu.concatenate %627, %635, %617, %13 in 1 : vector<8x32xf32>, vector<8x32xf32>, vector<8x8xf32>, vector<8x56xf32> -> vector<8x128xf32>
    %c7_223 = arith.constant 7 : index
    %c0_224 = arith.constant 0 : index
    %c0_225 = arith.constant 0 : index
    %637 = vector.load %arg4[%c7_223, %c0_224, %c0_225] : memref<8x8x128xf32, #tpu.memory_space<vmem>>, vector<1x8x128xf32>
    %638 = vector.shape_cast %637 : vector<1x8x128xf32> to vector<8x128xf32>
    %639 = vector.shape_cast %636 : vector<8x128xf32> to vector<1x8x128xf32>
    tpu.vector_store %arg4[%c7_223, %c0_224, %c0_225], %639 {strides = array<i32>} : memref<8x8x128xf32, #tpu.memory_space<vmem>>, vector<1x8x128xf32>,
    return
  }
}

</mosaic_0001>

<bundles_post_ra>
// kernel: tpu_custom_call.1
= control target key start
LH: loop header
LB: loop body
LE: loop exit
PB: predicated region body
PF: predicated region fallthrough
CT: control target
= control target key end

     0   :  { %9 = vsyncpa [#allocation3], 0  ;;  %s3011_s0 = inlined_call_operand.hbm [shape: f32[8,32], index: 0, kind: input, shape index: {}]   ;;  %s3012_s1 = inlined_call_operand.hbm [shape: f32[8,32], index: 1, kind: input, shape index: {}]   ;;  %s3013_s2 = inlined_call_operand.hbm [shape: f32[8,8,8], index: 2, kind: input, shape index: {}]   ;;  %s3014_s3 = inlined_call_operand.hbm [shape: bf16[240,128], index: 3, kind: input, shape index: {}]   ;;  %s3015_s4 = inlined_call_operand.hbm [shape: f32[8,8,128], index: 4, kind: output, shape index: {}]  }
   0x1   :  { %10 = vsyncpa [#allocation6], 0 }
   0x2   :  { %11 = vsyncpa [#allocation9], 0  ;;  %s29_s17 = sshll.u32 %s3012_s1, 4  ;;  %s30_s17 = int_to_ptr.hbm [resolvable:$true] %s29_s17 }
   0x3   :  { %12 = vsyncpa [#allocation4], 0  ;;  %s2342_s18 = smov [#allocation5]   ;;  %s18_s22 = sshll.u32 %s3011_s0, 4  ;;  %s19_s22 = int_to_ptr.hbm [resolvable:$true] %s18_s22 }
   0x4   :  { %s31_s19 = sshll.u32 %s2342_s18, 4  ;;  %s2343_s23 = smov [#allocation2]   ;;  %s32_s19 = int_to_ptr.vmem [resolvable:$true] %s31_s19 }
   0x5   :  { %34 = dma.hbm_to_vmem [thread:$0]  %s30_s17, 128, %s32_s19, [#allocation6]  }
   0x6   :  { %s20_s24 = sshll.u32 %s2343_s23, 4  ;;  %s39_s27 = sshll.u32 %s3013_s2, 4  ;;  %s21_s24 = int_to_ptr.vmem [resolvable:$true] %s20_s24  ;;  %s40_s27 = int_to_ptr.hbm [resolvable:$true] %s39_s27 }
   0x7   :  { %23 = dma.hbm_to_vmem [thread:$0]  %s19_s22, 128, %s21_s24, [#allocation3]  }
   0x8   :  { %s2344_s1 = smov [#allocation7]   ;;  %s52_s5 = sshll.u32 %s3014_s3, 4  ;;  %s53_s5 = int_to_ptr.hbm [resolvable:$true] %s52_s5 }
   0x9   :  { %s41_s28 = sshll.u32 %s2344_s1, 4  ;;  %s2345_s6 = smov 128   ;;  %s42_s28 = int_to_ptr.vmem [resolvable:$true] %s41_s28 }
   0xa   :  { %s2346_s0 = smov 8   ;;  %s2347_s7 = smov [#allocation8]  }
   0xb   :  { %47 = dma.hbm_to_vmem [thread:$0]  %s40_s27, 1024, %s42_s28, [#allocation6], %s2345_s6, %s2345_s6, %s2346_s0  }
   0xc   :  { %s54_s8 = sshll.u32 %s2347_s7, 4  ;;  %s2348_s2 = smov 64   ;;  %s55_s8 = int_to_ptr.vmem [resolvable:$true] %s54_s8 }
   0xd   :  { %s2349_s9 = smov 4  }
   0xe   :  { %60 = dma.hbm_to_vmem [thread:$0]  %s53_s5, 1920, %s55_s8, [#allocation9], %s2348_s2, %s2348_s2, %s2349_s9  }
   0xf   :  { %2334 = dma.done.wait [#allocation3], 128  }
  0x10   :  { %2335 = vsyncadd [#allocation3], 4294967168 }
  0x11   :  { %2336 = dma.done.wait [#allocation6], 1152  }
  0x12   :  { %2337 = vsyncadd [#allocation6], 4294966144 }
  0x13   :  { %2338 = dma.done.wait [#allocation9], 1920  }
  0x14   :  { %2339 = vsyncadd [#allocation9], 4294965376  ;;  %v109_v0 = vld [vmem:[#allocation5] sm:$0xff]  ;;  %v2401_v1 = vld [vmem:[#allocation8 + $0x10] sm:$0xff]  ;;  %vm115_vm0 = vcmask 64512   ;;  %vm117_vm1 = vcmask 326656  }
  0x15   :  { %112 = vrot.lane.b32.xlu0 %v109_v0, %s2346_s0  ;;  %147 = vmatpush.bf16.msra.mxu0 %v2401_v1  ;;  %v2405_v2 = vld [vmem:[#allocation8 + $0x8] sm:$0xff]  ;;  %v2408_v3 = vld [vmem:[#allocation8] sm:$0xff]  ;;  %vm138_vm2 = vcmask 392192   ;;  %v2414_v9 = vld [vmem:[#allocation8 + $0x38] sm:$0xff]  ;;  %s2350_s3 = smov 26   ;;  %s2351_s10 = smov 39  }
  0x16   :  { %v110_v4 = vld [vmem:[#allocation7] sm:$0xff]  ;;  %207 = vmatpush.bf16.msra.mxu1 %v2414_v9  ;;  %v2417_v10 = vld [vmem:[#allocation8 + $0x30] sm:$0xff]  ;;  %v2420_v11 = vld [vmem:[#allocation8 + $0x28] sm:$0xff]  ;;  %vm163_vm3 = vcmask 7168   ;;  %vm165_vm4 = vcmask 211968   ;;  %vm167_vm5 = vcmask 621568  }
  0x17   :  { %v2423_v12 = vld [vmem:[#allocation8 + $0x20] sm:$0xff]  ;;  %v2431_v16 = vld [vmem:[#allocation8 + $0x18] sm:$0xff]  ;;  %vm200_vm6 = vcmask 654336   ;;  %v2446_v23 = vld [vmem:[#allocation8 + $0x50] sm:$0xff]  ;;  %s2352_s11 = smov 1   ;;  %s2353_s12 = smov 46  }
  0x18   :  { %254 = vmatpush.bf16.msra.mxu2 %v2446_v23  ;;  %v2449_v24 = vld [vmem:[#allocation8 + $0x48] sm:$0xff]  ;;  %v2455_v28 = vld [vmem:[#allocation8 + $0x40] sm:$0xff]  ;;  %vm223_vm7 = vcmask 105472   ;;  %vm225_vm8 = vcmask 310272   ;;  %s2354_s13 = smov 118   ;;  %v2467_v39 = vld [vmem:[#allocation8 + $0x58] sm:$0xff] }
  0x19   :  { %148 = vmatpush.bf16.msra.mxu0 %v2405_v2  ;;  %293 = vmatpush.bf16.msra.mxu3 %v2467_v39  ;;  %vm273_vm9 = vcmask 89088   ;;  %vm282_vm10 = vcmask 130048   ;;  %v2473_v44 = vld [vmem:[#allocation8 + $0x68] sm:$0xff]  ;;  %v2476_v45 = vld [vmem:[#allocation8 + $0x60] sm:$0xff]  ;;  %vm3017_vm11 = vcmask 138240   ;;  %vm3016_vm12 = vcmask 261120  }
  0x1a   :  { %208 = vmatpush.bf16.msra.mxu1 %v2417_v10  ;;  %v2488_v56 = vld [vmem:[#allocation8 + $0x70] sm:$0xff]  ;;  %s2355_s14 = smov 50   ;;  %s2356_s15 = smov 78  }
  0x1b   :  { %v108_v59 = vld [vmem:[#allocation2] sm:$0xff]  ;;  %s2357_s16 = smov 32   ;;  %s2358_s17 = smov [#allocation10]  }
  0x1c   :  { %255 = vmatpush.bf16.msra.mxu2 %v2449_v24  ;;  %s1978_s18 = sshll.u32 %s2358_s17, 4  ;;  %s1980_s21 = sshll.u32 %s3015_s4, 4  ;;  %s1979_s18 = int_to_ptr.vmem [resolvable:$true] %s1978_s18  ;;  %s1981_s21 = int_to_ptr.hbm [resolvable:$true] %s1980_s21 }
  0x1d   :  { %149 = vmatpush.bf16.msra.mxu0 %v2408_v3  ;;  %330 = vmatpush.bf16.msrb.mxu3 %v2473_v44 }
  0x1e   :  { %209 = vmatpush.bf16.msra.mxu1 %v2420_v11 }
  0x20   :  { %256 = vmatpush.bf16.msra.mxu2 %v2455_v28 }
  0x21   :  { %331 = vmatpush.bf16.msrb.mxu3 %v2476_v45  ;;  %383 = vmatpush.bf16.msrb.mxu0 %v2488_v56 }
  0x22   :  { %210 = vmatpush.bf16.msra.mxu1 %v2423_v12 }
  0x24   :  { %450 = vmatpush.bf16.msrb.mxu2 %v2401_v1 }
  0x26   :  { %211 = vmatpush.bf16.msra.mxu1 %v2431_v16 }
  0x28   :  { %451 = vmatpush.bf16.msrb.mxu2 %v2405_v2 }
  0x2a   :  { %476 = vmatpush.bf16.msrb.mxu1 %v2414_v9 }
  0x2c   :  { %452 = vmatpush.bf16.msrb.mxu2 %v2408_v3 }
  0x2e   :  { %477 = vmatpush.bf16.msrb.mxu1 %v2417_v10 }
  0x32   :  { %478 = vmatpush.bf16.msrb.mxu1 %v2420_v11 }
  0x36   :  { %479 = vmatpush.bf16.msrb.mxu1 %v2423_v12 }
  0x3a   :  { %480 = vmatpush.bf16.msrb.mxu1 %v2431_v16 }
  0x87   :  { %v113_v5 = vpop.permute.xlu0 %112 }
  0x88   :  { %v116_v6 = vsel %vm115_vm0, %v110_v4, %v113_v5 }
  0x89   :  { %v118_v7 = vsel %vm117_vm1, %v116_v6, 0.0 }
  0x8a   :  { %v119_v8 = vpack.c.bf16 %v118_v7, %v118_v7 }
  0x8c   :  { %2007 = vmatmul.msk.bf16.vlgmr.msra.gmra.mxu0 %vm138_vm2, %v119_v8 }
  0x8d   :  { %534 = vmatpush.bf16.msra.mxu0 %v2467_v39 }
 0x109   :  { %v2426_v13 = vpop.f32.mrf.mxu0 }
 0x10a   :  { %v155_v14 = vmax.f32 %v2426_v13, 0.0 }
 0x10c   :  { %160 = vrot.lane.b32.xlu1 %v155_v14, %s2350_s3  ;;  %157 = vrot.lane.b32.xlu0 %v155_v14, %s2351_s10 }
 0x111   :  { %v153_v15 = vpop.f32.mrf.mxu0 }
 0x17e   :  { %v161_v17 = vpop.permute.xlu1 %160  ;;  %v158_v18 = vpop.permute.xlu0 %157 }
 0x17f   :  { %v164_v19 = vsel %vm163_vm3, 1.0, %v158_v18 }
 0x180   :  { %v166_v20 = vsel %vm165_vm4, %v164_v19, %v161_v17 }
 0x181   :  { %v168_v21 = vsel %vm167_vm5, %v166_v20, 0.0 }
 0x182   :  { %v169_v22 = vpack.c.bf16 %v168_v21, %v168_v21 }
 0x184   :  { %2028 = vmatmul.msk.bf16.vlgmr.msra.gmra.mxu1 %vm200_vm6, %v169_v22 }
 0x185   :  { %670 = vmatpush.bf16.msra.mxu1 %v2401_v1 }
 0x189   :  { %671 = vmatpush.bf16.msra.mxu1 %v2405_v2 }
 0x18d   :  { %672 = vmatpush.bf16.msra.mxu1 %v2408_v3 }
 0x201   :  { %v213_v25 = vpop.f32.mrf.mxu1 }
 0x202   :  { %v217_v26 = vmax.f32 %v213_v25, 0.0 }
 0x204   :  { %219 = vrot.lane.b32.xlu1 %v217_v26, %s2352_s11 }
 0x209   :  { %v215_v27 = vpop.f32.mrf.mxu1 }
 0x20c   :  { %361 = vrot.lane.b32.xlu1 %v2426_v13, %s2353_s12 }
 0x276   :  { %v220_v29 = vpop.permute.xlu1 %219 }
 0x277   :  { %v222_v30 = vsel %vm163_vm3, 1.0, %v220_v29 }
 0x278   :  { %v224_v31 = vsel %vm223_vm7, %v222_v30, %v220_v29 }
 0x279   :  { %v226_v32 = vsel %vm225_vm8, %v224_v31, 0.0 }
 0x27a   :  { %v227_v33 = vpack.c.bf16 %v226_v32, %v226_v32 }
 0x27c   :  { %2041 = vmatmul.msk.bf16.vlgmr.msra.gmra.mxu2 %vm138_vm2, %v227_v33 }
 0x27d   :  { %557 = vmatpush.bf16.msra.mxu2 %v2473_v44 }
 0x27e   :  { %v362_v18 = vpop.permute.xlu1 %361 }
 0x281   :  { %558 = vmatpush.bf16.msra.mxu2 %v2476_v45 }
 0x2ff   :  { %v258_v34 = vpop.f32.mrf.mxu2 }
 0x300   :  { %v262_v35 = vmax.f32 %v258_v34, 0.0 }
 0x302   :  { %264 = vrot.lane.b32.xlu2 %v262_v35, %s2354_s13 }
 0x307   :  { %v260_v36 = vpop.f32.mrf.mxu2 }
 0x35c   :  { %v265_v37 = vpop.permute.xlu2 %264 }
 0x35d   :  { %v267_v38 = vadd.f32 %v265_v37, %v262_v35 }
 0x35f   :  { %269 = vrot.lane.b32.xlu2 %v267_v38, %s2352_s11 }
 0x3b9   :  { %v270_v40 = vpop.permute.xlu2 %269 }
 0x3ba   :  { %v272_v41 = vsel %vm163_vm3, 1.0, %v270_v40 }
 0x3bb   :  { %v274_v42 = vsel %vm273_vm9, %v272_v41, 0.0 }
 0x3bc   :  { %v275_v43 = vpack.c.bf16 %v274_v42, %v274_v42 }
 0x3be   :  { %2046 = vmatmul.msk.bf16.vlgmr.msra.gmra.mxu3 %vm282_vm10, %v275_v43 }
 0x3bf   :  { %503 = vmatpush.bf16.msra.mxu3 %v2446_v23 }
 0x3c3   :  { %504 = vmatpush.bf16.msra.mxu3 %v2449_v24 }
 0x3c7   :  { %505 = vmatpush.bf16.msra.mxu3 %v2455_v28 }
 0x441   :  { %v295_v46 = vpop.f32.mrf.mxu3 }
 0x442   :  { %v299_v47 = vmax.f32 %v295_v46, 0.0 }
 0x444   :  { %301 = vrot.lane.b32.xlu0 %v299_v47, %s2352_s11 }
 0x449   :  { %v297_v48 = vpop.f32.mrf.mxu3 }
 0x44c   :  { %395 = vrot.lane.b32.xlu0 %v108_v59, %s2355_s14 }
 0x4b6   :  { %v302_v49 = vpop.permute.xlu0 %301 }
 0x4b7   :  { %v304_v50 = vsel %vm163_vm3, 1.0, %v302_v49 }
 0x4b8   :  { %v306_v51 = vsel %vm3017_vm11, %v304_v50, 0.0 }
 0x4b9   :  { %v307_v52 = vpack.c.bf16 %v306_v51, %v306_v51  ;;  %v435_v51 = vld [vmem:[#allocation7 + $0x8] sm:$0xff] }
 0x4bb   :  { %2055 = vmatmul.msk.bf16.vlgmr.msrb.gmra.mxu3 %vm3016_vm12, %v307_v52 }
 0x4bc   :  { %604 = vmatpush.bf16.msrb.mxu3 %v2488_v56 }
 0x4be   :  { %v396_v29 = vpop.permute.xlu0 %395 }
 0x53e   :  { %v333_v53 = vpop.f32.mrf.mxu3 }
 0x53f   :  { %v337_v54 = vand.u32 2147483647, %v333_v53  ;;  %vm341_vm11 = vcmp.ge.f32.partialorder %v333_v53, 0.0 }
 0x541   :  { %v338_v55 = vsub.f32 0.0, %v337_v54 }
 0x543   :  { %v339_v57 = vmul.f32 1.442695, %v338_v55 }
 0x545   :  { %2135 = vpow2.f32 %v339_v57 }
 0x546   :  { %v335_v58 = vpop.f32.mrf.mxu3 }
 0x54b   :  { %v2136_v60 = vpop.eup %2135 }
 0x54c   :  { %v342_v61 = vadd.f32 1.0, %v2136_v60 }
 0x54e   :  { %2137 = vrcp.f32 %v342_v61  ;;  %v354_v4 = vand.u32 2147483648, %v342_v61  ;;  %v352_v6 = vand.u32 2147483647, %v342_v61  ;;  %vm348_vm14 = vweird.f32 %v342_v61 }
 0x550   :  { %v355_v8 = vor.u32 1.1754944e-38, %v354_v4  ;;  %vm353_vm12 = vcmp.eq.f32.partialorder %v352_v6, 8.507059e+37 }
 0x554   :  { %v2138_v62 = vpop.eup %2137 }
 0x555   :  { %v344_v63 = vmul.f32 %v2138_v62, %v342_v61  ;;  %vm349_vm13 = vweird.f32 %v2138_v62 }
 0x556   :  { %vm350_vm15 = vmor %vm348_vm14, %vm349_vm13  ;;  %vm3019_vm13 = vcmask 261120  }
 0x557   :  { %v345_v0 = vsub.f32 1.0, %v344_v63 }
 0x559   :  { %v346_v5 = vmul.f32 %v2138_v62, %v345_v0 }
 0x55b   :  { %v347_v7 = vadd.f32 %v2138_v62, %v346_v5 }
 0x55d   :  { %v351_v14 = vsel %vm350_vm15, %v2138_v62, %v347_v7 }
 0x55e   :  { %v356_v15 = vsel %vm353_vm12, %v355_v8, %v351_v14  ;;  %vm3018_vm12 = vcmask 138240  }
 0x55f   :  { %v358_v17 = vmul.f32 %v2136_v60, %v356_v15 }
 0x561   :  { %v2494_v19 = vsel %vm341_vm11, %v356_v15, %v358_v17 }
 0x562   :  { %v364_v20 = vmul.f32 %v362_v18, %v2494_v19 }
 0x564   :  { %v365_v21 = vsel %vm115_vm0, %v364_v20, 0.0 }
 0x565   :  { %v366_v22 = vpack.c.bf16 %v365_v21, %v365_v21 }
 0x567   :  { %2060 = vmatmul.msk.bf16.vlgmr.msrb.gmra.mxu0 %vm282_vm10, %v366_v22 }
 0x568   :  { %696 = vmatpush.bf16.msrb.mxu0 %v2414_v9 }
 0x56c   :  { %697 = vmatpush.bf16.msrb.mxu0 %v2417_v10 }
 0x570   :  { %698 = vmatpush.bf16.msrb.mxu0 %v2420_v11 }
 0x574   :  { %699 = vmatpush.bf16.msrb.mxu0 %v2423_v12 }
 0x578   :  { %700 = vmatpush.bf16.msrb.mxu0 %v2431_v16 }
 0x5e4   :  { %v385_v25 = vpop.f32.mrf.mxu0 }
 0x5e5   :  { %390 = vrot.lane.b32.xlu2 %v385_v25, %s2355_s14 }
 0x5ec   :  { %v387_v26 = vpop.f32.mrf.mxu0 }
 0x63f   :  { %v391_v27 = vpop.permute.xlu2 %390 }
 0x640   :  { %v393_v30 = vadd.f32 %v391_v27, %v2426_v13 }
 0x642   :  { %v398_v31 = vsub.f32 %v393_v30, %v396_v29 }
 0x644   :  { %v399_v32 = vmul.f32 0.33333334, %v398_v31 }
 0x646   :  { %401 = vrot.lane.b32.xlu1 %v399_v32, %s2356_s15 }
 0x6b8   :  { %v402_v33 = vpop.permute.xlu1 %401 }
 0x6b9   :  { %v2507_v34 = vadd.f32 %v402_v33, %v108_v59 }
 0x6bb   :  { %v406_v35 = vand.u32 2147483647, %v2507_v34  ;;  %v405_v48 = vmax.f32 %v2507_v34, 0.0 }
 0x6bd   :  { %v407_v36 = vsub.f32 0.0, %v406_v35 }
 0x6bf   :  { %v408_v37 = vmul.f32 1.442695, %v407_v36 }
 0x6c1   :  { %2139 = vpow2.f32 %v408_v37 }
 0x6c7   :  { %v2140_v38 = vpop.eup %2139 }
 0x6c8   :  { %v410_v40 = vadd.f32 1.0, %v2140_v38  ;;  %v413_v41 = vmul.f32 -0.5, %v2140_v38  ;;  %v416_v43 = vand.u32 2147483647, %v2140_v38 }
 0x6ca   :  { %2141 = vlog2.f32 %v410_v40  ;;  %v414_v42 = vadd.f32 1.0, %v413_v41  ;;  %vm417_vm11 = vcmp.lt.f32.partialorder %v416_v43, 0.0004427343 }
 0x6cc   :  { %v415_v47 = vmul.f32 %v2140_v38, %v414_v42 }
 0x6d0   :  { %v2142_v13 = vpop.eup %2141 }
 0x6d1   :  { %v412_v46 = vmul.f32 0.6931472, %v2142_v13 }
 0x6d3   :  { %v418_v49 = vsel %vm417_vm11, %v415_v47, %v412_v46 }
 0x6d4   :  { %v2511_v50 = vadd.f32 %v418_v49, %v405_v48 }
 0x6d6   :  { %436 = vrot.lane.b32.xlu2 %v2511_v50, %s2346_s0 }
 0x730   :  { %v437_v52 = vpop.permute.xlu2 %436 }
 0x731   :  { %v439_v53 = vsel %vm115_vm0, %v435_v51, %v437_v52 }
 0x732   :  { %v440_v54 = vsel %vm117_vm1, %v439_v53, 0.0 }
 0x733   :  { %v441_v55 = vpack.c.bf16 %v440_v54, %v440_v54 }
 0x735   :  { %2061 = vmatmul.msk.bf16.vlgmr.msrb.gmra.mxu2 %vm138_vm2, %v441_v55 }
 0x736   :  { %723 = vmatpush.bf16.msrb.mxu2 %v2446_v23 }
 0x73a   :  { %724 = vmatpush.bf16.msrb.mxu2 %v2449_v24 }
 0x73e   :  { %725 = vmatpush.bf16.msrb.mxu2 %v2455_v28 }
 0x7b8   :  { %v2521_v57 = vpop.f32.mrf.mxu2 }
 0x7b9   :  { %v458_v58 = vmax.f32 %v2521_v57, 0.0 }
 0x7bb   :  { %463 = vrot.lane.b32.xlu1 %v458_v58, %s2350_s3  ;;  %460 = vrot.lane.b32.xlu0 %v458_v58, %s2351_s10 }
 0x7c0   :  { %v456_v59 = vpop.f32.mrf.mxu2 }
 0x82d   :  { %v464_v60 = vpop.permute.xlu1 %463  ;;  %v461_v61 = vpop.permute.xlu0 %460 }
 0x82e   :  { %v466_v62 = vsel %vm163_vm3, 1.0, %v461_v61 }
 0x82f   :  { %v467_v63 = vsel %vm165_vm4, %v466_v62, %v464_v60 }
 0x830   :  { %v468_v0 = vsel %vm167_vm5, %v467_v63, 0.0 }
 0x831   :  { %v469_v4 = vpack.c.bf16 %v468_v0, %v468_v0 }
 0x833   :  { %2062 = vmatmul.msk.bf16.vlgmr.msrb.gmra.mxu1 %vm200_vm6, %v469_v4 }
 0x834   :  { %777 = vmatpush.bf16.msrb.mxu1 %v2473_v44 }
 0x838   :  { %778 = vmatpush.bf16.msrb.mxu1 %v2476_v45 }
 0x8b0   :  { %v482_v5 = vpop.f32.mrf.mxu1 }
 0x8b1   :  { %v486_v6 = vmax.f32 %v482_v5, 0.0 }
 0x8b3   :  { %488 = vrot.lane.b32.xlu2 %v486_v6, %s2352_s11 }
 0x8b8   :  { %v484_v7 = vpop.f32.mrf.mxu1 }
 0x90d   :  { %v489_v8 = vpop.permute.xlu2 %488 }
 0x90e   :  { %v491_v14 = vsel %vm163_vm3, 1.0, %v489_v8 }
 0x90f   :  { %v492_v15 = vsel %vm223_vm7, %v491_v14, %v489_v8 }
 0x910   :  { %v493_v17 = vsel %vm225_vm8, %v492_v15, 0.0 }
 0x911   :  { %v494_v18 = vpack.c.bf16 %v493_v17, %v493_v17 }
 0x913   :  { %2063 = vmatmul.msk.bf16.vlgmr.msra.gmra.mxu3 %vm138_vm2, %v494_v18 }
 0x914   :  { %754 = vmatpush.bf16.msra.mxu3 %v2467_v39 }
 0x996   :  { %v507_v20 = vpop.f32.mrf.mxu3 }
 0x997   :  { %v511_v21 = vmax.f32 %v507_v20, 0.0 }
 0x999   :  { %513 = vrot.lane.b32.xlu0 %v511_v21, %s2354_s13 }
 0x99e   :  { %v509_v22 = vpop.f32.mrf.mxu3 }
 0x9a1   :  { %588 = vrot.lane.b32.xlu0 %v2521_v57, %s2353_s12 }
 0xa0b   :  { %v514_v25 = vpop.permute.xlu0 %513 }
 0xa0c   :  { %v516_v26 = vadd.f32 %v514_v25, %v511_v21 }
 0xa0e   :  { %518 = vrot.lane.b32.xlu1 %v516_v26, %s2352_s11 }
 0xa13   :  { %v589_v63 = vpop.permute.xlu0 %588 }
 0xa80   :  { %v519_v27 = vpop.permute.xlu1 %518 }
 0xa81   :  { %v521_v29 = vsel %vm163_vm3, 1.0, %v519_v27 }
 0xa82   :  { %v522_v30 = vsel %vm273_vm9, %v521_v29, 0.0 }
 0xa83   :  { %v523_v31 = vpack.c.bf16 %v522_v30, %v522_v30 }
 0xa85   :  { %2064 = vmatmul.msk.bf16.vlgmr.msra.gmra.mxu0 %vm282_vm10, %v523_v31 }
 0xa86   :  { %890 = vmatpush.bf16.msra.mxu0 %v2401_v1 }
 0xa8a   :  { %891 = vmatpush.bf16.msra.mxu0 %v2405_v2 }
 0xa8e   :  { %892 = vmatpush.bf16.msra.mxu0 %v2408_v3 }
 0xb02   :  { %v536_v32 = vpop.f32.mrf.mxu0 }
 0xb03   :  { %v540_v33 = vmax.f32 %v536_v32, 0.0 }
 0xb05   :  { %542 = vrot.lane.b32.xlu2 %v540_v33, %s2352_s11 }
 0xb0a   :  { %v538_v35 = vpop.f32.mrf.mxu0 }
 0xb0d   :  { %616 = vrot.lane.b32.xlu2 %v2507_v34, %s2355_s14 }
 0xb5f   :  { %v543_v36 = vpop.permute.xlu2 %542 }
 0xb60   :  { %v545_v37 = vsel %vm163_vm3, 1.0, %v543_v36 }
 0xb61   :  { %v546_v38 = vsel %vm3018_vm12, %v545_v37, 0.0 }
 0xb62   :  { %v547_v40 = vpack.c.bf16 %v546_v38, %v546_v38 }
 0xb64   :  { %2065 = vmatmul.msk.bf16.vlgmr.msra.gmra.mxu2 %vm3019_vm13, %v547_v40 }
 0xb65   :  { %824 = vmatpush.bf16.msra.mxu2 %v2488_v56 }
 0xb67   :  { %v617_v17 = vpop.permute.xlu2 %616 }
 0xbe7   :  { %v560_v41 = vpop.f32.mrf.mxu2 }
 0xbe8   :  { %v564_v42 = vand.u32 2147483647, %v560_v41  ;;  %vm568_vm13 = vcmp.ge.f32.partialorder %v560_v41, 0.0  ;;  %v655_v41 = vld [vmem:[#allocation7 + $0x10] sm:$0xff] }
 0xbea   :  { %v565_v43 = vsub.f32 0.0, %v564_v42 }
 0xbec   :  { %v566_v13 = vmul.f32 1.442695, %v565_v43 }
 0xbee   :  { %2143 = vpow2.f32 %v566_v13 }
 0xbef   :  { %v562_v46 = vpop.f32.mrf.mxu2 }
 0xbf4   :  { %v2144_v47 = vpop.eup %2143 }
 0xbf5   :  { %v569_v48 = vadd.f32 1.0, %v2144_v47 }
 0xbf7   :  { %2145 = vrcp.f32 %v569_v48  ;;  %v581_v53 = vand.u32 2147483648, %v569_v48  ;;  %v579_v55 = vand.u32 2147483647, %v569_v48  ;;  %vm575_vm15 = vweird.f32 %v569_v48 }
 0xbf9   :  { %v582_v59 = vor.u32 1.1754944e-38, %v581_v53  ;;  %vm580_vm12 = vcmp.eq.f32.partialorder %v579_v55, 8.507059e+37 }
 0xbfd   :  { %v2146_v49 = vpop.eup %2145 }
 0xbfe   :  { %v571_v51 = vmul.f32 %v2146_v49, %v569_v48  ;;  %vm576_vm14 = vweird.f32 %v2146_v49 }
 0xbff   :  { %vm577_vm11 = vmor %vm575_vm15, %vm576_vm14  ;;  %vm3020_vm15 = vcmask 138240  }
 0xc00   :  { %v572_v52 = vsub.f32 1.0, %v571_v51 }
 0xc02   :  { %v573_v54 = vmul.f32 %v2146_v49, %v572_v52 }
 0xc04   :  { %v574_v58 = vadd.f32 %v2146_v49, %v573_v54 }
 0xc06   :  { %v578_v60 = vsel %vm577_vm11, %v2146_v49, %v574_v58  ;;  %vm3021_vm11 = vcmask 261120  }
 0xc07   :  { %v583_v61 = vsel %vm580_vm12, %v582_v59, %v578_v60 }
 0xc08   :  { %v585_v62 = vmul.f32 %v2144_v47, %v583_v61 }
 0xc0a   :  { %v2555_v0 = vsel %vm568_vm13, %v583_v61, %v585_v62 }
 0xc0b   :  { %v591_v4 = vmul.f32 %v589_v63, %v2555_v0 }
 0xc0d   :  { %v592_v5 = vsel %vm115_vm0, %v591_v4, 0.0 }
 0xc0e   :  { %v593_v6 = vpack.c.bf16 %v592_v5, %v592_v5 }
 0xc10   :  { %2066 = vmatmul.msk.bf16.vlgmr.msrb.gmra.mxu3 %vm282_vm10, %v593_v6 }
 0xc11   :  { %916 = vmatpush.bf16.msrb.mxu3 %v2414_v9 }
 0xc15   :  { %917 = vmatpush.bf16.msrb.mxu3 %v2417_v10 }
 0xc19   :  { %918 = vmatpush.bf16.msrb.mxu3 %v2420_v11 }
 0xc1d   :  { %919 = vmatpush.bf16.msrb.mxu3 %v2423_v12 }
 0xc21   :  { %920 = vmatpush.bf16.msrb.mxu3 %v2431_v16 }
 0xc93   :  { %v606_v7 = vpop.f32.mrf.mxu3 }
 0xc94   :  { %611 = vrot.lane.b32.xlu1 %v606_v7, %s2355_s14 }
 0xc9b   :  { %v608_v8 = vpop.f32.mrf.mxu3 }
 0xd06   :  { %v612_v14 = vpop.permute.xlu1 %611 }
 0xd07   :  { %v614_v15 = vadd.f32 %v612_v14, %v2521_v57 }
 0xd09   :  { %v619_v18 = vsub.f32 %v614_v15, %v617_v17 }
 0xd0b   :  { %v620_v20 = vmul.f32 0.33333334, %v619_v18 }
 0xd0d   :  { %622 = vrot.lane.b32.xlu0 %v620_v20, %s2356_s15 }
 0xd7f   :  { %v623_v21 = vpop.permute.xlu0 %622 }
 0xd80   :  { %v2569_v22 = vadd.f32 %v623_v21, %v2507_v34 }
 0xd82   :  { %v627_v25 = vand.u32 2147483647, %v2569_v22  ;;  %v626_v37 = vmax.f32 %v2569_v22, 0.0 }
 0xd84   :  { %v628_v26 = vsub.f32 0.0, %v627_v25 }
 0xd86   :  { %v629_v27 = vmul.f32 1.442695, %v628_v26 }
 0xd88   :  { %2147 = vpow2.f32 %v629_v27 }
 0xd8e   :  { %v2148_v29 = vpop.eup %2147 }
 0xd8f   :  { %v631_v30 = vadd.f32 1.0, %v2148_v29  ;;  %v634_v31 = vmul.f32 -0.5, %v2148_v29  ;;  %v637_v57 = vand.u32 2147483647, %v2148_v29 }
 0xd91   :  { %2149 = vlog2.f32 %v631_v30  ;;  %v635_v32 = vadd.f32 1.0, %v634_v31  ;;  %vm638_vm14 = vcmp.lt.f32.partialorder %v637_v57, 0.0004427343 }
 0xd93   :  { %v636_v36 = vmul.f32 %v2148_v29, %v635_v32 }
 0xd97   :  { %v2150_v33 = vpop.eup %2149 }
 0xd98   :  { %v633_v35 = vmul.f32 0.6931472, %v2150_v33 }
 0xd9a   :  { %v639_v38 = vsel %vm638_vm14, %v636_v36, %v633_v35 }
 0xd9b   :  { %v2573_v40 = vadd.f32 %v639_v38, %v626_v37 }
 0xd9d   :  { %656 = vrot.lane.b32.xlu1 %v2573_v40, %s2346_s0 }
 0xe0f   :  { %v657_v42 = vpop.permute.xlu1 %656 }
 0xe10   :  { %v659_v43 = vsel %vm115_vm0, %v655_v41, %v657_v42 }
 0xe11   :  { %v660_v13 = vsel %vm117_vm1, %v659_v43, 0.0 }
 0xe12   :  { %v661_v46 = vpack.c.bf16 %v660_v13, %v660_v13 }
 0xe14   :  { %2067 = vmatmul.msk.bf16.vlgmr.msra.gmra.mxu1 %vm138_vm2, %v661_v46 }
 0xe15   :  { %943 = vmatpush.bf16.msra.mxu1 %v2446_v23 }
 0xe19   :  { %944 = vmatpush.bf16.msra.mxu1 %v2449_v24 }
 0xe1d   :  { %945 = vmatpush.bf16.msra.mxu1 %v2455_v28 }
 0xe91   :  { %v2583_v47 = vpop.f32.mrf.mxu1 }
 0xe92   :  { %v678_v48 = vmax.f32 %v2583_v47, 0.0 }
 0xe94   :  { %683 = vrot.lane.b32.xlu0 %v678_v48, %s2350_s3  ;;  %680 = vrot.lane.b32.xlu2 %v678_v48, %s2351_s10 }
 0xe99   :  { %v676_v49 = vpop.f32.mrf.mxu1 }
 0xeee   :  { %v681_v51 = vpop.permute.xlu2 %680 }
 0xeef   :  { %v686_v52 = vsel %vm163_vm3, 1.0, %v681_v51 }
 0xf06   :  { %v684_v53 = vpop.permute.xlu0 %683 }
 0xf07   :  { %v687_v54 = vsel %vm165_vm4, %v686_v52, %v684_v53 }
 0xf08   :  { %v688_v55 = vsel %vm167_vm5, %v687_v54, 0.0 }
 0xf09   :  { %v689_v58 = vpack.c.bf16 %v688_v55, %v688_v55 }
 0xf0b   :  { %2068 = vmatmul.msk.bf16.vlgmr.msrb.gmra.mxu0 %vm200_vm6, %v689_v58 }
 0xf0c   :  { %997 = vmatpush.bf16.msrb.mxu0 %v2473_v44 }
 0xf10   :  { %998 = vmatpush.bf16.msrb.mxu0 %v2476_v45 }
 0xf88   :  { %v702_v59 = vpop.f32.mrf.mxu0 }
 0xf89   :  { %v706_v60 = vmax.f32 %v702_v59, 0.0 }
 0xf8b   :  { %708 = vrot.lane.b32.xlu1 %v706_v60, %s2352_s11 }
 0xf90   :  { %v704_v61 = vpop.f32.mrf.mxu0 }
 0xffd   :  { %v709_v62 = vpop.permute.xlu1 %708 }
 0xffe   :  { %v711_v63 = vsel %vm163_vm3, 1.0, %v709_v62 }
 0xfff   :  { %v712_v4 = vsel %vm223_vm7, %v711_v63, %v709_v62 }
0x1000   :  { %v713_v5 = vsel %vm225_vm8, %v712_v4, 0.0 }
0x1001   :  { %v714_v6 = vpack.c.bf16 %v713_v5, %v713_v5 }
0x1003   :  { %2069 = vmatmul.msk.bf16.vlgmr.msrb.gmra.mxu2 %vm138_vm2, %v714_v6 }
0x1004   :  { %974 = vmatpush.bf16.msrb.mxu2 %v2467_v39 }
0x1086   :  { %v727_v7 = vpop.f32.mrf.mxu2 }
0x1087   :  { %v731_v8 = vmax.f32 %v727_v7, 0.0 }
0x1089   :  { %733 = vrot.lane.b32.xlu2 %v731_v8, %s2354_s13 }
0x108e   :  { %v729_v14 = vpop.f32.mrf.mxu2 }
0x1091   :  { %808 = vrot.lane.b32.xlu2 %v2583_v47, %s2353_s12 }
0x10e3   :  { %v734_v15 = vpop.permute.xlu2 %733 }
0x10e4   :  { %v736_v17 = vadd.f32 %v734_v15, %v731_v8 }
0x10e6   :  { %738 = vrot.lane.b32.xlu0 %v736_v17, %s2352_s11 }
0x10eb   :  { %v809_v59 = vpop.permute.xlu2 %808 }
0x1158   :  { %v739_v18 = vpop.permute.xlu0 %738 }
0x1159   :  { %v741_v20 = vsel %vm163_vm3, 1.0, %v739_v18 }
0x115a   :  { %v742_v21 = vsel %vm273_vm9, %v741_v20, 0.0 }
0x115b   :  { %v743_v25 = vpack.c.bf16 %v742_v21, %v742_v21 }
0x115d   :  { %2070 = vmatmul.msk.bf16.vlgmr.msra.gmra.mxu3 %vm282_vm10, %v743_v25 }
0x115e   :  { %1110 = vmatpush.bf16.msra.mxu3 %v2401_v1 }
0x1162   :  { %1111 = vmatpush.bf16.msra.mxu3 %v2405_v2 }
0x1166   :  { %1112 = vmatpush.bf16.msra.mxu3 %v2408_v3 }
0x11e0   :  { %v756_v26 = vpop.f32.mrf.mxu3 }
0x11e1   :  { %v760_v27 = vmax.f32 %v756_v26, 0.0 }
0x11e3   :  { %762 = vrot.lane.b32.xlu1 %v760_v27, %s2352_s11 }
0x11e8   :  { %v758_v29 = vpop.f32.mrf.mxu3 }
0x11eb   :  { %836 = vrot.lane.b32.xlu1 %v2569_v22, %s2355_s14 }
0x1255   :  { %v763_v30 = vpop.permute.xlu1 %762 }
0x1256   :  { %v765_v31 = vsel %vm163_vm3, 1.0, %v763_v30 }
0x1257   :  { %v766_v32 = vsel %vm3020_vm15, %v765_v31, 0.0 }
0x1258   :  { %v767_v57 = vpack.c.bf16 %v766_v32, %v766_v32 }
0x125a   :  { %2071 = vmatmul.msk.bf16.vlgmr.msrb.gmra.mxu1 %vm3021_vm11, %v767_v57 }
0x125b   :  { %1044 = vmatpush.bf16.msrb.mxu1 %v2488_v56 }
0x125d   :  { %v837_v8 = vpop.permute.xlu1 %836 }
0x12d7   :  { %v780_v33 = vpop.f32.mrf.mxu1 }
0x12d8   :  { %v784_v35 = vand.u32 2147483647, %v780_v33  ;;  %vm788_vm11 = vcmp.ge.f32.partialorder %v780_v33, 0.0  ;;  %v875_v33 = vld [vmem:[#allocation7 + $0x18] sm:$0xff] }
0x12da   :  { %v785_v36 = vsub.f32 0.0, %v784_v35 }
0x12dc   :  { %v786_v37 = vmul.f32 1.442695, %v785_v36 }
0x12de   :  { %2151 = vpow2.f32 %v786_v37 }
0x12df   :  { %v782_v38 = vpop.f32.mrf.mxu1 }
0x12e4   :  { %v2152_v41 = vpop.eup %2151 }
0x12e5   :  { %v789_v42 = vadd.f32 1.0, %v2152_v41 }
0x12e7   :  { %2153 = vrcp.f32 %v789_v42  ;;  %v801_v48 = vand.u32 2147483648, %v789_v42  ;;  %v799_v51 = vand.u32 2147483647, %v789_v42  ;;  %vm795_vm13 = vweird.f32 %v789_v42 }
0x12e9   :  { %v802_v53 = vor.u32 1.1754944e-38, %v801_v48  ;;  %vm800_vm15 = vcmp.eq.f32.partialorder %v799_v51, 8.507059e+37 }
0x12ed   :  { %v2154_v43 = vpop.eup %2153 }
0x12ee   :  { %v791_v13 = vmul.f32 %v2154_v43, %v789_v42  ;;  %vm796_vm12 = vweird.f32 %v2154_v43 }
0x12ef   :  { %vm797_vm14 = vmor %vm795_vm13, %vm796_vm12  ;;  %vm3022_vm13 = vcmask 138240  }
0x12f0   :  { %v792_v46 = vsub.f32 1.0, %v791_v13 }
0x12f2   :  { %v793_v49 = vmul.f32 %v2154_v43, %v792_v46 }
0x12f4   :  { %v794_v52 = vadd.f32 %v2154_v43, %v793_v49 }
0x12f6   :  { %v798_v54 = vsel %vm797_vm14, %v2154_v43, %v794_v52  ;;  %vm3023_vm14 = vcmask 261120  }
0x12f7   :  { %v803_v55 = vsel %vm800_vm15, %v802_v53, %v798_v54 }
0x12f8   :  { %v805_v58 = vmul.f32 %v2152_v41, %v803_v55 }
0x12fa   :  { %v2617_v60 = vsel %vm788_vm11, %v803_v55, %v805_v58 }
0x12fb   :  { %v811_v61 = vmul.f32 %v809_v59, %v2617_v60 }
0x12fd   :  { %v812_v62 = vsel %vm115_vm0, %v811_v61, 0.0 }
0x12fe   :  { %v813_v63 = vpack.c.bf16 %v812_v62, %v812_v62 }
0x1300   :  { %2072 = vmatmul.msk.bf16.vlgmr.msra.gmra.mxu2 %vm282_vm10, %v813_v63 }
0x1301   :  { %1136 = vmatpush.bf16.msra.mxu2 %v2414_v9 }
0x1305   :  { %1137 = vmatpush.bf16.msra.mxu2 %v2417_v10 }
0x1309   :  { %1138 = vmatpush.bf16.msra.mxu2 %v2420_v11 }
0x130d   :  { %1139 = vmatpush.bf16.msra.mxu2 %v2423_v12 }
0x1311   :  { %1140 = vmatpush.bf16.msra.mxu2 %v2431_v16 }
0x1383   :  { %v826_v4 = vpop.f32.mrf.mxu2 }
0x1384   :  { %831 = vrot.lane.b32.xlu0 %v826_v4, %s2355_s14 }
0x138b   :  { %v828_v5 = vpop.f32.mrf.mxu2 }
0x13f6   :  { %v832_v6 = vpop.permute.xlu0 %831 }
0x13f7   :  { %v834_v7 = vadd.f32 %v832_v6, %v2583_v47 }
0x13f9   :  { %v839_v14 = vsub.f32 %v834_v7, %v837_v8 }
0x13fb   :  { %v840_v15 = vmul.f32 0.33333334, %v839_v14 }
0x13fd   :  { %842 = vrot.lane.b32.xlu2 %v840_v15, %s2356_s15 }
0x1457   :  { %v843_v9 = vpop.permute.xlu2 %842 }
0x1458   :  { %v2631_v10 = vadd.f32 %v843_v9, %v2569_v22 }
0x145a   :  { %v847_v11 = vand.u32 2147483647, %v2631_v10  ;;  %v846_v31 = vmax.f32 %v2631_v10, 0.0 }
0x145c   :  { %v848_v17 = vsub.f32 0.0, %v847_v11 }
0x145e   :  { %v849_v18 = vmul.f32 1.442695, %v848_v17 }
0x1460   :  { %2155 = vpow2.f32 %v849_v18 }
0x1466   :  { %v2156_v20 = vpop.eup %2155 }
0x1467   :  { %v851_v21 = vadd.f32 1.0, %v2156_v20  ;;  %v854_v25 = vmul.f32 -0.5, %v2156_v20  ;;  %v857_v47 = vand.u32 2147483647, %v2156_v20 }
0x1469   :  { %2157 = vlog2.f32 %v851_v21  ;;  %v855_v26 = vadd.f32 1.0, %v854_v25  ;;  %vm858_vm12 = vcmp.lt.f32.partialorder %v857_v47, 0.0004427343 }
0x146b   :  { %v856_v30 = vmul.f32 %v2156_v20, %v855_v26 }
0x146f   :  { %v2158_v27 = vpop.eup %2157 }
0x1470   :  { %v853_v29 = vmul.f32 0.6931472, %v2158_v27 }
0x1472   :  { %v859_v32 = vsel %vm858_vm12, %v856_v30, %v853_v29 }
0x1473   :  { %v2635_v57 = vadd.f32 %v859_v32, %v846_v31 }
0x1475   :  { %876 = vrot.lane.b32.xlu0 %v2635_v57, %s2346_s0 }
0x14e7   :  { %v877_v35 = vpop.permute.xlu0 %876 }
0x14e8   :  { %v879_v36 = vsel %vm115_vm0, %v875_v33, %v877_v35 }
0x14e9   :  { %v880_v37 = vsel %vm117_vm1, %v879_v36, 0.0 }
0x14ea   :  { %v881_v38 = vpack.c.bf16 %v880_v37, %v880_v37 }
0x14ec   :  { %2073 = vmatmul.msk.bf16.vlgmr.msra.gmra.mxu0 %vm138_vm2, %v881_v38 }
0x14ed   :  { %1163 = vmatpush.bf16.msra.mxu0 %v2446_v23 }
0x14f1   :  { %1164 = vmatpush.bf16.msra.mxu0 %v2449_v24 }
0x14f5   :  { %1165 = vmatpush.bf16.msra.mxu0 %v2455_v28 }
0x1569   :  { %v2645_v41 = vpop.f32.mrf.mxu0 }
0x156a   :  { %v898_v42 = vmax.f32 %v2645_v41, 0.0 }
0x156c   :  { %903 = vrot.lane.b32.xlu2 %v898_v42, %s2350_s3  ;;  %900 = vrot.lane.b32.xlu1 %v898_v42, %s2351_s10 }
0x1571   :  { %v896_v43 = vpop.f32.mrf.mxu0 }
0x15c6   :  { %v904_v46 = vpop.permute.xlu2 %903 }
0x15de   :  { %v901_v13 = vpop.permute.xlu1 %900 }
0x15df   :  { %v906_v48 = vsel %vm163_vm3, 1.0, %v901_v13 }
0x15e0   :  { %v907_v49 = vsel %vm165_vm4, %v906_v48, %v904_v46 }
0x15e1   :  { %v908_v23 = vsel %vm167_vm5, %v907_v49, 0.0 }
0x15e2   :  { %v909_v24 = vpack.c.bf16 %v908_v23, %v908_v23 }
0x15e4   :  { %2074 = vmatmul.msk.bf16.vlgmr.msrb.gmra.mxu3 %vm200_vm6, %v909_v24  ;;  %v2684_v24 = vld [vmem:[#allocation8 + $0x38] sm:$0xff] }
0x15e5   :  { %1217 = vmatpush.bf16.msrb.mxu3 %v2473_v44 }
0x15e9   :  { %1218 = vmatpush.bf16.msrb.mxu3 %v2476_v45 }
0x1667   :  { %v922_v51 = vpop.f32.mrf.mxu3 }
0x1668   :  { %v926_v52 = vmax.f32 %v922_v51, 0.0  ;;  %v2687_v51 = vld [vmem:[#allocation8 + $0x30] sm:$0xff] }
0x166a   :  { %928 = vrot.lane.b32.xlu0 %v926_v52, %s2352_s11  ;;  %v2690_v52 = vld [vmem:[#allocation8 + $0x28] sm:$0xff] }
0x166f   :  { %v924_v53 = vpop.f32.mrf.mxu3 }
0x16dc   :  { %v929_v54 = vpop.permute.xlu0 %928 }
0x16dd   :  { %v931_v55 = vsel %vm163_vm3, 1.0, %v929_v54 }
0x16de   :  { %v932_v58 = vsel %vm223_vm7, %v931_v55, %v929_v54 }
0x16df   :  { %v933_v59 = vsel %vm225_vm8, %v932_v58, 0.0 }
0x16e0   :  { %v934_v61 = vpack.c.bf16 %v933_v59, %v933_v59 }
0x16e2   :  { %2075 = vmatmul.msk.bf16.vlgmr.msra.gmra.mxu1 %vm138_vm2, %v934_v61 }
0x16e3   :  { %1194 = vmatpush.bf16.msra.mxu1 %v2467_v39 }
0x175f   :  { %v947_v62 = vpop.f32.mrf.mxu1 }
0x1760   :  { %v951_v63 = vmax.f32 %v947_v62, 0.0 }
0x1762   :  { %953 = vrot.lane.b32.xlu1 %v951_v63, %s2354_s13 }
0x1767   :  { %v949_v4 = vpop.f32.mrf.mxu1 }
0x176a   :  { %1028 = vrot.lane.b32.xlu1 %v2645_v41, %s2353_s12 }
0x17d4   :  { %v954_v5 = vpop.permute.xlu1 %953 }
0x17d5   :  { %v956_v6 = vadd.f32 %v954_v5, %v951_v63 }
0x17d7   :  { %958 = vrot.lane.b32.xlu2 %v956_v6, %s2352_s11 }
0x17dc   :  { %v1029_v13 = vpop.permute.xlu1 %1028 }
0x1831   :  { %v959_v7 = vpop.permute.xlu2 %958 }
0x1832   :  { %v961_v8 = vsel %vm163_vm3, 1.0, %v959_v7 }
0x1833   :  { %v962_v14 = vsel %vm273_vm9, %v961_v8, 0.0 }
0x1834   :  { %v963_v15 = vpack.c.bf16 %v962_v14, %v962_v14 }
0x1836   :  { %2076 = vmatmul.msk.bf16.vlgmr.msrb.gmra.mxu2 %vm282_vm10, %v963_v15 }
0x1837   :  { %1330 = vmatpush.bf16.msrb.mxu2 %v2401_v1 }
0x183b   :  { %1331 = vmatpush.bf16.msrb.mxu2 %v2405_v2 }
0x183f   :  { %1332 = vmatpush.bf16.msrb.mxu2 %v2408_v3 }
0x18b9   :  { %v976_v39 = vpop.f32.mrf.mxu2 }
0x18ba   :  { %v980_v9 = vmax.f32 %v976_v39, 0.0 }
0x18bc   :  { %982 = vrot.lane.b32.xlu0 %v980_v9, %s2352_s11 }
0x18c1   :  { %v978_v11 = vpop.f32.mrf.mxu2 }
0x18c4   :  { %1056 = vrot.lane.b32.xlu0 %v2631_v10, %s2355_s14 }
0x192e   :  { %v983_v17 = vpop.permute.xlu0 %982 }
0x192f   :  { %v985_v18 = vsel %vm163_vm3, 1.0, %v983_v17 }
0x1930   :  { %v986_v20 = vsel %vm3022_vm13, %v985_v18, 0.0 }
0x1931   :  { %v987_v21 = vpack.c.bf16 %v986_v20, %v986_v20  ;;  %v1095_v20 = vld [vmem:[#allocation7 + $0x20] sm:$0xff] }
0x1933   :  { %2077 = vmatmul.msk.bf16.vlgmr.msrb.gmra.mxu0 %vm3023_vm14, %v987_v21 }
0x1934   :  { %1264 = vmatpush.bf16.msrb.mxu0 %v2488_v56 }
0x1936   :  { %v1057_v59 = vpop.permute.xlu0 %1056 }
0x19b0   :  { %v1000_v1 = vpop.f32.mrf.mxu0 }
0x19b1   :  { %v1004_v2 = vand.u32 2147483647, %v1000_v1  ;;  %vm1008_vm14 = vcmp.ge.f32.partialorder %v1000_v1, 0.0 }
0x19b3   :  { %v1005_v3 = vsub.f32 0.0, %v1004_v2 }
0x19b5   :  { %v1006_v25 = vmul.f32 1.442695, %v1005_v3 }
0x19b7   :  { %2159 = vpow2.f32 %v1006_v25  ;;  %v2710_v25 = vld [vmem:[#allocation8 + $0x50] sm:$0xff] }
0x19b8   :  { %v1002_v26 = vpop.f32.mrf.mxu0 }
0x19b9   :  { %v2713_v26 = vld [vmem:[#allocation8 + $0x48] sm:$0xff] }
0x19bd   :  { %v2160_v47 = vpop.eup %2159 }
0x19be   :  { %v1009_v27 = vadd.f32 1.0, %v2160_v47 }
0x19c0   :  { %2161 = vrcp.f32 %v1009_v27  ;;  %v1021_v32 = vand.u32 2147483648, %v1009_v27  ;;  %v1019_v35 = vand.u32 2147483647, %v1009_v27  ;;  %vm1015_vm11 = vweird.f32 %v1009_v27 }
0x19c2   :  { %v1022_v37 = vor.u32 1.1754944e-38, %v1021_v32  ;;  %vm1020_vm13 = vcmp.eq.f32.partialorder %v1019_v35, 8.507059e+37 }
0x19c6   :  { %v2162_v29 = vpop.eup %2161 }
0x19c7   :  { %v1011_v30 = vmul.f32 %v2162_v29, %v1009_v27  ;;  %vm1016_vm15 = vweird.f32 %v2162_v29 }
0x19c8   :  { %vm1017_vm12 = vmor %vm1015_vm11, %vm1016_vm15  ;;  %vm3024_vm11 = vcmask 138240  }
0x19c9   :  { %v1012_v31 = vsub.f32 1.0, %v1011_v30 }
0x19cb   :  { %v1013_v33 = vmul.f32 %v2162_v29, %v1012_v31 }
0x19cd   :  { %v1014_v36 = vadd.f32 %v2162_v29, %v1013_v33 }
0x19cf   :  { %v1018_v38 = vsel %vm1017_vm12, %v2162_v29, %v1014_v36  ;;  %vm3025_vm12 = vcmask 261120  }
0x19d0   :  { %v1023_v42 = vsel %vm1020_vm13, %v1022_v37, %v1018_v38 }
0x19d1   :  { %v1025_v43 = vmul.f32 %v2160_v47, %v1023_v42 }
0x19d3   :  { %v2679_v46 = vsel %vm1008_vm14, %v1023_v42, %v1025_v43 }
0x19d4   :  { %v1031_v48 = vmul.f32 %v1029_v13, %v2679_v46 }
0x19d6   :  { %v1032_v49 = vsel %vm115_vm0, %v1031_v48, 0.0 }
0x19d7   :  { %v1033_v23 = vpack.c.bf16 %v1032_v49, %v1032_v49 }
0x19d9   :  { %2078 = vmatmul.msk.bf16.vlgmr.msrb.gmra.mxu1 %vm282_vm10, %v1033_v23  ;;  %v2733_v23 = vld [vmem:[#allocation8 + $0x58] sm:$0xff] }
0x19da   :  { %1356 = vmatpush.bf16.msrb.mxu1 %v2684_v24 }
0x19de   :  { %1357 = vmatpush.bf16.msrb.mxu1 %v2687_v51 }
0x19e2   :  { %1358 = vmatpush.bf16.msrb.mxu1 %v2690_v52 }
0x19e6   :  { %1359 = vmatpush.bf16.msrb.mxu1 %v2423_v12 }
0x19ea   :  { %1360 = vmatpush.bf16.msrb.mxu1 %v2431_v16 }
0x1a56   :  { %v1046_v53 = vpop.f32.mrf.mxu1 }
0x1a57   :  { %1051 = vrot.lane.b32.xlu2 %v1046_v53, %s2355_s14 }
0x1a5e   :  { %v1048_v54 = vpop.f32.mrf.mxu1 }
0x1ab1   :  { %v1052_v55 = vpop.permute.xlu2 %1051 }
0x1ab2   :  { %v1054_v58 = vadd.f32 %v1052_v55, %v2645_v41 }
0x1ab4   :  { %v1059_v61 = vsub.f32 %v1054_v58, %v1057_v59 }
0x1ab6   :  { %v1060_v62 = vmul.f32 0.33333334, %v1059_v61 }
0x1ab8   :  { %1062 = vrot.lane.b32.xlu1 %v1060_v62, %s2356_s15 }
0x1b2a   :  { %v1063_v63 = vpop.permute.xlu1 %1062 }
0x1b2b   :  { %v2699_v4 = vadd.f32 %v1063_v63, %v2631_v10  ;;  %v2743_v63 = vld [vmem:[#allocation8 + $0x10] sm:$0xff] }
0x1b2d   :  { %v1067_v12 = vand.u32 2147483647, %v2699_v4  ;;  %v1066_v11 = vmax.f32 %v2699_v4, 0.0 }
0x1b2f   :  { %v1068_v5 = vsub.f32 0.0, %v1067_v12  ;;  %v2746_v12 = vld [vmem:[#allocation8 + $0x8] sm:$0xff] }
0x1b31   :  { %v1069_v16 = vmul.f32 1.442695, %v1068_v5  ;;  %v2749_v5 = vld [vmem:[#allocation8] sm:$0xff] }
0x1b33   :  { %2163 = vpow2.f32 %v1069_v16 }
0x1b39   :  { %v2164_v6 = vpop.eup %2163 }
0x1b3a   :  { %v1071_v7 = vadd.f32 1.0, %v2164_v6  ;;  %v1074_v8 = vmul.f32 -0.5, %v2164_v6  ;;  %v1077_v41 = vand.u32 2147483647, %v2164_v6 }
0x1b3c   :  { %2165 = vlog2.f32 %v1071_v7  ;;  %v1075_v14 = vadd.f32 1.0, %v1074_v8  ;;  %vm1078_vm15 = vcmp.lt.f32.partialorder %v1077_v41, 0.0004427343 }
0x1b3e   :  { %v1076_v9 = vmul.f32 %v2164_v6, %v1075_v14 }
0x1b42   :  { %v2166_v15 = vpop.eup %2165 }
0x1b43   :  { %v1073_v39 = vmul.f32 0.6931472, %v2166_v15 }
0x1b45   :  { %v1079_v17 = vsel %vm1078_vm15, %v1076_v9, %v1073_v39 }
0x1b46   :  { %v2703_v18 = vadd.f32 %v1079_v17, %v1066_v11 }
0x1b48   :  { %1096 = vrot.lane.b32.xlu2 %v2703_v18, %s2346_s0 }
0x1ba2   :  { %v1097_v21 = vpop.permute.xlu2 %1096 }
0x1ba3   :  { %v1099_v1 = vsel %vm115_vm0, %v1095_v20, %v1097_v21 }
0x1ba4   :  { %v1100_v2 = vsel %vm117_vm1, %v1099_v1, 0.0 }
0x1ba5   :  { %v1101_v3 = vpack.c.bf16 %v1100_v2, %v1100_v2 }
0x1ba7   :  { %2079 = vmatmul.msk.bf16.vlgmr.msra.gmra.mxu3 %vm138_vm2, %v1101_v3 }
0x1ba8   :  { %1383 = vmatpush.bf16.msra.mxu3 %v2710_v25 }
0x1bac   :  { %1384 = vmatpush.bf16.msra.mxu3 %v2713_v26 }
0x1bb0   :  { %1385 = vmatpush.bf16.msra.mxu3 %v2455_v28 }
0x1c2a   :  { %v2717_v47 = vpop.f32.mrf.mxu3 }
0x1c2b   :  { %v1118_v27 = vmax.f32 %v2717_v47, 0.0 }
0x1c2d   :  { %1123 = vrot.lane.b32.xlu1 %v1118_v27, %s2350_s3  ;;  %1120 = vrot.lane.b32.xlu0 %v1118_v27, %s2351_s10 }
0x1c32   :  { %v1116_v29 = vpop.f32.mrf.mxu3 }
0x1c9f   :  { %v1124_v30 = vpop.permute.xlu1 %1123  ;;  %v1121_v31 = vpop.permute.xlu0 %1120 }
0x1ca0   :  { %v1126_v32 = vsel %vm163_vm3, 1.0, %v1121_v31 }
0x1ca1   :  { %v1127_v33 = vsel %vm165_vm4, %v1126_v32, %v1124_v30 }
0x1ca2   :  { %v1128_v35 = vsel %vm167_vm5, %v1127_v33, 0.0 }
0x1ca3   :  { %v1129_v36 = vpack.c.bf16 %v1128_v35, %v1128_v35 }
0x1ca5   :  { %2080 = vmatmul.msk.bf16.vlgmr.msra.gmra.mxu2 %vm200_vm6, %v1129_v36 }
0x1ca6   :  { %1437 = vmatpush.bf16.msra.mxu2 %v2473_v44 }
0x1caa   :  { %1438 = vmatpush.bf16.msra.mxu2 %v2476_v45 }
0x1d28   :  { %v1142_v28 = vpop.f32.mrf.mxu2 }
0x1d29   :  { %v1146_v37 = vmax.f32 %v1142_v28, 0.0 }
0x1d2b   :  { %1148 = vrot.lane.b32.xlu2 %v1146_v37, %s2352_s11 }
0x1d30   :  { %v1144_v38 = vpop.f32.mrf.mxu2 }
0x1d85   :  { %v1149_v42 = vpop.permute.xlu2 %1148 }
0x1d86   :  { %v1151_v43 = vsel %vm163_vm3, 1.0, %v1149_v42 }
0x1d87   :  { %v1152_v13 = vsel %vm223_vm7, %v1151_v43, %v1149_v42 }
0x1d88   :  { %v1153_v48 = vsel %vm225_vm8, %v1152_v13, 0.0  ;;  %v2767_v13 = vld [vmem:[#allocation8 + $0x20] sm:$0xff] }
0x1d89   :  { %v1154_v49 = vpack.c.bf16 %v1153_v48, %v1153_v48  ;;  %v2770_v48 = vld [vmem:[#allocation8 + $0x18] sm:$0xff] }
0x1d8b   :  { %2081 = vmatmul.msk.bf16.vlgmr.msra.gmra.mxu0 %vm138_vm2, %v1154_v49 }
0x1d8c   :  { %1414 = vmatpush.bf16.msra.mxu0 %v2733_v23 }
0x1e08   :  { %v1167_v44 = vpop.f32.mrf.mxu0 }
0x1e09   :  { %v1171_v45 = vmax.f32 %v1167_v44, 0.0 }
0x1e0b   :  { %1173 = vrot.lane.b32.xlu0 %v1171_v45, %s2354_s13 }
0x1e10   :  { %v1169_v53 = vpop.f32.mrf.mxu0 }
0x1e13   :  { %1248 = vrot.lane.b32.xlu0 %v2717_v47, %s2353_s12 }
0x1e7d   :  { %v1174_v54 = vpop.permute.xlu0 %1173 }
0x1e7e   :  { %v1176_v55 = vadd.f32 %v1174_v54, %v1171_v45 }
0x1e80   :  { %1178 = vrot.lane.b32.xlu1 %v1176_v55, %s2352_s11 }
0x1e85   :  { %v1249_v28 = vpop.permute.xlu0 %1248 }
0x1ef2   :  { %v1179_v58 = vpop.permute.xlu1 %1178 }
0x1ef3   :  { %v1181_v59 = vsel %vm163_vm3, 1.0, %v1179_v58 }
0x1ef4   :  { %v1182_v61 = vsel %vm273_vm9, %v1181_v59, 0.0 }
0x1ef5   :  { %v1183_v62 = vpack.c.bf16 %v1182_v61, %v1182_v61 }
0x1ef7   :  { %2082 = vmatmul.msk.bf16.vlgmr.msra.gmra.mxu1 %vm282_vm10, %v1183_v62 }
0x1ef8   :  { %1550 = vmatpush.bf16.msra.mxu1 %v2743_v63 }
0x1efc   :  { %1551 = vmatpush.bf16.msra.mxu1 %v2746_v12 }
0x1f00   :  { %1552 = vmatpush.bf16.msra.mxu1 %v2749_v5 }
0x1f74   :  { %v1196_v16 = vpop.f32.mrf.mxu1 }
0x1f75   :  { %v1200_v6 = vmax.f32 %v1196_v16, 0.0 }
0x1f77   :  { %1202 = vrot.lane.b32.xlu2 %v1200_v6, %s2352_s11 }
0x1f7c   :  { %v1198_v7 = vpop.f32.mrf.mxu1 }
0x1f7f   :  { %1276 = vrot.lane.b32.xlu2 %v2699_v4, %s2355_s14 }
0x1fd1   :  { %v1203_v8 = vpop.permute.xlu2 %1202 }
0x1fd2   :  { %v1205_v14 = vsel %vm163_vm3, 1.0, %v1203_v8 }
0x1fd3   :  { %v1206_v41 = vsel %vm3024_vm11, %v1205_v14, 0.0 }
0x1fd4   :  { %v1207_v15 = vpack.c.bf16 %v1206_v41, %v1206_v41 }
0x1fd6   :  { %2083 = vmatmul.msk.bf16.vlgmr.msrb.gmra.mxu3 %vm3025_vm12, %v1207_v15 }
0x1fd7   :  { %1484 = vmatpush.bf16.msrb.mxu3 %v2488_v56 }
0x1fd9   :  { %v1277_v54 = vpop.permute.xlu2 %1276 }
0x2059   :  { %v1220_v39 = vpop.f32.mrf.mxu3 }
0x205a   :  { %v1224_v9 = vand.u32 2147483647, %v1220_v39  ;;  %vm1228_vm12 = vcmp.ge.f32.partialorder %v1220_v39, 0.0 }
0x205c   :  { %v1225_v11 = vsub.f32 0.0, %v1224_v9 }
0x205e   :  { %v1226_v17 = vmul.f32 1.442695, %v1225_v11 }
0x2060   :  { %2167 = vpow2.f32 %v1226_v17 }
0x2061   :  { %v1222_v20 = vpop.f32.mrf.mxu3 }
0x2066   :  { %v2168_v21 = vpop.eup %2167 }
0x2067   :  { %v1229_v1 = vadd.f32 1.0, %v2168_v21 }
0x2069   :  { %2169 = vrcp.f32 %v1229_v1  ;;  %v1241_v29 = vand.u32 2147483648, %v1229_v1  ;;  %v1239_v31 = vand.u32 2147483647, %v1229_v1  ;;  %vm1235_vm14 = vweird.f32 %v1229_v1 }
0x206b   :  { %v1242_v56 = vor.u32 1.1754944e-38, %v1241_v29  ;;  %vm1240_vm11 = vcmp.eq.f32.partialorder %v1239_v31, 8.507059e+37  ;;  %v2790_v29 = vld [vmem:[#allocation8 + $0x40] sm:$0xff] }
0x206f   :  { %v2170_v2 = vpop.eup %2169 }
0x2070   :  { %v1231_v3 = vmul.f32 %v2170_v2, %v1229_v1  ;;  %vm1236_vm13 = vweird.f32 %v2170_v2 }
0x2071   :  { %vm1237_vm15 = vmor %vm1235_vm14, %vm1236_vm13  ;;  %vm3026_vm14 = vcmask 138240  }
0x2072   :  { %v1232_v27 = vsub.f32 1.0, %v1231_v3 }
0x2074   :  { %v1233_v30 = vmul.f32 %v2170_v2, %v1232_v27 }
0x2076   :  { %v1234_v32 = vadd.f32 %v2170_v2, %v1233_v30 }
0x2078   :  { %v1238_v33 = vsel %vm1237_vm15, %v2170_v2, %v1234_v32  ;;  %vm3027_vm15 = vcmask 261120  }
0x2079   :  { %v1243_v35 = vsel %vm1240_vm11, %v1242_v56, %v1238_v33 }
0x207a   :  { %v1245_v36 = vmul.f32 %v2168_v21, %v1243_v35  ;;  %v1315_v21 = vld [vmem:[#allocation7 + $0x28] sm:$0xff] }
0x207c   :  { %v2759_v37 = vsel %vm1228_vm12, %v1243_v35, %v1245_v36 }
0x207d   :  { %v1251_v38 = vmul.f32 %v1249_v28, %v2759_v37 }
0x207f   :  { %v1252_v42 = vsel %vm115_vm0, %v1251_v38, 0.0 }
0x2080   :  { %v1253_v43 = vpack.c.bf16 %v1252_v42, %v1252_v42  ;;  %v2802_v42 = vld [vmem:[#allocation8 + $0x68] sm:$0xff] }
0x2082   :  { %2084 = vmatmul.msk.bf16.vlgmr.msrb.gmra.mxu0 %vm282_vm10, %v1253_v43  ;;  %v2805_v43 = vld [vmem:[#allocation8 + $0x60] sm:$0xff] }
0x2083   :  { %1576 = vmatpush.bf16.msrb.mxu0 %v2684_v24 }
0x2087   :  { %1577 = vmatpush.bf16.msrb.mxu0 %v2687_v51 }
0x208b   :  { %1578 = vmatpush.bf16.msrb.mxu0 %v2690_v52 }
0x208f   :  { %1579 = vmatpush.bf16.msrb.mxu0 %v2767_v13 }
0x2093   :  { %1580 = vmatpush.bf16.msrb.mxu0 %v2770_v48 }
0x20ff   :  { %v1266_v49 = vpop.f32.mrf.mxu0 }
0x2100   :  { %1271 = vrot.lane.b32.xlu1 %v1266_v49, %s2355_s14 }
0x2107   :  { %v1268_v44 = vpop.f32.mrf.mxu0 }
0x2172   :  { %v1272_v45 = vpop.permute.xlu1 %1271 }
0x2173   :  { %v1274_v53 = vadd.f32 %v1272_v45, %v2717_v47 }
0x2175   :  { %v1279_v55 = vsub.f32 %v1274_v53, %v1277_v54 }
0x2177   :  { %v1280_v58 = vmul.f32 0.33333334, %v1279_v55 }
0x2179   :  { %1282 = vrot.lane.b32.xlu0 %v1280_v58, %s2356_s15 }
0x21eb   :  { %v1283_v59 = vpop.permute.xlu0 %1282 }
0x21ec   :  { %v2777_v61 = vadd.f32 %v1283_v59, %v2699_v4 }
0x21ee   :  { %v1287_v62 = vand.u32 2147483647, %v2777_v61  ;;  %v1286_v11 = vmax.f32 %v2777_v61, 0.0 }
0x21f0   :  { %v1288_v16 = vsub.f32 0.0, %v1287_v62 }
0x21f2   :  { %v1289_v6 = vmul.f32 1.442695, %v1288_v16 }
0x21f4   :  { %2171 = vpow2.f32 %v1289_v6 }
0x21fa   :  { %v2172_v7 = vpop.eup %2171 }
0x21fb   :  { %v1291_v8 = vadd.f32 1.0, %v2172_v7  ;;  %v1294_v14 = vmul.f32 -0.5, %v2172_v7  ;;  %v1297_v47 = vand.u32 2147483647, %v2172_v7 }
0x21fd   :  { %2173 = vlog2.f32 %v1291_v8  ;;  %v1295_v41 = vadd.f32 1.0, %v1294_v14  ;;  %vm1298_vm13 = vcmp.lt.f32.partialorder %v1297_v47, 0.0004427343 }
0x21ff   :  { %v1296_v9 = vmul.f32 %v2172_v7, %v1295_v41 }
0x2203   :  { %v2174_v15 = vpop.eup %2173 }
0x2204   :  { %v1293_v39 = vmul.f32 0.6931472, %v2174_v15 }
0x2206   :  { %v1299_v17 = vsel %vm1298_vm13, %v1296_v9, %v1293_v39 }
0x2207   :  { %v2781_v20 = vadd.f32 %v1299_v17, %v1286_v11 }
0x2209   :  { %1316 = vrot.lane.b32.xlu1 %v2781_v20, %s2346_s0 }
0x227b   :  { %v1317_v1 = vpop.permute.xlu1 %1316 }
0x227c   :  { %v1319_v2 = vsel %vm115_vm0, %v1315_v21, %v1317_v1 }
0x227d   :  { %v1320_v3 = vsel %vm117_vm1, %v1319_v2, 0.0 }
0x227e   :  { %v1321_v27 = vpack.c.bf16 %v1320_v3, %v1320_v3 }
0x2280   :  { %2085 = vmatmul.msk.bf16.vlgmr.msrb.gmra.mxu2 %vm138_vm2, %v1321_v27 }
0x2281   :  { %1603 = vmatpush.bf16.msrb.mxu2 %v2710_v25 }
0x2285   :  { %1604 = vmatpush.bf16.msrb.mxu2 %v2713_v26 }
0x2289   :  { %1605 = vmatpush.bf16.msrb.mxu2 %v2790_v29 }
0x2303   :  { %v2793_v30 = vpop.f32.mrf.mxu2 }
0x2304   :  { %v1338_v31 = vmax.f32 %v2793_v30, 0.0 }
0x2306   :  { %1343 = vrot.lane.b32.xlu0 %v1338_v31, %s2350_s3  ;;  %1340 = vrot.lane.b32.xlu2 %v1338_v31, %s2351_s10 }
0x230b   :  { %v1336_v32 = vpop.f32.mrf.mxu2 }
0x2360   :  { %v1341_v56 = vpop.permute.xlu2 %1340 }
0x2361   :  { %v1346_v33 = vsel %vm163_vm3, 1.0, %v1341_v56 }
0x2378   :  { %v1344_v35 = vpop.permute.xlu0 %1343 }
0x2379   :  { %v1347_v36 = vsel %vm165_vm4, %v1346_v33, %v1344_v35 }
0x237a   :  { %v1348_v28 = vsel %vm167_vm5, %v1347_v36, 0.0 }
0x237b   :  { %v1349_v38 = vpack.c.bf16 %v1348_v28, %v1348_v28 }
0x237d   :  { %2086 = vmatmul.msk.bf16.vlgmr.msrb.gmra.mxu1 %vm200_vm6, %v1349_v38 }
0x237e   :  { %1657 = vmatpush.bf16.msrb.mxu1 %v2802_v42 }
0x2382   :  { %1658 = vmatpush.bf16.msrb.mxu1 %v2805_v43 }
0x23fa   :  { %v1362_v49 = vpop.f32.mrf.mxu1 }
0x23fb   :  { %v1366_v44 = vmax.f32 %v1362_v49, 0.0 }
0x23fd   :  { %1368 = vrot.lane.b32.xlu1 %v1366_v44, %s2352_s11 }
0x2402   :  { %v1364_v45 = vpop.f32.mrf.mxu1 }
0x246f   :  { %v1369_v53 = vpop.permute.xlu1 %1368 }
0x2470   :  { %v1371_v54 = vsel %vm163_vm3, 1.0, %v1369_v53 }
0x2471   :  { %v1372_v55 = vsel %vm223_vm7, %v1371_v54, %v1369_v53 }
0x2472   :  { %v1373_v58 = vsel %vm225_vm8, %v1372_v55, 0.0 }
0x2473   :  { %v1374_v59 = vpack.c.bf16 %v1373_v58, %v1373_v58 }
0x2475   :  { %2087 = vmatmul.msk.bf16.vlgmr.msra.gmra.mxu3 %vm138_vm2, %v1374_v59 }
0x2476   :  { %1634 = vmatpush.bf16.msra.mxu3 %v2733_v23 }
0x24f8   :  { %v1387_v62 = vpop.f32.mrf.mxu3 }
0x24f9   :  { %v1391_v16 = vmax.f32 %v1387_v62, 0.0 }
0x24fb   :  { %1393 = vrot.lane.b32.xlu2 %v1391_v16, %s2354_s13 }
0x2500   :  { %v1389_v6 = vpop.f32.mrf.mxu3 }
0x2503   :  { %1468 = vrot.lane.b32.xlu2 %v2793_v30, %s2353_s12 }
0x2555   :  { %v1394_v7 = vpop.permute.xlu2 %1393 }
0x2556   :  { %v1396_v8 = vadd.f32 %v1394_v7, %v1391_v16 }
0x2558   :  { %1398 = vrot.lane.b32.xlu0 %v1396_v8, %s2352_s11 }
0x255d   :  { %v1469_v58 = vpop.permute.xlu2 %1468 }
0x25ca   :  { %v1399_v14 = vpop.permute.xlu0 %1398 }
0x25cb   :  { %v1401_v41 = vsel %vm163_vm3, 1.0, %v1399_v14 }
0x25cc   :  { %v1402_v47 = vsel %vm273_vm9, %v1401_v41, 0.0 }
0x25cd   :  { %v1403_v15 = vpack.c.bf16 %v1402_v47, %v1402_v47 }
0x25cf   :  { %2088 = vmatmul.msk.bf16.vlgmr.msra.gmra.mxu0 %vm282_vm10, %v1403_v15 }
0x25d0   :  { %1770 = vmatpush.bf16.msra.mxu0 %v2743_v63  ;;  %v2830_v63 = vld [vmem:[#allocation8 + $0x70] sm:$0xff] }
0x25d4   :  { %1771 = vmatpush.bf16.msra.mxu0 %v2746_v12 }
0x25d8   :  { %1772 = vmatpush.bf16.msra.mxu0 %v2749_v5 }
0x264c   :  { %v1416_v39 = vpop.f32.mrf.mxu0 }
0x264d   :  { %v1420_v9 = vmax.f32 %v1416_v39, 0.0 }
0x264f   :  { %1422 = vrot.lane.b32.xlu1 %v1420_v9, %s2352_s11 }
0x2654   :  { %v1418_v11 = vpop.f32.mrf.mxu0 }
0x2657   :  { %1496 = vrot.lane.b32.xlu1 %v2777_v61, %s2355_s14 }
0x26c1   :  { %v1423_v17 = vpop.permute.xlu1 %1422 }
0x26c2   :  { %v1425_v21 = vsel %vm163_vm3, 1.0, %v1423_v17 }
0x26c3   :  { %v1426_v1 = vsel %vm3026_vm14, %v1425_v21, 0.0 }
0x26c4   :  { %v1427_v2 = vpack.c.bf16 %v1426_v1, %v1426_v1 }
0x26c6   :  { %2089 = vmatmul.msk.bf16.vlgmr.msra.gmra.mxu2 %vm3027_vm15, %v1427_v2 }
0x26c7   :  { %1704 = vmatpush.bf16.msra.mxu2 %v2830_v63 }
0x26c9   :  { %v1497_v47 = vpop.permute.xlu1 %1496 }
0x2749   :  { %v1440_v12 = vpop.f32.mrf.mxu2 }
0x274a   :  { %v1444_v5 = vand.u32 2147483647, %v1440_v12  ;;  %vm1448_vm15 = vcmp.ge.f32.partialorder %v1440_v12, 0.0 }
0x274c   :  { %v1445_v3 = vsub.f32 0.0, %v1444_v5 }
0x274e   :  { %v1446_v27 = vmul.f32 1.442695, %v1445_v3 }
0x2750   :  { %2175 = vpow2.f32 %v1446_v27 }
0x2751   :  { %v1442_v31 = vpop.f32.mrf.mxu2 }
0x2752   :  { %v1535_v31 = vld [vmem:[#allocation7 + $0x30] sm:$0xff] }
0x2756   :  { %v2176_v32 = vpop.eup %2175 }
0x2757   :  { %v1449_v56 = vadd.f32 1.0, %v2176_v32 }
0x2759   :  { %2177 = vrcp.f32 %v1449_v56  ;;  %v1461_v28 = vand.u32 2147483648, %v1449_v56  ;;  %v1459_v49 = vand.u32 2147483647, %v1449_v56  ;;  %vm1455_vm12 = vweird.f32 %v1449_v56 }
0x275b   :  { %v1462_v45 = vor.u32 1.1754944e-38, %v1461_v28  ;;  %vm1460_vm14 = vcmp.eq.f32.partialorder %v1459_v49, 8.507059e+37 }
0x275f   :  { %v2178_v33 = vpop.eup %2177 }
0x2760   :  { %v1451_v35 = vmul.f32 %v2178_v33, %v1449_v56  ;;  %vm1456_vm11 = vweird.f32 %v2178_v33 }
0x2761   :  { %vm1457_vm13 = vmor %vm1455_vm12, %vm1456_vm11  ;;  %vm3028_vm12 = vcmask 138240  }
0x2762   :  { %v1452_v36 = vsub.f32 1.0, %v1451_v35 }
0x2764   :  { %v1453_v38 = vmul.f32 %v2178_v33, %v1452_v36 }
0x2766   :  { %v1454_v44 = vadd.f32 %v2178_v33, %v1453_v38 }
0x2768   :  { %v1458_v53 = vsel %vm1457_vm13, %v2178_v33, %v1454_v44  ;;  %vm3029_vm13 = vcmask 261120  }
0x2769   :  { %v1463_v54 = vsel %vm1460_vm14, %v1462_v45, %v1458_v53 }
0x276a   :  { %v1465_v55 = vmul.f32 %v2176_v32, %v1463_v54 }
0x276c   :  { %v2833_v59 = vsel %vm1448_vm15, %v1463_v54, %v1465_v55 }
0x276d   :  { %v1471_v62 = vmul.f32 %v1469_v58, %v2833_v59 }
0x276f   :  { %v1472_v16 = vsel %vm115_vm0, %v1471_v62, 0.0 }
0x2770   :  { %v1473_v6 = vpack.c.bf16 %v1472_v16, %v1472_v16 }
0x2772   :  { %2090 = vmatmul.msk.bf16.vlgmr.msrb.gmra.mxu3 %vm282_vm10, %v1473_v6 }
0x2773   :  { %1796 = vmatpush.bf16.msrb.mxu3 %v2684_v24 }
0x2777   :  { %1797 = vmatpush.bf16.msrb.mxu3 %v2687_v51 }
0x277b   :  { %1798 = vmatpush.bf16.msrb.mxu3 %v2690_v52 }
0x277f   :  { %1799 = vmatpush.bf16.msrb.mxu3 %v2767_v13 }
0x2783   :  { %1800 = vmatpush.bf16.msrb.mxu3 %v2770_v48 }
0x27f5   :  { %v1486_v7 = vpop.f32.mrf.mxu3 }
0x27f6   :  { %1491 = vrot.lane.b32.xlu0 %v1486_v7, %s2355_s14 }
0x27fd   :  { %v1488_v8 = vpop.f32.mrf.mxu3 }
0x2868   :  { %v1492_v14 = vpop.permute.xlu0 %1491 }
0x2869   :  { %v1494_v41 = vadd.f32 %v1492_v14, %v2793_v30 }
0x286b   :  { %v1499_v15 = vsub.f32 %v1494_v41, %v1497_v47 }
0x286d   :  { %v1500_v39 = vmul.f32 0.33333334, %v1499_v15 }
0x286f   :  { %1502 = vrot.lane.b32.xlu2 %v1500_v39, %s2356_s15 }
0x28c9   :  { %v1503_v24 = vpop.permute.xlu2 %1502 }
0x28ca   :  { %v2847_v51 = vadd.f32 %v1503_v24, %v2777_v61 }
0x28cc   :  { %v1507_v52 = vand.u32 2147483647, %v2847_v51  ;;  %v1506_v5 = vmax.f32 %v2847_v51, 0.0 }
0x28ce   :  { %v1508_v13 = vsub.f32 0.0, %v1507_v52 }
0x28d0   :  { %v1509_v48 = vmul.f32 1.442695, %v1508_v13 }
0x28d2   :  { %2179 = vpow2.f32 %v1509_v48 }
0x28d8   :  { %v2180_v9 = vpop.eup %2179 }
0x28d9   :  { %v1511_v11 = vadd.f32 1.0, %v2180_v9  ;;  %v1514_v17 = vmul.f32 -0.5, %v2180_v9  ;;  %v1517_v30 = vand.u32 2147483647, %v2180_v9 }
0x28db   :  { %2181 = vlog2.f32 %v1511_v11  ;;  %v1515_v21 = vadd.f32 1.0, %v1514_v17  ;;  %vm1518_vm11 = vcmp.lt.f32.partialorder %v1517_v30, 0.0004427343 }
0x28dd   :  { %v1516_v12 = vmul.f32 %v2180_v9, %v1515_v21 }
0x28e1   :  { %v2182_v1 = vpop.eup %2181 }
0x28e2   :  { %v1513_v2 = vmul.f32 0.6931472, %v2182_v1 }
0x28e4   :  { %v1519_v3 = vsel %vm1518_vm11, %v1516_v12, %v1513_v2 }
0x28e5   :  { %v2851_v27 = vadd.f32 %v1519_v3, %v1506_v5 }
0x28e7   :  { %1536 = vrot.lane.b32.xlu0 %v2851_v27, %s2346_s0 }
0x2959   :  { %v1537_v32 = vpop.permute.xlu0 %1536 }
0x295a   :  { %v1539_v56 = vsel %vm115_vm0, %v1535_v31, %v1537_v32 }
0x295b   :  { %v1540_v33 = vsel %vm117_vm1, %v1539_v56, 0.0 }
0x295c   :  { %v1541_v35 = vpack.c.bf16 %v1540_v33, %v1540_v33 }
0x295e   :  { %2091 = vmatmul.msk.bf16.vlgmr.msra.gmra.mxu1 %vm138_vm2, %v1541_v35 }
0x295f   :  { %1823 = vmatpush.bf16.msra.mxu1 %v2710_v25 }
0x2963   :  { %1824 = vmatpush.bf16.msra.mxu1 %v2713_v26 }
0x2967   :  { %1825 = vmatpush.bf16.msra.mxu1 %v2790_v29 }
0x29db   :  { %v2861_v36 = vpop.f32.mrf.mxu1 }
0x29dc   :  { %v1558_v28 = vmax.f32 %v2861_v36, 0.0 }
0x29de   :  { %1563 = vrot.lane.b32.xlu2 %v1558_v28, %s2350_s3  ;;  %1560 = vrot.lane.b32.xlu1 %v1558_v28, %s2351_s10 }
0x29e3   :  { %v1556_v38 = vpop.f32.mrf.mxu1 }
0x2a38   :  { %v1564_v44 = vpop.permute.xlu2 %1563 }
0x2a50   :  { %v1561_v49 = vpop.permute.xlu1 %1560 }
0x2a51   :  { %v1566_v45 = vsel %vm163_vm3, 1.0, %v1561_v49 }
0x2a52   :  { %v1567_v53 = vsel %vm165_vm4, %v1566_v45, %v1564_v44 }
0x2a53   :  { %v1568_v25 = vsel %vm167_vm5, %v1567_v53, 0.0 }
0x2a54   :  { %v1569_v26 = vpack.c.bf16 %v1568_v25, %v1568_v25 }
0x2a56   :  { %2092 = vmatmul.msk.bf16.vlgmr.msrb.gmra.mxu0 %vm200_vm6, %v1569_v26 }
0x2a57   :  { %1877 = vmatpush.bf16.msrb.mxu0 %v2802_v42 }
0x2a5b   :  { %1878 = vmatpush.bf16.msrb.mxu0 %v2805_v43 }
0x2ad3   :  { %v1582_v29 = vpop.f32.mrf.mxu0 }
0x2ad4   :  { %v1586_v54 = vmax.f32 %v1582_v29, 0.0 }
0x2ad6   :  { %1588 = vrot.lane.b32.xlu0 %v1586_v54, %s2352_s11 }
0x2adb   :  { %v1584_v55 = vpop.f32.mrf.mxu0 }
0x2b48   :  { %v1589_v58 = vpop.permute.xlu0 %1588 }
0x2b49   :  { %v1591_v62 = vsel %vm163_vm3, 1.0, %v1589_v58 }
0x2b4a   :  { %v1592_v16 = vsel %vm223_vm7, %v1591_v62, %v1589_v58 }
0x2b4b   :  { %v1593_v6 = vsel %vm225_vm8, %v1592_v16, 0.0 }
0x2b4c   :  { %v1594_v7 = vpack.c.bf16 %v1593_v6, %v1593_v6 }
0x2b4e   :  { %2093 = vmatmul.msk.bf16.vlgmr.msrb.gmra.mxu2 %vm138_vm2, %v1594_v7 }
0x2b4f   :  { %1854 = vmatpush.bf16.msrb.mxu2 %v2733_v23 }
0x2bd1   :  { %v1607_v42 = vpop.f32.mrf.mxu2 }
0x2bd2   :  { %v1611_v8 = vmax.f32 %v1607_v42, 0.0 }
0x2bd4   :  { %1613 = vrot.lane.b32.xlu1 %v1611_v8, %s2354_s13 }
0x2bd9   :  { %v1609_v43 = vpop.f32.mrf.mxu2 }
0x2bdc   :  { %1688 = vrot.lane.b32.xlu1 %v2861_v36, %s2353_s12 }
0x2c46   :  { %v1614_v14 = vpop.permute.xlu1 %1613 }
0x2c47   :  { %v1616_v41 = vadd.f32 %v1614_v14, %v1611_v8 }
0x2c49   :  { %1618 = vrot.lane.b32.xlu2 %v1616_v41, %s2352_s11 }
0x2c4e   :  { %v1689_v53 = vpop.permute.xlu1 %1688 }
0x2ca3   :  { %v1619_v47 = vpop.permute.xlu2 %1618 }
0x2ca4   :  { %v1621_v15 = vsel %vm163_vm3, 1.0, %v1619_v47 }
0x2ca5   :  { %v1622_v39 = vsel %vm273_vm9, %v1621_v15, 0.0 }
0x2ca6   :  { %v1623_v24 = vpack.c.bf16 %v1622_v39, %v1622_v39 }
0x2ca8   :  { %2094 = vmatmul.msk.bf16.vlgmr.msra.gmra.mxu3 %vm282_vm10, %v1623_v24 }
0x2d2b   :  { %v1636_v23 = vpop.f32.mrf.mxu3 }
0x2d2c   :  { %v1640_v52 = vmax.f32 %v1636_v23, 0.0 }
0x2d2e   :  { %1642 = vrot.lane.b32.xlu0 %v1640_v52, %s2352_s11 }
0x2d33   :  { %v1638_v13 = vpop.f32.mrf.mxu3 }
0x2d36   :  { %1716 = vrot.lane.b32.xlu0 %v2847_v51, %s2355_s14 }
0x2da0   :  { %v1643_v48 = vpop.permute.xlu0 %1642 }
0x2da1   :  { %v1645_v9 = vsel %vm163_vm3, 1.0, %v1643_v48 }
0x2da2   :  { %v1646_v11 = vsel %vm3028_vm12, %v1645_v9, 0.0 }
0x2da3   :  { %v1647_v17 = vpack.c.bf16 %v1646_v11, %v1646_v11 }
0x2da5   :  { %2095 = vmatmul.msk.bf16.vlgmr.msrb.gmra.mxu1 %vm3029_vm13, %v1647_v17 }
0x2da6   :  { %1924 = vmatpush.bf16.msrb.mxu1 %v2830_v63 }
0x2da8   :  { %v1717_v6 = vpop.permute.xlu0 %1716 }
0x2e22   :  { %v1660_v21 = vpop.f32.mrf.mxu1 }
0x2e23   :  { %v1664_v30 = vand.u32 2147483647, %v1660_v21  ;;  %vm1668_vm13 = vcmp.ge.f32.partialorder %v1660_v21, 0.0  ;;  %v1755_v21 = vld [vmem:[#allocation7 + $0x38] sm:$0xff] }
0x2e25   :  { %v1665_v1 = vsub.f32 0.0, %v1664_v30 }
0x2e27   :  { %v1666_v2 = vmul.f32 1.442695, %v1665_v1 }
0x2e29   :  { %2183 = vpow2.f32 %v1666_v2 }
0x2e2a   :  { %v1662_v12 = vpop.f32.mrf.mxu1 }
0x2e2f   :  { %v2184_v5 = vpop.eup %2183 }
0x2e30   :  { %v1669_v3 = vadd.f32 1.0, %v2184_v5 }
0x2e32   :  { %2185 = vrcp.f32 %v1669_v3  ;;  %v1681_v33 = vand.u32 2147483648, %v1669_v3  ;;  %v1679_v28 = vand.u32 2147483647, %v1669_v3  ;;  %vm1675_vm15 = vweird.f32 %v1669_v3 }
0x2e34   :  { %v1682_v63 = vor.u32 1.1754944e-38, %v1681_v33  ;;  %vm1680_vm12 = vcmp.eq.f32.partialorder %v1679_v28, 8.507059e+37 }
0x2e38   :  { %v2186_v31 = vpop.eup %2185 }
0x2e39   :  { %v1671_v32 = vmul.f32 %v2186_v31, %v1669_v3  ;;  %vm1676_vm14 = vweird.f32 %v2186_v31 }
0x2e3a   :  { %vm1677_vm11 = vmor %vm1675_vm15, %vm1676_vm14 }
0x2e3b   :  { %v1672_v56 = vsub.f32 1.0, %v1671_v32 }
0x2e3d   :  { %v1673_v35 = vmul.f32 %v2186_v31, %v1672_v56 }
0x2e3f   :  { %v1674_v38 = vadd.f32 %v2186_v31, %v1673_v35 }
0x2e41   :  { %v1678_v49 = vsel %vm1677_vm11, %v2186_v31, %v1674_v38 }
0x2e42   :  { %v1683_v44 = vsel %vm1680_vm12, %v1682_v63, %v1678_v49 }
0x2e43   :  { %v1685_v45 = vmul.f32 %v2184_v5, %v1683_v44 }
0x2e45   :  { %v2892_v25 = vsel %vm1668_vm13, %v1683_v44, %v1685_v45 }
0x2e46   :  { %v1691_v26 = vmul.f32 %v1689_v53, %v2892_v25 }
0x2e48   :  { %v1692_v29 = vsel %vm115_vm0, %v1691_v26, 0.0 }
0x2e49   :  { %v1693_v54 = vpack.c.bf16 %v1692_v29, %v1692_v29 }
0x2e4b   :  { %2096 = vmatmul.msk.bf16.vlgmr.msra.gmra.mxu2 %vm282_vm10, %v1693_v54 }
0x2ece   :  { %v1706_v55 = vpop.f32.mrf.mxu2 }
0x2ecf   :  { %1711 = vrot.lane.b32.xlu2 %v1706_v55, %s2355_s14 }
0x2ed6   :  { %v1708_v58 = vpop.f32.mrf.mxu2 }
0x2f29   :  { %v1712_v62 = vpop.permute.xlu2 %1711 }
0x2f2a   :  { %v1714_v16 = vadd.f32 %v1712_v62, %v2861_v36 }
0x2f2c   :  { %v1719_v7 = vsub.f32 %v1714_v16, %v1717_v6 }
0x2f2e   :  { %v1720_v42 = vmul.f32 0.33333334, %v1719_v7 }
0x2f30   :  { %1722 = vrot.lane.b32.xlu1 %v1720_v42, %s2356_s15 }
0x2fa2   :  { %v1723_v8 = vpop.permute.xlu1 %1722 }
0x2fa3   :  { %v2901_v43 = vadd.f32 %v1723_v8, %v2847_v51 }
0x2fa5   :  { %v1727_v14 = vand.u32 2147483647, %v2901_v43  ;;  %v1726_v9 = vmax.f32 %v2901_v43, 0.0 }
0x2fa7   :  { %v1728_v41 = vsub.f32 0.0, %v1727_v14 }
0x2fa9   :  { %v1729_v47 = vmul.f32 1.442695, %v1728_v41 }
0x2fab   :  { %2187 = vpow2.f32 %v1729_v47 }
0x2fb1   :  { %v2188_v15 = vpop.eup %2187 }
0x2fb2   :  { %v1731_v39 = vadd.f32 1.0, %v2188_v15  ;;  %v1734_v24 = vmul.f32 -0.5, %v2188_v15  ;;  %v1737_v36 = vand.u32 2147483647, %v2188_v15 }
0x2fb4   :  { %2189 = vlog2.f32 %v1731_v39  ;;  %v1735_v23 = vadd.f32 1.0, %v1734_v24  ;;  %vm1738_vm14 = vcmp.lt.f32.partialorder %v1737_v36, 0.0004427343 }
0x2fb6   :  { %v1736_v48 = vmul.f32 %v2188_v15, %v1735_v23 }
0x2fba   :  { %v2190_v52 = vpop.eup %2189 }
0x2fbb   :  { %v1733_v13 = vmul.f32 0.6931472, %v2190_v52 }
0x2fbd   :  { %v1739_v11 = vsel %vm1738_vm14, %v1736_v48, %v1733_v13 }
0x2fbe   :  { %v1740_v17 = vadd.f32 %v1739_v11, %v1726_v9 }
0x2fc0   :  { %1756 = vrot.lane.b32.xlu2 %v1740_v17, %s2346_s0 }
0x301a   :  { %v1757_v30 = vpop.permute.xlu2 %1756 }
0x301b   :  { %v1759_v1 = vsel %vm115_vm0, %v1755_v21, %v1757_v30 }
0x301c   :  { %v1760_v2 = vsel %vm117_vm1, %v1759_v1, 0.0  ;;  %vm3030_vm1 = vcmask 138240  }
0x301d   :  { %v1761_v12 = vpack.c.bf16 %v1760_v2, %v1760_v2 }
0x301f   :  { %2097 = vmatmul.msk.bf16.vlgmr.msra.gmra.mxu0 %vm138_vm2, %v1761_v12 }
0x309c   :  { %v2909_v5 = vpop.f32.mrf.mxu0 }
0x309d   :  { %v1778_v3 = vmax.f32 %v2909_v5, 0.0 }
0x309f   :  { %1783 = vrot.lane.b32.xlu1 %v1778_v3, %s2350_s3  ;;  %1780 = vrot.lane.b32.xlu0 %v1778_v3, %s2351_s10 }
0x30a4   :  { %v1776_v31 = vpop.f32.mrf.mxu0 }
0x3111   :  { %v1784_v32 = vpop.permute.xlu1 %1783  ;;  %v1781_v56 = vpop.permute.xlu0 %1780 }
0x3112   :  { %v1786_v33 = vsel %vm163_vm3, 1.0, %v1781_v56 }
0x3113   :  { %v1787_v35 = vsel %vm165_vm4, %v1786_v33, %v1784_v32 }
0x3114   :  { %v1788_v28 = vsel %vm167_vm5, %v1787_v35, 0.0 }
0x3115   :  { %v1789_v38 = vpack.c.bf16 %v1788_v28, %v1788_v28 }
0x3117   :  { %2098 = vmatmul.msk.bf16.vlgmr.msrb.gmra.mxu3 %vm200_vm6, %v1789_v38 }
0x319a   :  { %v1802_v63 = vpop.f32.mrf.mxu3 }
0x319b   :  { %v1806_v49 = vmax.f32 %v1802_v63, 0.0 }
0x319d   :  { %1808 = vrot.lane.b32.xlu2 %v1806_v49, %s2352_s11 }
0x31a2   :  { %v1804_v44 = vpop.f32.mrf.mxu3 }
0x31f7   :  { %v1809_v45 = vpop.permute.xlu2 %1808 }
0x31f8   :  { %v1811_v53 = vsel %vm163_vm3, 1.0, %v1809_v45 }
0x31f9   :  { %v1812_v26 = vsel %vm223_vm7, %v1811_v53, %v1809_v45 }
0x31fa   :  { %v1813_v29 = vsel %vm225_vm8, %v1812_v26, 0.0  ;;  %vm431_vm8 = vcmask 588800  }
0x31fb   :  { %v1814_v54 = vpack.c.bf16 %v1813_v29, %v1813_v29 }
0x31fd   :  { %2099 = vmatmul.msk.bf16.vlgmr.msra.gmra.mxu1 %vm138_vm2, %v1814_v54  ;;  %vm3031_vm2 = vcmask 261120  }
0x31fe   :  { %vm3034_vm15 = vmmov %vm3031_vm2 }
0x31ff   :  { %vm3035_vm11 = vmmov %vm3031_vm2 }
0x3200   :  { %vm3036_vm12 = vmmov %vm3031_vm2 }
0x3201   :  { %vm3037_vm13 = vmmov %vm3031_vm2 }
0x327a   :  { %v1827_v55 = vpop.f32.mrf.mxu1 }
0x327b   :  { %v1831_v58 = vmax.f32 %v1827_v55, 0.0 }
0x327d   :  { %1833 = vrot.lane.b32.xlu0 %v1831_v58, %s2354_s13 }
0x3282   :  { %v1829_v62 = vpop.f32.mrf.mxu1 }
0x3285   :  { %1908 = vrot.lane.b32.xlu0 %v2909_v5, %s2353_s12 }
0x32ef   :  { %v1834_v16 = vpop.permute.xlu0 %1833 }
0x32f0   :  { %v1836_v6 = vadd.f32 %v1834_v16, %v1831_v58 }
0x32f2   :  { %1838 = vrot.lane.b32.xlu1 %v1836_v6, %s2352_s11 }
0x32f7   :  { %v1909_v56 = vpop.permute.xlu0 %1908 }
0x3364   :  { %v1839_v7 = vpop.permute.xlu1 %1838 }
0x3365   :  { %v1841_v42 = vsel %vm163_vm3, 1.0, %v1839_v7 }
0x3366   :  { %v1842_v8 = vsel %vm273_vm9, %v1841_v42, 0.0  ;;  %vm3032_vm9 = vmmov %vm3031_vm2 }
0x3367   :  { %v1843_v14 = vpack.c.bf16 %v1842_v8, %v1842_v8 }
0x3369   :  { %2100 = vmatmul.msk.bf16.vlgmr.msrb.gmra.mxu2 %vm282_vm10, %v1843_v14 }
0x33ec   :  { %v1856_v41 = vpop.f32.mrf.mxu2 }
0x33ed   :  { %v1860_v47 = vmax.f32 %v1856_v41, 0.0 }
0x33ef   :  { %1862 = vrot.lane.b32.xlu2 %v1860_v47, %s2352_s11 }
0x33f4   :  { %v1858_v15 = vpop.f32.mrf.mxu2 }
0x33f7   :  { %1936 = vrot.lane.b32.xlu2 %v2901_v43, %s2355_s14 }
0x33ff   :  { %425 = vrot.lane.b32.xlu2 %v2494_v19, %s2348_s2 }
0x3407   :  { %1082 = vrot.lane.b32.xlu2 %v2703_v18, %s2357_s16 }
0x340f   :  { %1742 = vrot.lane.b32.xlu2 %v1740_v17, %s2357_s16 }
0x3417   :  { %866 = vrot.lane.b32.xlu2 %v2617_v60, %s2348_s2 }
0x341f   :  { %1526 = vrot.lane.b32.xlu2 %v2833_v59, %s2348_s2 }
0x3449   :  { %v1863_v39 = vpop.permute.xlu2 %1862 }
0x344a   :  { %v1865_v24 = vsel %vm163_vm3, 1.0, %v1863_v39 }
0x344b   :  { %v1866_v23 = vsel %vm3030_vm1, %v1865_v24, 0.0  ;;  %vm3038_vm1 = vmmov %vm3031_vm2 }
0x344c   :  { %v1867_v36 = vpack.c.bf16 %v1866_v23, %v1866_v23 }
0x344e   :  { %2101 = vmatmul.msk.bf16.vlgmr.msrb.gmra.mxu0 %vm3031_vm2, %v1867_v36 }
0x3451   :  { %v1937_v44 = vpop.permute.xlu2 %1936 }
0x3459   :  { %v426_v45 = vpop.permute.xlu2 %425 }
0x3461   :  { %v1083_v53 = vpop.permute.xlu2 %1082 }
0x3469   :  { %v2960_v54 = vpop.permute.xlu2 %1742 }
0x3471   :  { %v867_v58 = vpop.permute.xlu2 %866 }
0x3479   :  { %v1527_v7 = vpop.permute.xlu2 %1526 }
0x34cb   :  { %v1880_v19 = vpop.f32.mrf.mxu0 }
0x34cc   :  { %v1884_v52 = vand.u32 2147483647, %v1880_v19  ;;  %vm1888_vm7 = vcmp.ge.f32.partialorder %v1880_v19, 0.0 }
0x34ce   :  { %v1885_v13 = vsub.f32 0.0, %v1884_v52 }
0x34d0   :  { %v1886_v18 = vmul.f32 1.442695, %v1885_v13 }
0x34d2   :  { %2191 = vpow2.f32 %v1886_v18 }
0x34d3   :  { %v1882_v48 = vpop.f32.mrf.mxu0 }
0x34d8   :  { %v2192_v9 = vpop.eup %2191 }
0x34d9   :  { %v1889_v11 = vadd.f32 1.0, %v2192_v9 }
0x34db   :  { %2193 = vrcp.f32 %v1889_v11  ;;  %v1901_v21 = vand.u32 2147483648, %v1889_v11  ;;  %v1899_v1 = vand.u32 2147483647, %v1889_v11  ;;  %vm1895_vm4 = vweird.f32 %v1889_v11 }
0x34dd   :  { %v1902_v12 = vor.u32 1.1754944e-38, %v1901_v21  ;;  %vm1900_vm6 = vcmp.eq.f32.partialorder %v1899_v1, 8.507059e+37 }
0x34e1   :  { %v2194_v60 = vpop.eup %2193 }
0x34e2   :  { %v1891_v17 = vmul.f32 %v2194_v60, %v1889_v11  ;;  %vm1896_vm3 = vweird.f32 %v2194_v60 }
0x34e3   :  { %vm1897_vm5 = vmor %vm1895_vm4, %vm1896_vm3 }
0x34e4   :  { %v1892_v59 = vsub.f32 1.0, %v1891_v17  ;;  %v1089_v17 = vsel %vm3037_vm13, %v2699_v4, %v1083_v53 }
0x34e6   :  { %v1893_v30 = vmul.f32 %v2194_v60, %v1892_v59 }
0x34e8   :  { %v1894_v2 = vadd.f32 %v2194_v60, %v1893_v30 }
0x34ea   :  { %v1898_v3 = vsel %vm1897_vm5, %v2194_v60, %v1894_v2 }
0x34eb   :  { %v1903_v31 = vsel %vm1900_vm6, %v1902_v12, %v1898_v3 }
0x34ec   :  { %v1905_v32 = vmul.f32 %v2192_v9, %v1903_v31 }
0x34ee   :  { %v1906_v33 = vsel %vm1888_vm7, %v1903_v31, %v1905_v32 }
0x34ef   :  { %v1911_v35 = vmul.f32 %v1909_v56, %v1906_v33 }
0x34f1   :  { %v1912_v28 = vsel %vm115_vm0, %v1911_v35, 0.0  ;;  %vm429_vm0 = vcmask 523264  }
0x34f2   :  { %v1913_v38 = vpack.c.bf16 %v1912_v28, %v1912_v28 }
0x34f4   :  { %2102 = vmatmul.msk.bf16.vlgmr.msrb.gmra.mxu1 %vm282_vm10, %v1913_v38  ;;  %vm3033_vm10 = vmmov %vm3031_vm2 }
0x34f5   :  { %vm3039_vm2 = vmmov %vm3038_vm1 }
0x34f6   :  { %v1749_v35 = vsel %vm3039_vm2, %v2901_v43, %v2960_v54 }
0x3571   :  { %v1926_v63 = vpop.f32.mrf.mxu1 }
0x3572   :  { %1931 = vrot.lane.b32.xlu1 %v1926_v63, %s2355_s14 }
0x3579   :  { %v1928_v49 = vpop.f32.mrf.mxu1 }
0x357a   :  { %421 = vrot.lane.b32.xlu1 %v2511_v50, %s2357_s16 }
0x3582   :  { %862 = vrot.lane.b32.xlu1 %v2635_v57, %s2357_s16 }
0x358a   :  { %1522 = vrot.lane.b32.xlu1 %v2851_v27, %s2357_s16 }
0x3592   :  { %646 = vrot.lane.b32.xlu1 %v2555_v0, %s2348_s2 }
0x359a   :  { %1306 = vrot.lane.b32.xlu1 %v2759_v37, %s2348_s2 }
0x35a2   :  { %1966 = vrot.lane.b32.xlu1 %v1906_v33, %s2348_s2 }
0x35e4   :  { %v1932_v26 = vpop.permute.xlu1 %1931 }
0x35e5   :  { %v1934_v50 = vadd.f32 %v1932_v26, %v2909_v5 }
0x35e7   :  { %v1939_v29 = vsub.f32 %v1934_v50, %v1937_v44 }
0x35e9   :  { %v1940_v57 = vmul.f32 0.33333334, %v1939_v29 }
0x35eb   :  { %1942 = vrot.lane.b32.xlu0 %v1940_v57, %s2356_s15 }
0x35ec   :  { %v422_v0 = vpop.permute.xlu1 %421 }
0x35ed   :  { %v428_v37 = vsel %vm3032_vm9, %v2507_v34, %v422_v0 }
0x35ee   :  { %v430_v27 = vsel %vm429_vm0, %v428_v37, %v426_v45 }
0x35ef   :  { %v432_v55 = vsel %vm431_vm8, %v430_v27, 0.0 }
0x35f0   :  { %433 = vst [vmem:[#allocation10] sm:$0xff] %v432_v55 }
0x35f3   :  { %642 = vrot.lane.b32.xlu0 %v2573_v40, %s2357_s16 }
0x35f4   :  { %v863_v5 = vpop.permute.xlu1 %862 }
0x35f5   :  { %v869_v62 = vsel %vm3033_vm10, %v2631_v10, %v863_v5 }
0x35f6   :  { %v870_v16 = vsel %vm429_vm0, %v869_v62, %v867_v58 }
0x35f7   :  { %v871_v6 = vsel %vm431_vm8, %v870_v16, 0.0 }
0x35f8   :  { %873 = vst [vmem:[#allocation10 + $0x10] sm:$0xff] %v871_v6 }
0x35fb   :  { %1302 = vrot.lane.b32.xlu0 %v2781_v20, %s2357_s16 }
0x35fc   :  { %v1523_v34 = vpop.permute.xlu1 %1522 }
0x35fd   :  { %v1529_v42 = vsel %vm3034_vm15, %v2847_v51, %v1523_v34 }
0x35fe   :  { %v1530_v8 = vsel %vm429_vm0, %v1529_v42, %v1527_v7 }
0x35ff   :  { %v1531_v40 = vsel %vm431_vm8, %v1530_v8, 0.0 }
0x3600   :  { %1533 = vst [vmem:[#allocation10 + $0x28] sm:$0xff] %v1531_v40 }
0x3603   :  { %1086 = vrot.lane.b32.xlu0 %v2679_v46, %s2348_s2 }
0x3604   :  { %v647_v15 = vpop.permute.xlu1 %646 }
0x360c   :  { %v1307_v52 = vpop.permute.xlu1 %1306 }
0x3614   :  { %v1967_v32 = vpop.permute.xlu1 %1966 }
0x365d   :  { %v1943_v10 = vpop.permute.xlu0 %1942 }
0x365e   :  { %v1945_v14 = vadd.f32 %v1943_v10, %v2901_v43 }
0x3660   :  { %v1947_v41 = vand.u32 2147483647, %v1945_v14  ;;  %v1946_v2 = vmax.f32 %v1945_v14, 0.0 }
0x3662   :  { %v1948_v47 = vsub.f32 0.0, %v1947_v41 }
0x3664   :  { %v1949_v20 = vmul.f32 1.442695, %v1948_v47 }
0x3665   :  { %v643_v39 = vpop.permute.xlu0 %642 }
0x3666   :  { %2195 = vpow2.f32 %v1949_v20  ;;  %v649_v51 = vsel %vm3035_vm11, %v2569_v22, %v643_v39 }
0x3667   :  { %v650_v24 = vsel %vm429_vm0, %v649_v51, %v647_v15 }
0x3668   :  { %v651_v23 = vsel %vm431_vm8, %v650_v24, 0.0 }
0x3669   :  { %653 = vst [vmem:[#allocation10 + $0x8] sm:$0xff] %v651_v23 }
0x366c   :  { %v2196_v36 = vpop.eup %2195 }
0x366d   :  { %v1303_v19 = vpop.permute.xlu0 %1302  ;;  %v1951_v46 = vadd.f32 1.0, %v2196_v36  ;;  %v1954_v18 = vmul.f32 -0.5, %v2196_v36  ;;  %v1957_v11 = vand.u32 2147483647, %v2196_v36 }
0x366e   :  { %v1309_v13 = vsel %vm3036_vm12, %v2777_v61, %v1303_v19 }
0x366f   :  { %v1310_v48 = vsel %vm429_vm0, %v1309_v13, %v1307_v52  ;;  %2197 = vlog2.f32 %v1951_v46  ;;  %v1955_v22 = vadd.f32 1.0, %v1954_v18  ;;  %vm1958_vm14 = vcmp.lt.f32.partialorder %v1957_v11, 0.0004427343 }
0x3670   :  { %v1311_v9 = vsel %vm431_vm8, %v1310_v48, 0.0 }
0x3671   :  { %1313 = vst [vmem:[#allocation10 + $0x20] sm:$0xff] %v1311_v9  ;;  %v1956_v1 = vmul.f32 %v2196_v36, %v1955_v22 }
0x3675   :  { %v2198_v60 = vpop.eup %2197  ;;  %v1087_v59 = vpop.permute.xlu0 %1086 }
0x3676   :  { %v1090_v21 = vsel %vm429_vm0, %v1089_v17, %v1087_v59  ;;  %v1953_v30 = vmul.f32 0.6931472, %v2198_v60 }
0x3677   :  { %v1091_v61 = vsel %vm431_vm8, %v1090_v21, 0.0 }
0x3678   :  { %1093 = vst [vmem:[#allocation10 + $0x18] sm:$0xff] %v1091_v61  ;;  %v1959_v12 = vsel %vm1958_vm14, %v1956_v1, %v1953_v30 }
0x3679   :  { %v1960_v3 = vadd.f32 %v1959_v12, %v1946_v2 }
0x367b   :  { %1962 = vrot.lane.b32.xlu0 %v1960_v3, %s2357_s16 }
0x3683   :  { %1746 = vrot.lane.b32.xlu0 %v2892_v25, %s2348_s2 }
0x36ed   :  { %v1963_v31 = vpop.permute.xlu0 %1962 }
0x36ee   :  { %v1969_v4 = vsel %vm3038_vm1, %v1945_v14, %v1963_v31 }
0x36ef   :  { %v1970_v56 = vsel %vm429_vm0, %v1969_v4, %v1967_v32 }
0x36f0   :  { %v1971_v33 = vsel %vm431_vm8, %v1970_v56, 0.0 }
0x36f1   :  { %1973 = vst [vmem:[#allocation10 + $0x38] sm:$0xff] %v1971_v33 }
0x36f5   :  { %v1747_v25 = vpop.permute.xlu0 %1746 }
0x36f6   :  { %v1750_v28 = vsel %vm429_vm0, %v1749_v35, %v1747_v25 }
0x36f7   :  { %v1751_v38 = vsel %vm431_vm8, %v1750_v28, 0.0 }
0x36f8   :  { %1753 = vst [vmem:[#allocation10 + $0x30] sm:$0xff] %v1751_v38 }
0x36f9   :  { %1986 = dma.vmem_to_hbm [thread:$0]  %s1979_s18, 1024, %s1981_s21, [#allocation4], %s2345_s6, %s2345_s6, %s2346_s0  }
0x36fa   :  { %2340 = dma.done.wait [#allocation4], 1024  }
0x36fb   :  { %2341 = vsyncadd [#allocation4], 4294966272 }
0x36fc   :  { %1991 = vsyncpa [#allocation3], 1 }
0x36fd   :  { %1992 = vsyncpa [#allocation6], 1 }
0x36fe   :  { %1993 = vsyncpa [#allocation9], 1 }
0x36ff   :  { %1994 = vsyncpa [#allocation4], 1 }

</bundles_post_ra>
